<compile_context>
chip_gen: v7x
topology: tpu7x:2x2x1
jax: 0.10.0
libtpu: 0.0.40
codegen_flags: <defaults>
</compile_context>

<pallas_src>
import functools

import jax
import jax.numpy as jnp
from jax import lax
from jax.experimental import pallas as pl
from jax.experimental.pallas import tpu as pltpu

EPS = 1e-3          # torch.nn.BatchNorm2d(eps=0.001)
LANE = 128          # TPU lane width


# --------------------------------- helpers ----------------------------------

def _round_up(n, m):
    return -(-n // m) * m


def _pad_axis(a, axis, size):
    if a.shape[axis] >= size:
        return a
    pad = [(0, 0)] * a.ndim
    pad[axis] = (0, size - a.shape[axis])
    return jnp.pad(a, pad)


def _pad_rows(a, rows):
    if a.shape[0] == rows:
        return a
    pad = [(0, rows - a.shape[0])] + [(0, 0)] * (a.ndim - 1)
    return jnp.pad(a, pad)


def _row_plan(n, cap, mult=8):
    """Pick a row tile (multiple of `mult`, <= cap) and the padded row count.
    Prefers an exact divisor of n (no padding); otherwise pads n up to a tile
    multiple instead of falling back to a full-extent block."""
    cap = max(mult, min(cap, _round_up(n, mult)))
    cap -= cap % mult
    for t in range(cap, mult - 1, -mult):
        if n % t == 0:
            return t, n
    return cap, _round_up(n, cap)


@functools.lru_cache(maxsize=None)
def _vmem_limit_bytes():
    """~3/4 of physical VMEM, capped at 96 MiB: ~48 MiB on v7x (64 MiB parts),
    96 MiB on v5e/v6e (128 MiB parts)."""
    cap = 64 * 1024 * 1024
    try:
        cap = int(pltpu.get_tpu_info().vmem_capacity_bytes)
    except Exception:
        pass
    return int(min(96 * 1024 * 1024, (cap * 3) // 4))


def _cparams(*sems):
    return pltpu.CompilerParams(dimension_semantics=sems,
                                vmem_limit_bytes=_vmem_limit_bytes())


def _silu(y):
    # sigmoid via EUP exp + EUP approximate reciprocal (keeps the VALU free).
    return y * pl.reciprocal(1.0 + jnp.exp(-y), approx=True)


def _sublane_partials(y):
    """(M, C) f32 -> (8, C) partial sum / sum-of-squares.

    Keeps the sublane dimension at 8 so the per-step reduction is a plain VALU
    vreg add (axis-0 sum) instead of an XLU cross-sublane reduce."""
    m, c = y.shape
    if m % 8 == 0:
        y3 = y.reshape(m // 8, 8, c)
        return jnp.sum(y3, axis=0), jnp.sum(y3 * y3, axis=0)
    s = jnp.sum(y, axis=0, keepdims=True)
    ss = jnp.sum(y * y, axis=0, keepdims=True)
    z = jnp.zeros((7, c), jnp.float32)
    return jnp.concatenate([s, z], axis=0), jnp.concatenate([ss, z], axis=0)


def _bn_scale_shift(s_part, ss_part, count, gamma, beta):
    """Collapse per-slice stats partials and fold batch-stats BN + affine into a
    per-channel scale/shift (tiny XLA ops)."""
    cp = s_part.shape[-1]
    s = jnp.sum(s_part.reshape(-1, cp), axis=0, keepdims=True)
    ss = jnp.sum(ss_part.reshape(-1, cp), axis=0, keepdims=True)
    # TODO(synk): E[y^2]-E[y]^2 in f32 can cancel for very large counts; switch to
    # shifted/Welford partials if tighter BN accuracy is ever required.
    mean = s / count
    var = jnp.maximum(ss / count - mean * mean, 0.0)
    rstd = lax.rsqrt(var + EPS)
    scale = gamma * rstd
    shift = beta - mean * scale
    return scale, shift                                   # each (1, Cp) f32


# ----------------------------- Pallas kernels --------------------------------

def _maxpool_kernel(x_ref, o_ref):
    """2x2/s2 max-pool. x block: (T, 2, Wo, 2*Cp) (free reshape of NHWC),
    out block: (T, Wo, Cp)."""
    cp = o_ref.shape[-1]
    x = x_ref[...]
    m = jnp.maximum(x[:, 0], x[:, 1])                      # max over the H pair
    o_ref[...] = jnp.maximum(m[..., :cp], m[..., cp:])     # max over the W pair


def _mm_stats_kernel(x_ref, w_ref, sum_ref, ssq_ref):
    """1x1 conv pass 1: y = x @ w (bf16 in, f32 acc) + per-slice (8, Cp) stats."""
    y = jnp.dot(x_ref[...], w_ref[...], preferred_element_type=jnp.float32)
    s, ss = _sublane_partials(y)
    sum_ref[...] = s.reshape(sum_ref.shape)
    ssq_ref[...] = ss.reshape(ssq_ref.shape)


def _mm_bn_silu_kernel(x_ref, w_ref, scale_ref, shift_ref, o_ref):
    """1x1 conv pass 2: recompute y = x @ w (memory bound), folded BN, SiLU."""
    y = jnp.dot(x_ref[...], w_ref[...], preferred_element_type=jnp.float32)
    o_ref[...] = _silu(y * scale_ref[...] + shift_ref[...]).astype(o_ref.dtype)


def _bn_silu_kernel(y_ref, scale_ref, shift_ref, o_ref):
    """Pure elementwise folded-BN + SiLU (3x3 pass 2 -- no matmul recompute)."""
    y = y_ref[...].astype(jnp.float32)
    o_ref[...] = _silu(y * scale_ref[...] + shift_ref[...]).astype(o_ref.dtype)


def _c3_conv_stats_kernel(xa_ref, xb_ref, w_ref, y_ref, sum_ref, ssq_ref):
    """3x3/s2 conv pass 1 for T output rows per grid step.

    xa block: (1, T, 2, Wo+1, 2*Cp)  padded row pairs [j*T, j*T+T)
    xb block: (1, 1, 1, Wo+1, 2*Cp)  first row of pair j*T+T (bottom halo only)
    w  block: (9*Cp, Cp)             HWIO weights reshaped, resident in VMEM
    y  block: (1, T, Wo, Cp) bf16    pre-BN conv output
    stats   : (1, 1, 8, Cp) f32      per-slice sum / sum-of-squares partials
    """
    t = xa_ref.shape[1]
    wo1 = xa_ref.shape[3]
    cp2 = xa_ref.shape[4]
    wo, cp = wo1 - 1, cp2 // 2
    m = t * wo

    xa = xa_ref[...]
    last = xb_ref[...][0, 0]                               # (1, Wo+1, 2*Cp)
    rows0 = xa[0, :, 0]                                    # padded rows 2*oh
    rows1 = xa[0, :, 1]                                    # padded rows 2*oh+1
    if t > 1:                                              # padded rows 2*oh+2
        rows2 = jnp.concatenate([xa[0, 1:, 0], last], axis=0)
    else:
        rows2 = last

    acc = jnp.zeros((m, cp), jnp.float32)
    for kh, r in enumerate((rows0, rows1, rows2)):
        base = kh * 3 * cp
        # fused kw=0 + kw=1 taps: contiguous K = 2*Cp operand (fills a 256-deep MXU)
        op01 = r[:, 0:wo, :].reshape(m, 2 * cp)
        acc = acc + jnp.dot(op01, w_ref[base:base + 2 * cp, :],
                            preferred_element_type=jnp.float32)
        # kw = 2 tap: K = Cp
        op2 = r[:, 1:wo1, 0:cp].reshape(m, cp)
        acc = acc + jnp.dot(op2, w_ref[base + 2 * cp:base + 3 * cp, :],
                            preferred_element_type=jnp.float32)

    y_ref[...] = acc.reshape(y_ref.shape).astype(y_ref.dtype)
    s, ss = _sublane_partials(acc)
    sum_ref[...] = s.reshape(sum_ref.shape)
    ssq_ref[...] = ss.reshape(ssq_ref.shape)


# ------------------------------ stage wrappers --------------------------------

def _maxpool2x2(x_p):
    """x_p: (B, H, W, Cp) channel-padded NHWC -> pooled (B*Ho, Wo, Cp), same dtype."""
    b, h, w, cp = x_p.shape
    ho, wo = h // 2, w // 2
    rows = b * ho
    x2 = x_p.reshape(rows, 2, wo, 2 * cp)                  # free reshape of NHWC
    blk_bytes = 2 * wo * 2 * cp * x_p.dtype.itemsize
    t, rows_p = _row_plan(rows, max(1, (4 << 20) // blk_bytes), mult=1)
    x2 = _pad_rows(x2, rows_p)
    out = pl.pallas_call(
        _maxpool_kernel,
        out_shape=jax.ShapeDtypeStruct((rows_p, wo, cp), x_p.dtype),
        grid=(rows_p // t,),
        in_specs=[pl.BlockSpec((t, 2, wo, 2 * cp), lambda i: (i, 0, 0, 0))],
        out_specs=pl.BlockSpec((t, wo, cp), lambda i: (i, 0, 0)),
        compiler_params=_cparams("parallel"),
    )(x2)
    return out[:rows]


def _conv1x1_bn_silu(x2d, w, gamma, beta, *, row_cap=1024, out_dtype=jnp.float32):
    """Fused 1x1 conv + BatchNorm(batch stats) + SiLU over flattened rows.
    x2d: (N, Kp) bf16, w: (Kp, Cp) bf16, gamma/beta: (1, Cp) f32."""
    n, kp = x2d.shape
    cp = w.shape[1]
    row_cap = min(row_cap, max(8, (4 << 20) // (kp * x2d.dtype.itemsize)))
    tm, n_p = _row_plan(n, row_cap, mult=8)
    xpad = _pad_rows(x2d, n_p)                 # zero rows contribute 0 to stats
    nblk = n_p // tm

    x_spec = pl.BlockSpec((tm, kp), lambda i: (i, 0))
    w_spec = pl.BlockSpec((kp, cp), lambda i: (0, 0))      # resident weight
    vec_spec = pl.BlockSpec((1, cp), lambda i: (0, 0))     # resident scale/shift
    st_spec = pl.BlockSpec((1, 8, cp), lambda i: (i, 0, 0))  # disjoint partials

    # pass 1: per-slice stats partials (disjoint output blocks -> fully "parallel")
    s, ss = pl.pallas_call(
        _mm_stats_kernel,
        out_shape=(jax.ShapeDtypeStruct((nblk, 8, cp), jnp.float32),
                   jax.ShapeDtypeStruct((nblk, 8, cp), jnp.float32)),
        grid=(nblk,),
        in_specs=[x_spec, w_spec],
        out_specs=(st_spec, st_spec),
        compiler_params=_cparams("parallel"),
    )(xpad, w)

    scale, shift = _bn_scale_shift(s, ss, n, gamma, beta)

    # pass 2: recompute the (memory-bound) matmul, apply folded BN + SiLU
    out = pl.pallas_call(
        _mm_bn_silu_kernel,
        out_shape=jax.ShapeDtypeStruct((n_p, cp), out_dtype),
        grid=(nblk,),
        in_specs=[x_spec, w_spec, vec_spec, vec_spec],
        out_specs=pl.BlockSpec((tm, cp), lambda i: (i, 0)),
        compiler_params=_cparams("parallel"),
    )(xpad, w, scale, shift)
    return out[:n]


def _conv3x3s2_bn_silu(x_bhwc, w3p, gamma, beta, *, row_cap=1024):
    """3x3 / stride-2 / pad-1 conv + BatchNorm(batch stats) + SiLU.
    x_bhwc: (B, H, W, Cp) bf16 (cbs2 output), w3p: (9*Cp, Cp) bf16."""
    b, h, w, cp = x_bhwc.shape
    ho, wo = h // 2, w // 2

    # TODO(synk): the spatial jnp.pad below is still one extra HBM round-trip of the
    # (bf16) intermediate; removing it needs an element-offset output spec for the
    # producing 1x1 pass (or in-kernel halo masking) and is left out.
    xp = jnp.pad(x_bhwc, ((0, 0), (1, 1), (1, 1), (0, 0)))
    xps = xp.reshape(b, ho + 1, 2, wo + 1, 2 * cp)         # free reshape of NHWC

    # output rows per grid step: keep the f32 accumulator (T*Wo, Cp) <= ~24 vregs
    t = 1
    for cand in range(1, min(max(1, 192 // max(wo, 1)), ho) + 1):
        if ho % cand == 0:
            t = cand
    nj = ho // t

    spec_xa = pl.BlockSpec((1, t, 2, wo + 1, 2 * cp), lambda i, j: (i, j, 0, 0, 0))
    spec_xb = pl.BlockSpec((1, 1, 1, wo + 1, 2 * cp),
                           lambda i, j: (i, (j + 1) * t, 0, 0, 0))
    # Resident weight (constant index -> fetched once).  On v7x with very large Cp,
    # single-buffering it (pipeline_mode=pl.Buffered(1)) halves its VMEM footprint.
    spec_w = pl.BlockSpec((9 * cp, cp), lambda i, j: (0, 0))
    spec_y = pl.BlockSpec((1, t, wo, cp), lambda i, j: (i, j, 0, 0))
    spec_st = pl.BlockSpec((1, 1, 8, cp), lambda i, j: (i, j, 0, 0))

    # pass 1 ("parallel" x "parallel"): conv -> y (bf16) + per-slice stats partials
    y, s, ss = pl.pallas_call(
        _c3_conv_stats_kernel,
        out_shape=(jax.ShapeDtypeStruct((b, ho, wo, cp), jnp.bfloat16),
                   jax.ShapeDtypeStruct((b, nj, 8, cp), jnp.float32),
                   jax.ShapeDtypeStruct((b, nj, 8, cp), jnp.float32)),
        grid=(b, nj),
        in_specs=[spec_xa, spec_xb, spec_w],
        out_specs=(spec_y, spec_st, spec_st),
        compiler_params=_cparams("parallel", "parallel"),
    )(xps, xps, w3p)

    scale, shift = _bn_scale_shift(s, ss, b * ho * wo, gamma, beta)

    # pass 2: pure elementwise BN + SiLU with large row tiles (no matmul recompute)
    n = b * ho * wo
    row_cap = min(row_cap, max(8, (4 << 20) // (cp * 2)))
    tm, n_p = _row_plan(n, row_cap, mult=8)
    y2 = _pad_rows(y.reshape(n, cp), n_p)
    vec_spec = pl.BlockSpec((1, cp), lambda i: (0, 0))
    out = pl.pallas_call(
        _bn_silu_kernel,
        out_shape=jax.ShapeDtypeStruct((n_p, cp), jnp.float32),
        grid=(n_p // tm,),
        in_specs=[pl.BlockSpec((tm, cp), lambda i: (i, 0)), vec_spec, vec_spec],
        out_specs=pl.BlockSpec((tm, cp), lambda i: (i, 0)),
        compiler_params=_cparams("parallel"),
    )(y2, scale, shift)
    return out[:n].reshape(b, ho, wo, cp)


# --------------------------------- forward -----------------------------------

def mp_forward(x_nchw, params, *, row_cap=1024):
    """Pallas implementation of mp.forward. Input/output are NCHW like PyTorch."""
    x = jnp.transpose(x_nchw, (0, 2, 3, 1)).astype(jnp.float32)   # NHWC
    b, h, w, cin = x.shape
    ho, wo = h // 2, w // 2
    c1 = params["w1"].shape[1]
    cinp = _round_up(cin, LANE)
    c1p = _round_up(c1, LANE)
    # TODO(synk): for tiny real channel counts the 128-lane padding inflates
    # FLOPs/bytes; a round_up(9*C, 128) im2col-K packing would avoid it but changes
    # the tap layout, so it is not done here.

    # lane-dense channel padding; matmul operands in bf16 (f32 accumulation).
    xp = _pad_axis(x, 3, cinp).astype(jnp.bfloat16)
    w1 = _pad_axis(_pad_axis(params["w1"], 0, cinp), 1, c1p).astype(jnp.bfloat16)
    w2 = _pad_axis(_pad_axis(params["w2"], 0, cinp), 1, c1p).astype(jnp.bfloat16)
    w3 = _pad_axis(_pad_axis(params["w3_hwio"], 2, c1p), 3, c1p)
    w3 = w3.reshape(9 * c1p, c1p).astype(jnp.bfloat16)
    g1 = _pad_axis(params["g1"], 1, c1p).astype(jnp.float32)
    b1 = _pad_axis(params["b1"], 1, c1p).astype(jnp.float32)
    g2 = _pad_axis(params["g2"], 1, c1p).astype(jnp.float32)
    b2 = _pad_axis(params["b2"], 1, c1p).astype(jnp.float32)
    g3 = _pad_axis(params["g3"], 1, c1p).astype(jnp.float32)
    b3 = _pad_axis(params["b3"], 1, c1p).astype(jnp.float32)

    # ---- branch 0: maxpool(2,2) -> cbs1 (1x1 conv + BN + SiLU) ----
    pooled = _maxpool2x2(xp)                                        # (b*ho, wo, cinp)
    x0 = _conv1x1_bn_silu(pooled.reshape(b * ho * wo, cinp), w1, g1, b1,
                          row_cap=row_cap, out_dtype=jnp.float32)
    x0 = x0.reshape(b, ho, wo, c1p)[..., :c1]

    # ---- branch 1: cbs2 (1x1) -> cbs3 (3x3 conv, stride 2, pad 1) ----
    x1 = _conv1x1_bn_silu(xp.reshape(b * h * w, cinp), w2, g2, b2,
                          row_cap=row_cap, out_dtype=jnp.bfloat16)
    x1 = x1.reshape(b, h, w, c1p)
    x1 = _conv3x3s2_bn_silu(x1, w3, g3, b3, row_cap=row_cap)[..., :c1]

    out = jnp.concatenate([x0, x1], axis=-1)                        # dim=1 in NCHW
    return jnp.transpose(out, (0, 3, 1, 2))


# ------------------------- pure-JAX reference (check) -------------------------

def _bn_silu_ref(y, gamma, beta):
    mean = jnp.mean(y, axis=(0, 1, 2), keepdims=True)
    var = jnp.mean((y - mean) ** 2, axis=(0, 1, 2), keepdims=True)
    yn = ((y - mean) * lax.rsqrt(var + EPS) * gamma.reshape(1, 1, 1, -1)
          + beta.reshape(1, 1, 1, -1))
    return yn * jax.nn.sigmoid(yn)


def mp_reference(x_nchw, params, operand_dtype=jnp.float32):
    """Pure-XLA reference. operand_dtype=jnp.bfloat16 mirrors the kernel's bf16
    MXU operands (with f32 accumulation) for a tight comparison."""
    q = lambda a: a.astype(operand_dtype).astype(jnp.float32)
    x = jnp.transpose(x_nchw, (0, 2, 3, 1)).astype(jnp.float32)
    cin = x.shape[-1]
    c1 = params["w1"].shape[1]
    dn = ("NHWC", "HWIO", "NHWC")
    hp = lax.Precision.HIGHEST
    xq = q(x)

    p0 = lax.reduce_window(xq, -jnp.inf, lax.max, (1, 2, 2, 1), (1, 2, 2, 1),
                           "VALID")
    y0 = lax.conv_general_dilated(p0, q(params["w1"]).reshape(1, 1, cin, c1),
                                  (1, 1), "SAME", dimension_numbers=dn,
                                  precision=hp)
    x0 = _bn_silu_ref(y0, params["g1"], params["b1"])

    y1 = lax.conv_general_dilated(xq, q(params["w2"]).reshape(1, 1, cin, c1),
                                  (1, 1), "SAME", dimension_numbers=dn,
                                  precision=hp)
    x1 = _bn_silu_ref(y1, params["g2"], params["b2"])
    y1 = lax.conv_general_dilated(q(x1), q(params["w3_hwio"]), (2, 2),
                                  ((1, 1), (1, 1)), dimension_numbers=dn,
                                  precision=hp)
    x1 = _bn_silu_ref(y1, params["g3"], params["b3"])

    out = jnp.concatenate([x0, x1], axis=-1)
    return jnp.transpose(out, (0, 3, 1, 2))


# ----------------------------------- main -------------------------------------

if __name__ == "__main__":
    B, Cin, H, W = 2, 4, 16, 16
    out_ = 8
    C1 = out_ // 2                       # out_ // 2 channels per branch

    key = jax.random.PRNGKey(0)
    ks = jax.random.split(key, 10)
    x = jax.random.normal(ks[0], (B, Cin, H, W), jnp.float32)

    # torch Conv2d weights stored directly in matmul layout:
    # 1x1 convs as (Cin, Cout); the 3x3 conv as HWIO (kh, kw, cin, cout).
    params = {
        "w1": jax.random.normal(ks[1], (Cin, C1), jnp.float32) * 0.5,
        "g1": 1.0 + 0.1 * jax.random.normal(ks[2], (1, C1), jnp.float32),
        "b1": 0.1 * jax.random.normal(ks[3], (1, C1), jnp.float32),
        "w2": jax.random.normal(ks[4], (Cin, C1), jnp.float32) * 0.5,
        "g2": 1.0 + 0.1 * jax.random.normal(ks[5], (1, C1), jnp.float32),
        "b2": 0.1 * jax.random.normal(ks[6], (1, C1), jnp.float32),
        "w3_hwio": jax.random.normal(ks[7], (3, 3, C1, C1), jnp.float32) * 0.3,
        "g3": 1.0 + 0.1 * jax.random.normal(ks[8], (1, C1), jnp.float32),
        "b3": 0.1 * jax.random.normal(ks[9], (1, C1), jnp.float32),
    }

    fwd = jax.jit(mp_forward)
    out = jax.block_until_ready(fwd(x, params))
    assert out.shape == (B, out_, H // 2, W // 2), out.shape

    # tight check vs. a reference that uses the same bf16 matmul operands
    ref_bf16 = jax.block_until_ready(mp_reference(x, params, jnp.bfloat16))
    assert jnp.allclose(out, ref_bf16, rtol=3e-2, atol=3e-2), \
        float(jnp.max(jnp.abs(out - ref_bf16)))
    # loose structural sanity check vs. the full-f32 reference
    ref_f32 = jax.block_until_ready(mp_reference(x, params))
    assert jnp.allclose(out, ref_f32, rtol=1e-1, atol=1e-1), \
        float(jnp.max(jnp.abs(out - ref_f32)))

    print("KERNEL_OK")
</pallas_src>

<mosaic_0001>
module attributes {stable_mosaic.version = 11 : i64} {
  func.func @_mm_stats_kernel(%arg0: i32, %arg1: memref<512x128xbf16, #tpu.memory_space<vmem>>, %arg2: memref<128x128xbf16, #tpu.memory_space<vmem>>, %arg3: memref<1x8x128xf32, #tpu.memory_space<vmem>>, %arg4: memref<1x8x128xf32, #tpu.memory_space<vmem>>) attributes {dimension_semantics = [#tpu.dimension_semantics<parallel>], iteration_bounds = array<i64: 1>, scalar_prefetch = 0 : i64, scratch_operands = 0 : i64, tpu.core_type = #tpu.core_type<tc>, window_params = [{transform_indices = @transform_0, window_bounds = array<i64: 512, 128>}, {pipeline_mode = #tpu.pipeline_mode<synchronous>, transform_indices = @transform_1, window_bounds = array<i64: 128, 128>}, {transform_indices = @transform_2, window_bounds = array<i64: 1, 8, 128>}, {transform_indices = @transform_3, window_bounds = array<i64: 1, 8, 128>}]} {
    %c0 = arith.constant 0 : index
    %c0_0 = arith.constant 0 : index
    %0 = vector.load %arg1[%c0, %c0_0] : memref<512x128xbf16, #tpu.memory_space<vmem>>, vector<512x128xbf16>
    %c0_1 = arith.constant 0 : index
    %c0_2 = arith.constant 0 : index
    %1 = vector.load %arg2[%c0_1, %c0_2] : memref<128x128xbf16, #tpu.memory_space<vmem>>, vector<128x128xbf16>
    %cst = arith.constant dense<0.000000e+00> : vector<512x128xf32>
    %2 = tpu.matmul %0, %1, %cst {dimension_numbers = #tpu.dot_dimension_numbers<[1], [0], [0], [1], [0, 0, 1, 1], [], []>} : vector<512x128xbf16>, vector<128x128xbf16>, vector<512x128xf32> -> vector<512x128xf32>
    %3 = vector.shape_cast %2 : vector<512x128xf32> to vector<64x8x128xf32>
    %cst_3 = arith.constant dense<0.000000e+00> : vector<8x128xf32>
    %4 = vector.multi_reduction <add>, %3, %cst_3 [0] : vector<64x8x128xf32> to vector<8x128xf32>
    %5 = arith.mulf %3, %3 : vector<64x8x128xf32>
    %cst_4 = arith.constant dense<0.000000e+00> : vector<8x128xf32>
    %6 = vector.multi_reduction <add>, %5, %cst_4 [0] : vector<64x8x128xf32> to vector<8x128xf32>
    %7 = vector.shape_cast %4 : vector<8x128xf32> to vector<1x8x128xf32>
    %c0_5 = arith.constant 0 : index
    %c0_6 = arith.constant 0 : index
    %c0_7 = arith.constant 0 : index
    %8 = vector.load %arg3[%c0_5, %c0_6, %c0_7] : memref<1x8x128xf32, #tpu.memory_space<vmem>>, vector<1x8x128xf32>
    tpu.vector_store %arg3[%c0_5, %c0_6, %c0_7], %7 {strides = array<i32>} : memref<1x8x128xf32, #tpu.memory_space<vmem>>, vector<1x8x128xf32>,
    %9 = vector.shape_cast %6 : vector<8x128xf32> to vector<1x8x128xf32>
    %c0_8 = arith.constant 0 : index
    %c0_9 = arith.constant 0 : index
    %c0_10 = arith.constant 0 : index
    %10 = vector.load %arg4[%c0_8, %c0_9, %c0_10] : memref<1x8x128xf32, #tpu.memory_space<vmem>>, vector<1x8x128xf32>
    tpu.vector_store %arg4[%c0_8, %c0_9, %c0_10], %9 {strides = array<i32>} : memref<1x8x128xf32, #tpu.memory_space<vmem>>, vector<1x8x128xf32>,
    return
  }
  func.func @transform_0(%arg0: i32) -> (i32, i32) {
    %c0_i32 = arith.constant 0 : i32
    %c0_i32_0 = arith.constant 0 : i32
    return %arg0, %c0_i32 : i32, i32
  }
  func.func @transform_1(%arg0: i32) -> (i32, i32) {
    %c0_i32 = arith.constant 0 : i32
    %c0_i32_0 = arith.constant 0 : i32
    %c0_i32_1 = arith.constant 0 : i32
    return %c0_i32, %c0_i32_0 : i32, i32
  }
  func.func @transform_2(%arg0: i32) -> (i32, i32, i32) {
    %c0_i32 = arith.constant 0 : i32
    %c0_i32_0 = arith.constant 0 : i32
    %c0_i32_1 = arith.constant 0 : i32
    return %arg0, %c0_i32, %c0_i32_0 : i32, i32, i32
  }
  func.func @transform_3(%arg0: i32) -> (i32, i32, i32) {
    %c0_i32 = arith.constant 0 : i32
    %c0_i32_0 = arith.constant 0 : i32
    %c0_i32_1 = arith.constant 0 : i32
    return %arg0, %c0_i32, %c0_i32_0 : i32, i32, i32
  }
}

module attributes {stable_mosaic.version = 11 : i64} {
  func.func @_mm_bn_silu_kernel(%arg0: i32, %arg1: memref<512x128xbf16, #tpu.memory_space<vmem>>, %arg2: memref<128x128xbf16, #tpu.memory_space<vmem>>, %arg3: memref<1x128xf32, #tpu.memory_space<vmem>>, %arg4: memref<1x128xf32, #tpu.memory_space<vmem>>, %arg5: memref<512x128xbf16, #tpu.memory_space<vmem>>) attributes {dimension_semantics = [#tpu.dimension_semantics<parallel>], iteration_bounds = array<i64: 1>, scalar_prefetch = 0 : i64, scratch_operands = 0 : i64, tpu.core_type = #tpu.core_type<tc>, window_params = [{transform_indices = @transform_0, window_bounds = array<i64: 512, 128>}, {pipeline_mode = #tpu.pipeline_mode<synchronous>, transform_indices = @transform_1, window_bounds = array<i64: 128, 128>}, {pipeline_mode = #tpu.pipeline_mode<synchronous>, transform_indices = @transform_2, window_bounds = array<i64: 1, 128>}, {pipeline_mode = #tpu.pipeline_mode<synchronous>, transform_indices = @transform_3, window_bounds = array<i64: 1, 128>}, {transform_indices = @transform_4, window_bounds = array<i64: 512, 128>}]} {
    %c0 = arith.constant 0 : index
    %c0_0 = arith.constant 0 : index
    %0 = vector.load %arg1[%c0, %c0_0] : memref<512x128xbf16, #tpu.memory_space<vmem>>, vector<512x128xbf16>
    %c0_1 = arith.constant 0 : index
    %c0_2 = arith.constant 0 : index
    %1 = vector.load %arg2[%c0_1, %c0_2] : memref<128x128xbf16, #tpu.memory_space<vmem>>, vector<128x128xbf16>
    %cst = arith.constant dense<0.000000e+00> : vector<512x128xf32>
    %2 = tpu.matmul %0, %1, %cst {dimension_numbers = #tpu.dot_dimension_numbers<[1], [0], [0], [1], [0, 0, 1, 1], [], []>} : vector<512x128xbf16>, vector<128x128xbf16>, vector<512x128xf32> -> vector<512x128xf32>
    %c0_3 = arith.constant 0 : index
    %c0_4 = arith.constant 0 : index
    %3 = vector.load %arg3[%c0_3, %c0_4] : memref<1x128xf32, #tpu.memory_space<vmem>>, vector<1x128xf32>
    %4 = vector.broadcast %3 : vector<1x128xf32> to vector<512x128xf32>
    %5 = arith.mulf %2, %4 : vector<512x128xf32>
    %c0_5 = arith.constant 0 : index
    %c0_6 = arith.constant 0 : index
    %6 = vector.load %arg4[%c0_5, %c0_6] : memref<1x128xf32, #tpu.memory_space<vmem>>, vector<1x128xf32>
    %7 = vector.broadcast %6 : vector<1x128xf32> to vector<512x128xf32>
    %8 = arith.addf %5, %7 : vector<512x128xf32>
    %cst_7 = arith.constant 0.000000e+00 : f32
    %9 = vector.broadcast %cst_7 : f32 to vector<512x128xf32>
    %10 = arith.subf %9, %8 : vector<512x128xf32>
    %11 = math.exp %10 : vector<512x128xf32>
    %cst_8 = arith.constant 1.000000e+00 : f32
    %12 = vector.broadcast %cst_8 : f32 to vector<512x128xf32>
    %13 = arith.addf %12, %11 : vector<512x128xf32>
    %14 = tpu.reciprocal %13 {approx = true} : vector<512x128xf32> -> vector<512x128xf32>
    %15 = arith.mulf %8, %14 : vector<512x128xf32>
    %16 = arith.truncf %15 : vector<512x128xf32> to vector<512x128xbf16>
    %c0_9 = arith.constant 0 : index
    %c0_10 = arith.constant 0 : index
    %17 = vector.load %arg5[%c0_9, %c0_10] : memref<512x128xbf16, #tpu.memory_space<vmem>>, vector<512x128xbf16>
    tpu.vector_store %arg5[%c0_9, %c0_10], %16 {strides = array<i32>} : memref<512x128xbf16, #tpu.memory_space<vmem>>, vector<512x128xbf16>,
    return
  }
  func.func @transform_0(%arg0: i32) -> (i32, i32) {
    %c0_i32 = arith.constant 0 : i32
    %c0_i32_0 = arith.constant 0 : i32
    return %arg0, %c0_i32 : i32, i32
  }
  func.func @transform_1(%arg0: i32) -> (i32, i32) {
    %c0_i32 = arith.constant 0 : i32
    %c0_i32_0 = arith.constant 0 : i32
    %c0_i32_1 = arith.constant 0 : i32
    return %c0_i32, %c0_i32_0 : i32, i32
  }
  func.func @transform_2(%arg0: i32) -> (i32, i32) {
    %c0_i32 = arith.constant 0 : i32
    %c0_i32_0 = arith.constant 0 : i32
    %c0_i32_1 = arith.constant 0 : i32
    return %c0_i32, %c0_i32_0 : i32, i32
  }
  func.func @transform_3(%arg0: i32) -> (i32, i32) {
    %c0_i32 = arith.constant 0 : i32
    %c0_i32_0 = arith.constant 0 : i32
    %c0_i32_1 = arith.constant 0 : i32
    return %c0_i32, %c0_i32_0 : i32, i32
  }
  func.func @transform_4(%arg0: i32) -> (i32, i32) {
    %c0_i32 = arith.constant 0 : i32
    %c0_i32_0 = arith.constant 0 : i32
    return %arg0, %c0_i32 : i32, i32
  }
}

module attributes {stable_mosaic.version = 11 : i64} {
  func.func @_maxpool_kernel(%arg0: i32, %arg1: memref<16x2x8x256xbf16, #tpu.memory_space<vmem>>, %arg2: memref<16x8x128xbf16, #tpu.memory_space<vmem>>) attributes {dimension_semantics = [#tpu.dimension_semantics<parallel>], iteration_bounds = array<i64: 1>, scalar_prefetch = 0 : i64, scratch_operands = 0 : i64, tpu.core_type = #tpu.core_type<tc>, window_params = [{transform_indices = @transform_0, window_bounds = array<i64: 16, 2, 8, 256>}, {transform_indices = @transform_1, window_bounds = array<i64: 16, 8, 128>}]} {
    %c0 = arith.constant 0 : index
    %c0_0 = arith.constant 0 : index
    %c0_1 = arith.constant 0 : index
    %c0_2 = arith.constant 0 : index
    %0 = vector.load %arg1[%c0, %c0_0, %c0_1, %c0_2] : memref<16x2x8x256xbf16, #tpu.memory_space<vmem>>, vector<16x2x8x256xbf16>
    %1 = vector.extract_strided_slice %0 {offsets = [0, 0, 0, 0], sizes = [16, 1, 8, 256], strides = [1, 1, 1, 1]} : vector<16x2x8x256xbf16> to vector<16x1x8x256xbf16>
    %2 = vector.shape_cast %1 : vector<16x1x8x256xbf16> to vector<16x8x256xbf16>
    %3 = vector.extract_strided_slice %0 {offsets = [0, 1, 0, 0], sizes = [16, 1, 8, 256], strides = [1, 1, 1, 1]} : vector<16x2x8x256xbf16> to vector<16x1x8x256xbf16>
    %4 = vector.shape_cast %3 : vector<16x1x8x256xbf16> to vector<16x8x256xbf16>
    %5 = arith.maximumf %2, %4 : vector<16x8x256xbf16>
    %6 = vector.extract_strided_slice %5 {offsets = [0, 0, 0], sizes = [16, 8, 128], strides = [1, 1, 1]} : vector<16x8x256xbf16> to vector<16x8x128xbf16>
    %7 = vector.extract_strided_slice %5 {offsets = [0, 0, 128], sizes = [16, 8, 128], strides = [1, 1, 1]} : vector<16x8x256xbf16> to vector<16x8x128xbf16>
    %8 = arith.maximumf %6, %7 : vector<16x8x128xbf16>
    %c0_3 = arith.constant 0 : index
    %c0_4 = arith.constant 0 : index
    %c0_5 = arith.constant 0 : index
    %9 = vector.load %arg2[%c0_3, %c0_4, %c0_5] : memref<16x8x128xbf16, #tpu.memory_space<vmem>>, vector<16x8x128xbf16>
    tpu.vector_store %arg2[%c0_3, %c0_4, %c0_5], %8 {strides = array<i32>} : memref<16x8x128xbf16, #tpu.memory_space<vmem>>, vector<16x8x128xbf16>,
    return
  }
  func.func @transform_0(%arg0: i32) -> (i32, i32, i32, i32) {
    %c0_i32 = arith.constant 0 : i32
    %c0_i32_0 = arith.constant 0 : i32
    %c0_i32_1 = arith.constant 0 : i32
    %c0_i32_2 = arith.constant 0 : i32
    return %arg0, %c0_i32, %c0_i32_0, %c0_i32_1 : i32, i32, i32, i32
  }
  func.func @transform_1(%arg0: i32) -> (i32, i32, i32) {
    %c0_i32 = arith.constant 0 : i32
    %c0_i32_0 = arith.constant 0 : i32
    %c0_i32_1 = arith.constant 0 : i32
    return %arg0, %c0_i32, %c0_i32_0 : i32, i32, i32
  }
}

module attributes {stable_mosaic.version = 11 : i64} {
  func.func @_mm_stats_kernel(%arg0: i32, %arg1: memref<128x128xbf16, #tpu.memory_space<vmem>>, %arg2: memref<128x128xbf16, #tpu.memory_space<vmem>>, %arg3: memref<1x8x128xf32, #tpu.memory_space<vmem>>, %arg4: memref<1x8x128xf32, #tpu.memory_space<vmem>>) attributes {dimension_semantics = [#tpu.dimension_semantics<parallel>], iteration_bounds = array<i64: 1>, scalar_prefetch = 0 : i64, scratch_operands = 0 : i64, tpu.core_type = #tpu.core_type<tc>, window_params = [{transform_indices = @transform_0, window_bounds = array<i64: 128, 128>}, {pipeline_mode = #tpu.pipeline_mode<synchronous>, transform_indices = @transform_1, window_bounds = array<i64: 128, 128>}, {transform_indices = @transform_2, window_bounds = array<i64: 1, 8, 128>}, {transform_indices = @transform_3, window_bounds = array<i64: 1, 8, 128>}]} {
    %c0 = arith.constant 0 : index
    %c0_0 = arith.constant 0 : index
    %0 = vector.load %arg1[%c0, %c0_0] : memref<128x128xbf16, #tpu.memory_space<vmem>>, vector<128x128xbf16>
    %c0_1 = arith.constant 0 : index
    %c0_2 = arith.constant 0 : index
    %1 = vector.load %arg2[%c0_1, %c0_2] : memref<128x128xbf16, #tpu.memory_space<vmem>>, vector<128x128xbf16>
    %cst = arith.constant dense<0.000000e+00> : vector<128x128xf32>
    %2 = tpu.matmul %0, %1, %cst {dimension_numbers = #tpu.dot_dimension_numbers<[1], [0], [0], [1], [0, 0, 1, 1], [], []>} : vector<128x128xbf16>, vector<128x128xbf16>, vector<128x128xf32> -> vector<128x128xf32>
    %3 = vector.shape_cast %2 : vector<128x128xf32> to vector<16x8x128xf32>
    %cst_3 = arith.constant dense<0.000000e+00> : vector<8x128xf32>
    %4 = vector.multi_reduction <add>, %3, %cst_3 [0] : vector<16x8x128xf32> to vector<8x128xf32>
    %5 = arith.mulf %3, %3 : vector<16x8x128xf32>
    %cst_4 = arith.constant dense<0.000000e+00> : vector<8x128xf32>
    %6 = vector.multi_reduction <add>, %5, %cst_4 [0] : vector<16x8x128xf32> to vector<8x128xf32>
    %7 = vector.shape_cast %4 : vector<8x128xf32> to vector<1x8x128xf32>
    %c0_5 = arith.constant 0 : index
    %c0_6 = arith.constant 0 : index
    %c0_7 = arith.constant 0 : index
    %8 = vector.load %arg3[%c0_5, %c0_6, %c0_7] : memref<1x8x128xf32, #tpu.memory_space<vmem>>, vector<1x8x128xf32>
    tpu.vector_store %arg3[%c0_5, %c0_6, %c0_7], %7 {strides = array<i32>} : memref<1x8x128xf32, #tpu.memory_space<vmem>>, vector<1x8x128xf32>,
    %9 = vector.shape_cast %6 : vector<8x128xf32> to vector<1x8x128xf32>
    %c0_8 = arith.constant 0 : index
    %c0_9 = arith.constant 0 : index
    %c0_10 = arith.constant 0 : index
    %10 = vector.load %arg4[%c0_8, %c0_9, %c0_10] : memref<1x8x128xf32, #tpu.memory_space<vmem>>, vector<1x8x128xf32>
    tpu.vector_store %arg4[%c0_8, %c0_9, %c0_10], %9 {strides = array<i32>} : memref<1x8x128xf32, #tpu.memory_space<vmem>>, vector<1x8x128xf32>,
    return
  }
  func.func @transform_0(%arg0: i32) -> (i32, i32) {
    %c0_i32 = arith.constant 0 : i32
    %c0_i32_0 = arith.constant 0 : i32
    return %arg0, %c0_i32 : i32, i32
  }
  func.func @transform_1(%arg0: i32) -> (i32, i32) {
    %c0_i32 = arith.constant 0 : i32
    %c0_i32_0 = arith.constant 0 : i32
    %c0_i32_1 = arith.constant 0 : i32
    return %c0_i32, %c0_i32_0 : i32, i32
  }
  func.func @transform_2(%arg0: i32) -> (i32, i32, i32) {
    %c0_i32 = arith.constant 0 : i32
    %c0_i32_0 = arith.constant 0 : i32
    %c0_i32_1 = arith.constant 0 : i32
    return %arg0, %c0_i32, %c0_i32_0 : i32, i32, i32
  }
  func.func @transform_3(%arg0: i32) -> (i32, i32, i32) {
    %c0_i32 = arith.constant 0 : i32
    %c0_i32_0 = arith.constant 0 : i32
    %c0_i32_1 = arith.constant 0 : i32
    return %arg0, %c0_i32, %c0_i32_0 : i32, i32, i32
  }
}

module attributes {stable_mosaic.version = 11 : i64} {
  func.func @_mm_bn_silu_kernel(%arg0: i32, %arg1: memref<128x128xbf16, #tpu.memory_space<vmem>>, %arg2: memref<128x128xbf16, #tpu.memory_space<vmem>>, %arg3: memref<1x128xf32, #tpu.memory_space<vmem>>, %arg4: memref<1x128xf32, #tpu.memory_space<vmem>>, %arg5: memref<128x128xf32, #tpu.memory_space<vmem>>) attributes {dimension_semantics = [#tpu.dimension_semantics<parallel>], iteration_bounds = array<i64: 1>, scalar_prefetch = 0 : i64, scratch_operands = 0 : i64, tpu.core_type = #tpu.core_type<tc>, window_params = [{transform_indices = @transform_0, window_bounds = array<i64: 128, 128>}, {pipeline_mode = #tpu.pipeline_mode<synchronous>, transform_indices = @transform_1, window_bounds = array<i64: 128, 128>}, {pipeline_mode = #tpu.pipeline_mode<synchronous>, transform_indices = @transform_2, window_bounds = array<i64: 1, 128>}, {pipeline_mode = #tpu.pipeline_mode<synchronous>, transform_indices = @transform_3, window_bounds = array<i64: 1, 128>}, {transform_indices = @transform_4, window_bounds = array<i64: 128, 128>}]} {
    %c0 = arith.constant 0 : index
    %c0_0 = arith.constant 0 : index
    %0 = vector.load %arg1[%c0, %c0_0] : memref<128x128xbf16, #tpu.memory_space<vmem>>, vector<128x128xbf16>
    %c0_1 = arith.constant 0 : index
    %c0_2 = arith.constant 0 : index
    %1 = vector.load %arg2[%c0_1, %c0_2] : memref<128x128xbf16, #tpu.memory_space<vmem>>, vector<128x128xbf16>
    %cst = arith.constant dense<0.000000e+00> : vector<128x128xf32>
    %2 = tpu.matmul %0, %1, %cst {dimension_numbers = #tpu.dot_dimension_numbers<[1], [0], [0], [1], [0, 0, 1, 1], [], []>} : vector<128x128xbf16>, vector<128x128xbf16>, vector<128x128xf32> -> vector<128x128xf32>
    %c0_3 = arith.constant 0 : index
    %c0_4 = arith.constant 0 : index
    %3 = vector.load %arg3[%c0_3, %c0_4] : memref<1x128xf32, #tpu.memory_space<vmem>>, vector<1x128xf32>
    %4 = vector.broadcast %3 : vector<1x128xf32> to vector<128x128xf32>
    %5 = arith.mulf %2, %4 : vector<128x128xf32>
    %c0_5 = arith.constant 0 : index
    %c0_6 = arith.constant 0 : index
    %6 = vector.load %arg4[%c0_5, %c0_6] : memref<1x128xf32, #tpu.memory_space<vmem>>, vector<1x128xf32>
    %7 = vector.broadcast %6 : vector<1x128xf32> to vector<128x128xf32>
    %8 = arith.addf %5, %7 : vector<128x128xf32>
    %cst_7 = arith.constant 0.000000e+00 : f32
    %9 = vector.broadcast %cst_7 : f32 to vector<128x128xf32>
    %10 = arith.subf %9, %8 : vector<128x128xf32>
    %11 = math.exp %10 : vector<128x128xf32>
    %cst_8 = arith.constant 1.000000e+00 : f32
    %12 = vector.broadcast %cst_8 : f32 to vector<128x128xf32>
    %13 = arith.addf %12, %11 : vector<128x128xf32>
    %14 = tpu.reciprocal %13 {approx = true} : vector<128x128xf32> -> vector<128x128xf32>
    %15 = arith.mulf %8, %14 : vector<128x128xf32>
    %c0_9 = arith.constant 0 : index
    %c0_10 = arith.constant 0 : index
    %16 = vector.load %arg5[%c0_9, %c0_10] : memref<128x128xf32, #tpu.memory_space<vmem>>, vector<128x128xf32>
    tpu.vector_store %arg5[%c0_9, %c0_10], %15 {strides = array<i32>} : memref<128x128xf32, #tpu.memory_space<vmem>>, vector<128x128xf32>,
    return
  }
  func.func @transform_0(%arg0: i32) -> (i32, i32) {
    %c0_i32 = arith.constant 0 : i32
    %c0_i32_0 = arith.constant 0 : i32
    return %arg0, %c0_i32 : i32, i32
  }
  func.func @transform_1(%arg0: i32) -> (i32, i32) {
    %c0_i32 = arith.constant 0 : i32
    %c0_i32_0 = arith.constant 0 : i32
    %c0_i32_1 = arith.constant 0 : i32
    return %c0_i32, %c0_i32_0 : i32, i32
  }
  func.func @transform_2(%arg0: i32) -> (i32, i32) {
    %c0_i32 = arith.constant 0 : i32
    %c0_i32_0 = arith.constant 0 : i32
    %c0_i32_1 = arith.constant 0 : i32
    return %c0_i32, %c0_i32_0 : i32, i32
  }
  func.func @transform_3(%arg0: i32) -> (i32, i32) {
    %c0_i32 = arith.constant 0 : i32
    %c0_i32_0 = arith.constant 0 : i32
    %c0_i32_1 = arith.constant 0 : i32
    return %c0_i32, %c0_i32_0 : i32, i32
  }
  func.func @transform_4(%arg0: i32) -> (i32, i32) {
    %c0_i32 = arith.constant 0 : i32
    %c0_i32_0 = arith.constant 0 : i32
    return %arg0, %c0_i32 : i32, i32
  }
}

module attributes {stable_mosaic.version = 11 : i64} {
  func.func @_c3_conv_stats_kernel(%arg0: i32, %arg1: i32, %arg2: memref<1x8x2x9x256xbf16, #tpu.memory_space<vmem>>, %arg3: memref<1x1x1x9x256xbf16, #tpu.memory_space<vmem>>, %arg4: memref<1152x128xbf16, #tpu.memory_space<vmem>>, %arg5: memref<1x8x8x128xbf16, #tpu.memory_space<vmem>>, %arg6: memref<1x1x8x128xf32, #tpu.memory_space<vmem>>, %arg7: memref<1x1x8x128xf32, #tpu.memory_space<vmem>>) attributes {dimension_semantics = [#tpu.dimension_semantics<parallel>, #tpu.dimension_semantics<parallel>], iteration_bounds = array<i64: 2, 1>, scalar_prefetch = 0 : i64, scratch_operands = 0 : i64, tpu.core_type = #tpu.core_type<tc>, window_params = [{transform_indices = @transform_0, window_bounds = array<i64: 1, 8, 2, 9, 256>}, {transform_indices = @transform_1, window_bounds = array<i64: 1, 1, 1, 9, 256>}, {pipeline_mode = #tpu.pipeline_mode<synchronous>, transform_indices = @transform_2, window_bounds = array<i64: 1152, 128>}, {transform_indices = @transform_3, window_bounds = array<i64: 1, 8, 8, 128>}, {transform_indices = @transform_4, window_bounds = array<i64: 1, 1, 8, 128>}, {transform_indices = @transform_5, window_bounds = array<i64: 1, 1, 8, 128>}]} {
    %c0 = arith.constant 0 : index
    %c0_0 = arith.constant 0 : index
    %c0_1 = arith.constant 0 : index
    %c0_2 = arith.constant 0 : index
    %c0_3 = arith.constant 0 : index
    %0 = vector.load %arg2[%c0, %c0_0, %c0_1, %c0_2, %c0_3] : memref<1x8x2x9x256xbf16, #tpu.memory_space<vmem>>, vector<1x8x2x9x256xbf16>
    %c0_4 = arith.constant 0 : index
    %c0_5 = arith.constant 0 : index
    %c0_6 = arith.constant 0 : index
    %c0_7 = arith.constant 0 : index
    %c0_8 = arith.constant 0 : index
    %1 = vector.load %arg3[%c0_4, %c0_5, %c0_6, %c0_7, %c0_8] : memref<1x1x1x9x256xbf16, #tpu.memory_space<vmem>>, vector<1x1x1x9x256xbf16>
    %2 = vector.shape_cast %1 : vector<1x1x1x9x256xbf16> to vector<1x9x256xbf16>
    %3 = vector.extract_strided_slice %0 {offsets = [0, 0, 0, 0, 0], sizes = [1, 8, 1, 9, 256], strides = [1, 1, 1, 1, 1]} : vector<1x8x2x9x256xbf16> to vector<1x8x1x9x256xbf16>
    %4 = vector.shape_cast %3 : vector<1x8x1x9x256xbf16> to vector<8x9x256xbf16>
    %5 = vector.extract_strided_slice %0 {offsets = [0, 0, 1, 0, 0], sizes = [1, 8, 1, 9, 256], strides = [1, 1, 1, 1, 1]} : vector<1x8x2x9x256xbf16> to vector<1x8x1x9x256xbf16>
    %6 = vector.shape_cast %5 : vector<1x8x1x9x256xbf16> to vector<8x9x256xbf16>
    %7 = vector.extract_strided_slice %0 {offsets = [0, 1, 0, 0, 0], sizes = [1, 7, 1, 9, 256], strides = [1, 1, 1, 1, 1]} : vector<1x8x2x9x256xbf16> to vector<1x7x1x9x256xbf16>
    %8 = vector.shape_cast %7 : vector<1x7x1x9x256xbf16> to vector<7x9x256xbf16>
    %9 = tpu.concatenate %8, %2 in 0 : vector<7x9x256xbf16>, vector<1x9x256xbf16> -> vector<8x9x256xbf16>
    %cst = arith.constant 0.000000e+00 : f32
    %10 = vector.broadcast %cst : f32 to vector<64x128xf32>
    %11 = vector.extract_strided_slice %4 {offsets = [0, 0, 0], sizes = [8, 8, 256], strides = [1, 1, 1]} : vector<8x9x256xbf16> to vector<8x8x256xbf16>
    %12 = vector.shape_cast %11 : vector<8x8x256xbf16> to vector<64x256xbf16>
    %c0_9 = arith.constant 0 : index
    %c0_10 = arith.constant 0 : index
    %13 = vector.load %arg4[%c0_9, %c0_10] : memref<1152x128xbf16, #tpu.memory_space<vmem>>, vector<256x128xbf16>
    %cst_11 = arith.constant dense<0.000000e+00> : vector<64x128xf32>
    %14 = tpu.matmul %12, %13, %cst_11 {dimension_numbers = #tpu.dot_dimension_numbers<[1], [0], [0], [1], [0, 0, 1, 1], [], []>} : vector<64x256xbf16>, vector<256x128xbf16>, vector<64x128xf32> -> vector<64x128xf32>
    %15 = arith.addf %10, %14 : vector<64x128xf32>
    %16 = vector.extract_strided_slice %4 {offsets = [0, 1, 0], sizes = [8, 8, 128], strides = [1, 1, 1]} : vector<8x9x256xbf16> to vector<8x8x128xbf16>
    %17 = vector.shape_cast %16 : vector<8x8x128xbf16> to vector<64x128xbf16>
    %c256 = arith.constant 256 : index
    %c0_12 = arith.constant 0 : index
    %18 = vector.load %arg4[%c256, %c0_12] : memref<1152x128xbf16, #tpu.memory_space<vmem>>, vector<128x128xbf16>
    %cst_13 = arith.constant dense<0.000000e+00> : vector<64x128xf32>
    %19 = tpu.matmul %17, %18, %cst_13 {dimension_numbers = #tpu.dot_dimension_numbers<[1], [0], [0], [1], [0, 0, 1, 1], [], []>} : vector<64x128xbf16>, vector<128x128xbf16>, vector<64x128xf32> -> vector<64x128xf32>
    %20 = arith.addf %15, %19 : vector<64x128xf32>
    %21 = vector.extract_strided_slice %6 {offsets = [0, 0, 0], sizes = [8, 8, 256], strides = [1, 1, 1]} : vector<8x9x256xbf16> to vector<8x8x256xbf16>
    %22 = vector.shape_cast %21 : vector<8x8x256xbf16> to vector<64x256xbf16>
    %c384 = arith.constant 384 : index
    %c0_14 = arith.constant 0 : index
    %23 = vector.load %arg4[%c384, %c0_14] : memref<1152x128xbf16, #tpu.memory_space<vmem>>, vector<256x128xbf16>
    %cst_15 = arith.constant dense<0.000000e+00> : vector<64x128xf32>
    %24 = tpu.matmul %22, %23, %cst_15 {dimension_numbers = #tpu.dot_dimension_numbers<[1], [0], [0], [1], [0, 0, 1, 1], [], []>} : vector<64x256xbf16>, vector<256x128xbf16>, vector<64x128xf32> -> vector<64x128xf32>
    %25 = arith.addf %20, %24 : vector<64x128xf32>
    %26 = vector.extract_strided_slice %6 {offsets = [0, 1, 0], sizes = [8, 8, 128], strides = [1, 1, 1]} : vector<8x9x256xbf16> to vector<8x8x128xbf16>
    %27 = vector.shape_cast %26 : vector<8x8x128xbf16> to vector<64x128xbf16>
    %c640 = arith.constant 640 : index
    %c0_16 = arith.constant 0 : index
    %28 = vector.load %arg4[%c640, %c0_16] : memref<1152x128xbf16, #tpu.memory_space<vmem>>, vector<128x128xbf16>
    %cst_17 = arith.constant dense<0.000000e+00> : vector<64x128xf32>
    %29 = tpu.matmul %27, %28, %cst_17 {dimension_numbers = #tpu.dot_dimension_numbers<[1], [0], [0], [1], [0, 0, 1, 1], [], []>} : vector<64x128xbf16>, vector<128x128xbf16>, vector<64x128xf32> -> vector<64x128xf32>
    %30 = arith.addf %25, %29 : vector<64x128xf32>
    %31 = vector.extract_strided_slice %9 {offsets = [0, 0, 0], sizes = [8, 8, 256], strides = [1, 1, 1]} : vector<8x9x256xbf16> to vector<8x8x256xbf16>
    %32 = vector.shape_cast %31 : vector<8x8x256xbf16> to vector<64x256xbf16>
    %c768 = arith.constant 768 : index
    %c0_18 = arith.constant 0 : index
    %33 = vector.load %arg4[%c768, %c0_18] : memref<1152x128xbf16, #tpu.memory_space<vmem>>, vector<256x128xbf16>
    %cst_19 = arith.constant dense<0.000000e+00> : vector<64x128xf32>
    %34 = tpu.matmul %32, %33, %cst_19 {dimension_numbers = #tpu.dot_dimension_numbers<[1], [0], [0], [1], [0, 0, 1, 1], [], []>} : vector<64x256xbf16>, vector<256x128xbf16>, vector<64x128xf32> -> vector<64x128xf32>
    %35 = arith.addf %30, %34 : vector<64x128xf32>
    %36 = vector.extract_strided_slice %9 {offsets = [0, 1, 0], sizes = [8, 8, 128], strides = [1, 1, 1]} : vector<8x9x256xbf16> to vector<8x8x128xbf16>
    %37 = vector.shape_cast %36 : vector<8x8x128xbf16> to vector<64x128xbf16>
    %c1024 = arith.constant 1024 : index
    %c0_20 = arith.constant 0 : index
    %38 = vector.load %arg4[%c1024, %c0_20] : memref<1152x128xbf16, #tpu.memory_space<vmem>>, vector<128x128xbf16>
    %cst_21 = arith.constant dense<0.000000e+00> : vector<64x128xf32>
    %39 = tpu.matmul %37, %38, %cst_21 {dimension_numbers = #tpu.dot_dimension_numbers<[1], [0], [0], [1], [0, 0, 1, 1], [], []>} : vector<64x128xbf16>, vector<128x128xbf16>, vector<64x128xf32> -> vector<64x128xf32>
    %40 = arith.addf %35, %39 : vector<64x128xf32>
    %41 = vector.shape_cast %40 : vector<64x128xf32> to vector<1x8x8x128xf32>
    %42 = arith.truncf %41 : vector<1x8x8x128xf32> to vector<1x8x8x128xbf16>
    %c0_22 = arith.constant 0 : index
    %c0_23 = arith.constant 0 : index
    %c0_24 = arith.constant 0 : index
    %c0_25 = arith.constant 0 : index
    %43 = vector.load %arg5[%c0_22, %c0_23, %c0_24, %c0_25] : memref<1x8x8x128xbf16, #tpu.memory_space<vmem>>, vector<1x8x8x128xbf16>
    tpu.vector_store %arg5[%c0_22, %c0_23, %c0_24, %c0_25], %42 {strides = array<i32>} : memref<1x8x8x128xbf16, #tpu.memory_space<vmem>>, vector<1x8x8x128xbf16>,
    %44 = vector.shape_cast %40 : vector<64x128xf32> to vector<8x8x128xf32>
    %cst_26 = arith.constant dense<0.000000e+00> : vector<8x128xf32>
    %45 = vector.multi_reduction <add>, %44, %cst_26 [0] : vector<8x8x128xf32> to vector<8x128xf32>
    %46 = arith.mulf %44, %44 : vector<8x8x128xf32>
    %cst_27 = arith.constant dense<0.000000e+00> : vector<8x128xf32>
    %47 = vector.multi_reduction <add>, %46, %cst_27 [0] : vector<8x8x128xf32> to vector<8x128xf32>
    %48 = vector.shape_cast %45 : vector<8x128xf32> to vector<1x1x8x128xf32>
    %c0_28 = arith.constant 0 : index
    %c0_29 = arith.constant 0 : index
    %c0_30 = arith.constant 0 : index
    %c0_31 = arith.constant 0 : index
    %49 = vector.load %arg6[%c0_28, %c0_29, %c0_30, %c0_31] : memref<1x1x8x128xf32, #tpu.memory_space<vmem>>, vector<1x1x8x128xf32>
    tpu.vector_store %arg6[%c0_28, %c0_29, %c0_30, %c0_31], %48 {strides = array<i32>} : memref<1x1x8x128xf32, #tpu.memory_space<vmem>>, vector<1x1x8x128xf32>,
    %50 = vector.shape_cast %47 : vector<8x128xf32> to vector<1x1x8x128xf32>
    %c0_32 = arith.constant 0 : index
    %c0_33 = arith.constant 0 : index
    %c0_34 = arith.constant 0 : index
    %c0_35 = arith.constant 0 : index
    %51 = vector.load %arg7[%c0_32, %c0_33, %c0_34, %c0_35] : memref<1x1x8x128xf32, #tpu.memory_space<vmem>>, vector<1x1x8x128xf32>
    tpu.vector_store %arg7[%c0_32, %c0_33, %c0_34, %c0_35], %50 {strides = array<i32>} : memref<1x1x8x128xf32, #tpu.memory_space<vmem>>, vector<1x1x8x128xf32>,
    return
  }
  func.func @transform_0(%arg0: i32, %arg1: i32) -> (i32, i32, i32, i32, i32) {
    %c0_i32 = arith.constant 0 : i32
    %c0_i32_0 = arith.constant 0 : i32
    %c0_i32_1 = arith.constant 0 : i32
    %c0_i32_2 = arith.constant 0 : i32
    return %arg0, %arg1, %c0_i32, %c0_i32_0, %c0_i32_1 : i32, i32, i32, i32, i32
  }
  func.func @transform_1(%arg0: i32, %arg1: i32) -> (i32, i32, i32, i32, i32) {
    %c1_i32 = arith.constant 1 : i32
    %0 = arith.addi %arg1, %c1_i32 : i32
    %c8_i32 = arith.constant 8 : i32
    %1 = arith.muli %0, %c8_i32 : i32
    %c0_i32 = arith.constant 0 : i32
    %c0_i32_0 = arith.constant 0 : i32
    %c0_i32_1 = arith.constant 0 : i32
    %c0_i32_2 = arith.constant 0 : i32
    return %arg0, %1, %c0_i32, %c0_i32_0, %c0_i32_1 : i32, i32, i32, i32, i32
  }
  func.func @transform_2(%arg0: i32, %arg1: i32) -> (i32, i32) {
    %c0_i32 = arith.constant 0 : i32
    %c0_i32_0 = arith.constant 0 : i32
    %c0_i32_1 = arith.constant 0 : i32
    return %c0_i32, %c0_i32_0 : i32, i32
  }
  func.func @transform_3(%arg0: i32, %arg1: i32) -> (i32, i32, i32, i32) {
    %c0_i32 = arith.constant 0 : i32
    %c0_i32_0 = arith.constant 0 : i32
    %c0_i32_1 = arith.constant 0 : i32
    return %arg0, %arg1, %c0_i32, %c0_i32_0 : i32, i32, i32, i32
  }
  func.func @transform_4(%arg0: i32, %arg1: i32) -> (i32, i32, i32, i32) {
    %c0_i32 = arith.constant 0 : i32
    %c0_i32_0 = arith.constant 0 : i32
    %c0_i32_1 = arith.constant 0 : i32
    return %arg0, %arg1, %c0_i32, %c0_i32_0 : i32, i32, i32, i32
  }
  func.func @transform_5(%arg0: i32, %arg1: i32) -> (i32, i32, i32, i32) {
    %c0_i32 = arith.constant 0 : i32
    %c0_i32_0 = arith.constant 0 : i32
    %c0_i32_1 = arith.constant 0 : i32
    return %arg0, %arg1, %c0_i32, %c0_i32_0 : i32, i32, i32, i32
  }
}

module attributes {stable_mosaic.version = 11 : i64} {
  func.func @_bn_silu_kernel(%arg0: i32, %arg1: memref<128x128xbf16, #tpu.memory_space<vmem>>, %arg2: memref<1x128xf32, #tpu.memory_space<vmem>>, %arg3: memref<1x128xf32, #tpu.memory_space<vmem>>, %arg4: memref<128x128xf32, #tpu.memory_space<vmem>>) attributes {dimension_semantics = [#tpu.dimension_semantics<parallel>], iteration_bounds = array<i64: 1>, scalar_prefetch = 0 : i64, scratch_operands = 0 : i64, tpu.core_type = #tpu.core_type<tc>, window_params = [{transform_indices = @transform_0, window_bounds = array<i64: 128, 128>}, {pipeline_mode = #tpu.pipeline_mode<synchronous>, transform_indices = @transform_1, window_bounds = array<i64: 1, 128>}, {pipeline_mode = #tpu.pipeline_mode<synchronous>, transform_indices = @transform_2, window_bounds = array<i64: 1, 128>}, {transform_indices = @transform_3, window_bounds = array<i64: 128, 128>}]} {
    %c0 = arith.constant 0 : index
    %c0_0 = arith.constant 0 : index
    %0 = vector.load %arg1[%c0, %c0_0] : memref<128x128xbf16, #tpu.memory_space<vmem>>, vector<128x128xbf16>
    %1 = arith.extf %0 : vector<128x128xbf16> to vector<128x128xf32>
    %c0_1 = arith.constant 0 : index
    %c0_2 = arith.constant 0 : index
    %2 = vector.load %arg2[%c0_1, %c0_2] : memref<1x128xf32, #tpu.memory_space<vmem>>, vector<1x128xf32>
    %3 = vector.broadcast %2 : vector<1x128xf32> to vector<128x128xf32>
    %4 = arith.mulf %1, %3 : vector<128x128xf32>
    %c0_3 = arith.constant 0 : index
    %c0_4 = arith.constant 0 : index
    %5 = vector.load %arg3[%c0_3, %c0_4] : memref<1x128xf32, #tpu.memory_space<vmem>>, vector<1x128xf32>
    %6 = vector.broadcast %5 : vector<1x128xf32> to vector<128x128xf32>
    %7 = arith.addf %4, %6 : vector<128x128xf32>
    %cst = arith.constant 0.000000e+00 : f32
    %8 = vector.broadcast %cst : f32 to vector<128x128xf32>
    %9 = arith.subf %8, %7 : vector<128x128xf32>
    %10 = math.exp %9 : vector<128x128xf32>
    %cst_5 = arith.constant 1.000000e+00 : f32
    %11 = vector.broadcast %cst_5 : f32 to vector<128x128xf32>
    %12 = arith.addf %11, %10 : vector<128x128xf32>
    %13 = tpu.reciprocal %12 {approx = true} : vector<128x128xf32> -> vector<128x128xf32>
    %14 = arith.mulf %7, %13 : vector<128x128xf32>
    %c0_6 = arith.constant 0 : index
    %c0_7 = arith.constant 0 : index
    %15 = vector.load %arg4[%c0_6, %c0_7] : memref<128x128xf32, #tpu.memory_space<vmem>>, vector<128x128xf32>
    tpu.vector_store %arg4[%c0_6, %c0_7], %14 {strides = array<i32>} : memref<128x128xf32, #tpu.memory_space<vmem>>, vector<128x128xf32>,
    return
  }
  func.func @transform_0(%arg0: i32) -> (i32, i32) {
    %c0_i32 = arith.constant 0 : i32
    %c0_i32_0 = arith.constant 0 : i32
    return %arg0, %c0_i32 : i32, i32
  }
  func.func @transform_1(%arg0: i32) -> (i32, i32) {
    %c0_i32 = arith.constant 0 : i32
    %c0_i32_0 = arith.constant 0 : i32
    %c0_i32_1 = arith.constant 0 : i32
    return %c0_i32, %c0_i32_0 : i32, i32
  }
  func.func @transform_2(%arg0: i32) -> (i32, i32) {
    %c0_i32 = arith.constant 0 : i32
    %c0_i32_0 = arith.constant 0 : i32
    %c0_i32_1 = arith.constant 0 : i32
    return %c0_i32, %c0_i32_0 : i32, i32
  }
  func.func @transform_3(%arg0: i32) -> (i32, i32) {
    %c0_i32 = arith.constant 0 : i32
    %c0_i32_0 = arith.constant 0 : i32
    return %arg0, %c0_i32 : i32, i32
  }
}

</mosaic_0001>

<bundles_post_ra>
// kernel: mp_forward.10
= control target key start
LH: loop header
LB: loop body
LE: loop exit
PB: predicated region body
PF: predicated region fallthrough
CT: control target
= control target key end

     0   :  { %s1345_s1 = inlined_call_operand.vmem [shape: bf16[128,128], index: 1, kind: input, shape index: {}]   ;;  %s1346_s0 = inlined_call_operand.vmem [shape: bf16[512,128], index: 0, kind: input, shape index: {}]   ;;  %s1347_s2 = inlined_call_operand.vmem [shape: f32[1,8,128], index: 2, kind: output, shape index: {0}]   ;;  %s1348_s3 = inlined_call_operand.vmem [shape: f32[1,8,128], index: 3, kind: output, shape index: {1}]  }
   0x1   :  { %v999_v0 = vld [vmem:[%s1345_s1] sm:$0xff]   ;;  %v1000_v1 = vld [vmem:[%s1345_s1 + $0x8] sm:$0xff]   ;;  %v1001_v2 = vld [vmem:[%s1345_s1 + $0x10] sm:$0xff]  }
   0x2   :  { %903 = vmatprep.subr.bf16.mxu0 %v999_v0  ;;  %983 = vmatprep.subr.bf16.mxu1 %v999_v0  ;;  %v1002_v3 = vld [vmem:[%s1345_s1 + $0x18] sm:$0xff]   ;;  %v1007_v4 = vld [vmem:[%s1346_s0] sm:$0xff]   ;;  %v1004_v6 = vld [vmem:[%s1345_s1 + $0x28] sm:$0xff]  }
   0x3   :  { %904 = vmatpush3.bf16.msra.mxu0 %v999_v0  ;;  %991 = vmatpush3.bf16.msra.mxu1 %v999_v0  ;;  %v1003_v5 = vld [vmem:[%s1345_s1 + $0x20] sm:$0xff]   ;;  %v1005_v7 = vld [vmem:[%s1345_s1 + $0x30] sm:$0xff]   ;;  %v1006_v8 = vld [vmem:[%s1345_s1 + $0x38] sm:$0xff]  }
   0x4   :  { %905 = vmatprep.subr.bf16.mxu0 %v1000_v1  ;;  %984 = vmatprep.subr.bf16.mxu1 %v1000_v1  ;;  %v1023_v9 = vld [vmem:[%s1346_s0 + $0x80] sm:$0xff]   ;;  %v1008_v10 = vld [vmem:[%s1346_s0 + $0x8] sm:$0xff]   ;;  %v1009_v11 = vld [vmem:[%s1346_s0 + $0x10] sm:$0xff]  }
   0x5   :  { %919 = vmatprep.mubr.bf16.mxu0 %v1007_v4  ;;  %951 = vmatprep.mubr.bf16.mxu1 %v1023_v9  ;;  %v1024_v12 = vld [vmem:[%s1346_s0 + $0x88] sm:$0xff]   ;;  %v1025_v13 = vld [vmem:[%s1346_s0 + $0x90] sm:$0xff]   ;;  %v1010_v14 = vld [vmem:[%s1346_s0 + $0x18] sm:$0xff]  }
   0x6   :  { %v1011_v15 = vld [vmem:[%s1346_s0 + $0x20] sm:$0xff]   ;;  %v1026_v16 = vld [vmem:[%s1346_s0 + $0x98] sm:$0xff]   ;;  %v1012_v18 = vld [vmem:[%s1346_s0 + $0x28] sm:$0xff]  }
   0x7   :  { %906 = vmatpush3.bf16.msra.mxu0 %v1000_v1  ;;  %992 = vmatpush3.bf16.msra.mxu1 %v1000_v1  ;;  %v1027_v17 = vld [vmem:[%s1346_s0 + $0xa0] sm:$0xff]   ;;  %v1028_v19 = vld [vmem:[%s1346_s0 + $0xa8] sm:$0xff]   ;;  %v1013_v20 = vld [vmem:[%s1346_s0 + $0x30] sm:$0xff]  }
   0x8   :  { %907 = vmatprep.subr.bf16.mxu0 %v1001_v2  ;;  %985 = vmatprep.subr.bf16.mxu1 %v1001_v2  ;;  %v1029_v21 = vld [vmem:[%s1346_s0 + $0xb0] sm:$0xff]   ;;  %v1014_v22 = vld [vmem:[%s1346_s0 + $0x38] sm:$0xff]   ;;  %v1015_v24 = vld [vmem:[%s1346_s0 + $0x40] sm:$0xff]  }
   0x9   :  { %v1030_v23 = vld [vmem:[%s1346_s0 + $0xb8] sm:$0xff]   ;;  %v1031_v25 = vld [vmem:[%s1346_s0 + $0xc0] sm:$0xff]   ;;  %v1016_v26 = vld [vmem:[%s1346_s0 + $0x48] sm:$0xff]  }
   0xa   :  { %v1032_v27 = vld [vmem:[%s1346_s0 + $0xc8] sm:$0xff]   ;;  %v1017_v28 = vld [vmem:[%s1346_s0 + $0x50] sm:$0xff]   ;;  %v1018_v30 = vld [vmem:[%s1346_s0 + $0x58] sm:$0xff]  }
   0xb   :  { %908 = vmatpush3.bf16.msra.mxu0 %v1001_v2  ;;  %993 = vmatpush3.bf16.msra.mxu1 %v1001_v2  ;;  %v1033_v29 = vld [vmem:[%s1346_s0 + $0xd0] sm:$0xff]   ;;  %v1034_v31 = vld [vmem:[%s1346_s0 + $0xd8] sm:$0xff]   ;;  %v1019_v32 = vld [vmem:[%s1346_s0 + $0x60] sm:$0xff]  }
   0xc   :  { %909 = vmatprep.subr.bf16.mxu0 %v1002_v3  ;;  %986 = vmatprep.subr.bf16.mxu1 %v1002_v3  ;;  %v1035_v33 = vld [vmem:[%s1346_s0 + $0xe0] sm:$0xff]   ;;  %v1020_v34 = vld [vmem:[%s1346_s0 + $0x68] sm:$0xff]   ;;  %v1021_v36 = vld [vmem:[%s1346_s0 + $0x70] sm:$0xff]  }
   0xd   :  { %v1036_v35 = vld [vmem:[%s1346_s0 + $0xe8] sm:$0xff]   ;;  %v1037_v37 = vld [vmem:[%s1346_s0 + $0xf0] sm:$0xff]   ;;  %v1022_v38 = vld [vmem:[%s1346_s0 + $0x78] sm:$0xff]  }
   0xe   :  { %v1038_v39 = vld [vmem:[%s1346_s0 + $0xf8] sm:$0xff]  }
   0xf   :  { %910 = vmatpush3.bf16.msra.mxu0 %v1002_v3  ;;  %994 = vmatpush3.bf16.msra.mxu1 %v1002_v3 }
  0x10   :  { %911 = vmatprep.subr.bf16.mxu0 %v1003_v5  ;;  %987 = vmatprep.subr.bf16.mxu1 %v1003_v5 }
  0x13   :  { %912 = vmatpush3.bf16.msra.mxu0 %v1003_v5  ;;  %995 = vmatpush3.bf16.msra.mxu1 %v1003_v5 }
  0x14   :  { %913 = vmatprep.subr.bf16.mxu0 %v1004_v6  ;;  %988 = vmatprep.subr.bf16.mxu1 %v1004_v6 }
  0x17   :  { %914 = vmatpush3.bf16.msra.mxu0 %v1004_v6  ;;  %996 = vmatpush3.bf16.msra.mxu1 %v1004_v6 }
  0x18   :  { %915 = vmatprep.subr.bf16.mxu0 %v1005_v7  ;;  %989 = vmatprep.subr.bf16.mxu1 %v1005_v7 }
  0x1b   :  { %916 = vmatpush3.bf16.msra.mxu0 %v1005_v7  ;;  %997 = vmatpush3.bf16.msra.mxu1 %v1005_v7 }
  0x1c   :  { %917 = vmatprep.subr.bf16.mxu0 %v1006_v8  ;;  %990 = vmatprep.subr.bf16.mxu1 %v1006_v8 }
  0x1f   :  { %918 = vmatpush3.bf16.msra.mxu0 %v1006_v8  ;;  %998 = vmatpush3.bf16.msra.mxu1 %v1006_v8 }
  0x22   :  { %920 = vmatmul.mubr.bf16.vlgmr.msra.gmra.mrb[0].mxu0 %v1008_v10  ;;  %952 = vmatmul.mubr.bf16.vlgmr.msra.gmra.mrb[0].mxu1 %v1024_v12 }
  0x23   :  { %923 = vmatprep.mubr.bf16.mxu0 %v1009_v11  ;;  %955 = vmatprep.mubr.bf16.mxu1 %v1025_v13 }
  0x2a   :  { %924 = vmatmul.mubr.bf16.gmra.mrb[4].mxu0 %v1010_v14  ;;  %956 = vmatmul.mubr.bf16.gmra.mrb[4].mxu1 %v1026_v16 }
  0x2b   :  { %927 = vmatprep.mubr.bf16.mxu0 %v1011_v15  ;;  %959 = vmatprep.mubr.bf16.mxu1 %v1027_v17 }
  0x32   :  { %928 = vmatmul.mubr.bf16.gmra.mrb[8].mxu0 %v1012_v18  ;;  %960 = vmatmul.mubr.bf16.gmra.mrb[8].mxu1 %v1028_v19 }
  0x33   :  { %931 = vmatprep.mubr.bf16.mxu0 %v1013_v20  ;;  %963 = vmatprep.mubr.bf16.mxu1 %v1029_v21 }
  0x3a   :  { %932 = vmatmul.mubr.bf16.gmra.mrb[12].mxu0 %v1014_v22  ;;  %964 = vmatmul.mubr.bf16.gmra.mrb[12].mxu1 %v1030_v23 }
  0x3b   :  { %935 = vmatprep.mubr.bf16.mxu0 %v1015_v24  ;;  %967 = vmatprep.mubr.bf16.mxu1 %v1031_v25 }
  0x42   :  { %936 = vmatmul.mubr.bf16.gmra.mrb[16].mxu0 %v1016_v26  ;;  %968 = vmatmul.mubr.bf16.gmra.mrb[16].mxu1 %v1032_v27 }
  0x43   :  { %939 = vmatprep.mubr.bf16.mxu0 %v1017_v28  ;;  %971 = vmatprep.mubr.bf16.mxu1 %v1033_v29 }
  0x4a   :  { %940 = vmatmul.mubr.bf16.gmra.mrb[20].mxu0 %v1018_v30  ;;  %972 = vmatmul.mubr.bf16.gmra.mrb[20].mxu1 %v1034_v31 }
  0x4b   :  { %943 = vmatprep.mubr.bf16.mxu0 %v1019_v32  ;;  %975 = vmatprep.mubr.bf16.mxu1 %v1035_v33 }
  0x52   :  { %944 = vmatmul.mubr.bf16.gmra.mrb[24].mxu0 %v1020_v34  ;;  %976 = vmatmul.mubr.bf16.gmra.mrb[24].mxu1 %v1036_v35 }
  0x53   :  { %947 = vmatprep.mubr.bf16.mxu0 %v1021_v36  ;;  %979 = vmatprep.mubr.bf16.mxu1 %v1037_v37 }
  0x5a   :  { %948 = vmatmul.mubr.bf16.gmra.mrb[28].mxu0 %v1022_v38  ;;  %980 = vmatmul.mubr.bf16.gmra.mrb[28].mxu1 %v1038_v39 }
  0xf5   :  { %v921_v40 = vpop.f32.mrb[0].mxu0  ;;  %v1179_v41 = vpop.f32.mrb[0].mxu1 }
  0xf6   :  { %v368_v42 = vpop.f32.mrb[1].mxu0  ;;  %v1181_v43 = vpop.f32.mrb[1].mxu1  ;;  %v688_v51 = vmul.f32 %v921_v40, %v921_v40 }
  0xf7   :  { %v922_v44 = vpop.f32.mrb[2].mxu0  ;;  %v1183_v45 = vpop.f32.mrb[2].mxu1  ;;  %v686_v48 = vmul.f32 %v368_v42, %v368_v42 }
  0xf8   :  { %v371_v46 = vpop.f32.mrb[3].mxu0  ;;  %v1185_v47 = vpop.f32.mrb[3].mxu1  ;;  %v689_v54 = vmul.f32 %v922_v44, %v922_v44 }
  0xf9   :  { %v623_v49 = vadd.f32 %v371_v46, %v368_v42  ;;  %v687_v50 = vmul.f32 %v371_v46, %v371_v46 }
  0xfb   :  { %v624_v52 = vadd.f32 %v921_v40, %v623_v49  ;;  %v750_v53 = vadd.f32 %v687_v50, %v686_v48 }
  0xfd   :  { %v751_v55 = vadd.f32 %v750_v53, %v688_v51  ;;  %v925_v56 = vpop.f32.mrb[4].mxu0  ;;  %v625_v57 = vadd.f32 %v922_v44, %v624_v52  ;;  %v1187_v58 = vpop.f32.mrb[4].mxu1 }
  0xfe   :  { %v384_v59 = vpop.f32.mrb[5].mxu0  ;;  %v1189_v60 = vpop.f32.mrb[5].mxu1  ;;  %v692_v7 = vmul.f32 %v925_v56, %v925_v56 }
  0xff   :  { %v626_v61 = vadd.f32 %v625_v57, %v384_v59  ;;  %v690_v62 = vmul.f32 %v384_v59, %v384_v59  ;;  %v752_v63 = vadd.f32 %v751_v55, %v689_v54  ;;  %v926_v0 = vpop.f32.mrb[6].mxu0  ;;  %v1191_v1 = vpop.f32.mrb[6].mxu1 }
 0x100   :  { %v387_v2 = vpop.f32.mrb[7].mxu0  ;;  %v1193_v3 = vpop.f32.mrb[7].mxu1  ;;  %v693_v10 = vmul.f32 %v926_v0, %v926_v0 }
 0x101   :  { %v753_v4 = vadd.f32 %v752_v63, %v690_v62  ;;  %v627_v5 = vadd.f32 %v626_v61, %v387_v2  ;;  %v691_v6 = vmul.f32 %v387_v2, %v387_v2 }
 0x103   :  { %v628_v8 = vadd.f32 %v925_v56, %v627_v5  ;;  %v754_v9 = vadd.f32 %v753_v4, %v691_v6 }
 0x105   :  { %v755_v11 = vadd.f32 %v754_v9, %v692_v7  ;;  %v929_v12 = vpop.f32.mrb[8].mxu0  ;;  %v629_v13 = vadd.f32 %v926_v0, %v628_v8  ;;  %v1195_v14 = vpop.f32.mrb[8].mxu1 }
 0x106   :  { %v400_v15 = vpop.f32.mrb[9].mxu0  ;;  %v1197_v16 = vpop.f32.mrb[9].mxu1  ;;  %v696_v27 = vmul.f32 %v929_v12, %v929_v12 }
 0x107   :  { %v630_v17 = vadd.f32 %v629_v13, %v400_v15  ;;  %v694_v18 = vmul.f32 %v400_v15, %v400_v15  ;;  %v756_v19 = vadd.f32 %v755_v11, %v693_v10  ;;  %v930_v20 = vpop.f32.mrb[10].mxu0  ;;  %v1199_v21 = vpop.f32.mrb[10].mxu1 }
 0x108   :  { %v403_v22 = vpop.f32.mrb[11].mxu0  ;;  %v1201_v23 = vpop.f32.mrb[11].mxu1  ;;  %v697_v30 = vmul.f32 %v930_v20, %v930_v20 }
 0x109   :  { %v757_v24 = vadd.f32 %v756_v19, %v694_v18  ;;  %v631_v25 = vadd.f32 %v630_v17, %v403_v22  ;;  %v695_v26 = vmul.f32 %v403_v22, %v403_v22 }
 0x10b   :  { %v632_v28 = vadd.f32 %v929_v12, %v631_v25  ;;  %v758_v29 = vadd.f32 %v757_v24, %v695_v26 }
 0x10d   :  { %v759_v31 = vadd.f32 %v758_v29, %v696_v27  ;;  %v933_v32 = vpop.f32.mrb[12].mxu0  ;;  %v633_v33 = vadd.f32 %v930_v20, %v632_v28  ;;  %v1203_v34 = vpop.f32.mrb[12].mxu1 }
 0x10e   :  { %v416_v35 = vpop.f32.mrb[13].mxu0  ;;  %v1205_v36 = vpop.f32.mrb[13].mxu1  ;;  %v700_v51 = vmul.f32 %v933_v32, %v933_v32 }
 0x10f   :  { %v634_v37 = vadd.f32 %v633_v33, %v416_v35  ;;  %v698_v38 = vmul.f32 %v416_v35, %v416_v35  ;;  %v760_v39 = vadd.f32 %v759_v31, %v697_v30  ;;  %v934_v40 = vpop.f32.mrb[14].mxu0  ;;  %v1207_v42 = vpop.f32.mrb[14].mxu1 }
 0x110   :  { %v419_v44 = vpop.f32.mrb[15].mxu0  ;;  %v1209_v46 = vpop.f32.mrb[15].mxu1  ;;  %v701_v54 = vmul.f32 %v934_v40, %v934_v40 }
 0x111   :  { %v761_v48 = vadd.f32 %v760_v39, %v698_v38  ;;  %v635_v49 = vadd.f32 %v634_v37, %v419_v44  ;;  %v699_v50 = vmul.f32 %v419_v44, %v419_v44 }
 0x113   :  { %v636_v52 = vadd.f32 %v933_v32, %v635_v49  ;;  %v762_v53 = vadd.f32 %v761_v48, %v699_v50 }
 0x115   :  { %v763_v55 = vadd.f32 %v762_v53, %v700_v51  ;;  %v937_v56 = vpop.f32.mrb[16].mxu0  ;;  %v637_v57 = vadd.f32 %v934_v40, %v636_v52  ;;  %v1211_v59 = vpop.f32.mrb[16].mxu1 }
 0x116   :  { %v432_v61 = vpop.f32.mrb[17].mxu0  ;;  %v1213_v62 = vpop.f32.mrb[17].mxu1  ;;  %v704_v11 = vmul.f32 %v937_v56, %v937_v56 }
 0x117   :  { %v638_v63 = vadd.f32 %v637_v57, %v432_v61  ;;  %v702_v0 = vmul.f32 %v432_v61, %v432_v61  ;;  %v764_v2 = vadd.f32 %v763_v55, %v701_v54  ;;  %v938_v4 = vpop.f32.mrb[18].mxu0  ;;  %v1215_v5 = vpop.f32.mrb[18].mxu1 }
 0x118   :  { %v435_v6 = vpop.f32.mrb[19].mxu0  ;;  %v1217_v7 = vpop.f32.mrb[19].mxu1  ;;  %v705_v15 = vmul.f32 %v938_v4, %v938_v4 }
 0x119   :  { %v765_v8 = vadd.f32 %v764_v2, %v702_v0  ;;  %v639_v9 = vadd.f32 %v638_v63, %v435_v6  ;;  %v703_v10 = vmul.f32 %v435_v6, %v435_v6 }
 0x11b   :  { %v640_v12 = vadd.f32 %v937_v56, %v639_v9  ;;  %v766_v13 = vadd.f32 %v765_v8, %v703_v10 }
 0x11d   :  { %v767_v17 = vadd.f32 %v766_v13, %v704_v11  ;;  %v941_v18 = vpop.f32.mrb[20].mxu0  ;;  %v641_v19 = vadd.f32 %v938_v4, %v640_v12  ;;  %v1219_v20 = vpop.f32.mrb[20].mxu1 }
 0x11e   :  { %v448_v22 = vpop.f32.mrb[21].mxu0  ;;  %v1221_v24 = vpop.f32.mrb[21].mxu1  ;;  %v708_v37 = vmul.f32 %v941_v18, %v941_v18 }
 0x11f   :  { %v642_v25 = vadd.f32 %v641_v19, %v448_v22  ;;  %v706_v26 = vmul.f32 %v448_v22, %v448_v22  ;;  %v768_v27 = vadd.f32 %v767_v17, %v705_v15  ;;  %v942_v28 = vpop.f32.mrb[22].mxu0  ;;  %v1223_v29 = vpop.f32.mrb[22].mxu1 }
 0x120   :  { %v451_v30 = vpop.f32.mrb[23].mxu0  ;;  %v1225_v31 = vpop.f32.mrb[23].mxu1  ;;  %v709_v40 = vmul.f32 %v942_v28, %v942_v28 }
 0x121   :  { %v769_v32 = vadd.f32 %v768_v27, %v706_v26  ;;  %v643_v33 = vadd.f32 %v642_v25, %v451_v30  ;;  %v707_v35 = vmul.f32 %v451_v30, %v451_v30 }
 0x123   :  { %v644_v38 = vadd.f32 %v941_v18, %v643_v33  ;;  %v770_v39 = vadd.f32 %v769_v32, %v707_v35 }
 0x125   :  { %v771_v44 = vadd.f32 %v770_v39, %v708_v37  ;;  %v945_v48 = vpop.f32.mrb[24].mxu0  ;;  %v645_v49 = vadd.f32 %v942_v28, %v644_v38  ;;  %v1227_v50 = vpop.f32.mrb[24].mxu1 }
 0x126   :  { %v464_v51 = vpop.f32.mrb[25].mxu0  ;;  %v1229_v52 = vpop.f32.mrb[25].mxu1  ;;  %v712_v6 = vmul.f32 %v945_v48, %v945_v48 }
 0x127   :  { %v646_v53 = vadd.f32 %v645_v49, %v464_v51  ;;  %v710_v54 = vmul.f32 %v464_v51, %v464_v51  ;;  %v772_v55 = vadd.f32 %v771_v44, %v709_v40  ;;  %v946_v56 = vpop.f32.mrb[26].mxu0  ;;  %v1231_v57 = vpop.f32.mrb[26].mxu1  ;;  %v718_v49 = vmul.f32 %v1181_v43, %v1181_v43 }
 0x128   :  { %v467_v61 = vpop.f32.mrb[27].mxu0  ;;  %v1233_v63 = vpop.f32.mrb[27].mxu1  ;;  %v713_v10 = vmul.f32 %v946_v56, %v946_v56 }
 0x129   :  { %v773_v0 = vadd.f32 %v772_v55, %v710_v54  ;;  %v647_v2 = vadd.f32 %v646_v53, %v467_v61  ;;  %v711_v4 = vmul.f32 %v467_v61, %v467_v61  ;;  %v720_v61 = vmul.f32 %v1179_v41, %v1179_v41 }
 0x12b   :  { %v648_v8 = vadd.f32 %v945_v48, %v647_v2  ;;  %v774_v9 = vadd.f32 %v773_v0, %v711_v4  ;;  %v721_v4 = vmul.f32 %v1183_v45, %v1183_v45 }
 0x12d   :  { %v775_v11 = vadd.f32 %v774_v9, %v712_v6  ;;  %v949_v12 = vpop.f32.mrb[28].mxu0  ;;  %v649_v13 = vadd.f32 %v946_v56, %v648_v8  ;;  %v1235_v15 = vpop.f32.mrb[28].mxu1  ;;  %v719_v56 = vmul.f32 %v1185_v47, %v1185_v47 }
 0x12e   :  { %v480_v17 = vpop.f32.mrb[29].mxu0  ;;  %v1237_v18 = vpop.f32.mrb[29].mxu1  ;;  %v716_v37 = vmul.f32 %v949_v12, %v949_v12 }
 0x12f   :  { %v650_v19 = vadd.f32 %v649_v13, %v480_v17  ;;  %v714_v22 = vmul.f32 %v480_v17, %v480_v17  ;;  %v776_v25 = vadd.f32 %v775_v11, %v713_v10  ;;  %v950_v26 = vpop.f32.mrb[30].mxu0  ;;  %v1239_v27 = vpop.f32.mrb[30].mxu1 }
 0x130   :  { %v483_v28 = vpop.f32.mrb[31].mxu0  ;;  %v1241_v30 = vpop.f32.mrb[31].mxu1  ;;  %v717_v40 = vmul.f32 %v950_v26, %v950_v26 }
 0x131   :  { %v777_v32 = vadd.f32 %v776_v25, %v714_v22  ;;  %v651_v33 = vadd.f32 %v650_v19, %v483_v28  ;;  %v715_v35 = vmul.f32 %v483_v28, %v483_v28 }
 0x133   :  { %v652_v38 = vadd.f32 %v949_v12, %v651_v33  ;;  %v778_v39 = vadd.f32 %v777_v32, %v715_v35  ;;  %v723_v12 = vmul.f32 %v1193_v3, %v1193_v3  ;;  %v727_v32 = vmul.f32 %v1201_v23, %v1201_v23 }
 0x135   :  { %v779_v44 = vadd.f32 %v778_v39, %v716_v37  ;;  %v653_v48 = vadd.f32 %v950_v26, %v652_v38 }
 0x137   :  { %v654_v51 = vadd.f32 %v653_v48, %v1181_v43  ;;  %v780_v53 = vadd.f32 %v779_v44, %v717_v40  ;;  %v722_v43 = vmul.f32 %v1189_v60, %v1189_v60  ;;  %v731_v48 = vmul.f32 %v1209_v46, %v1209_v46 }
 0x139   :  { %v781_v54 = vadd.f32 %v780_v53, %v718_v49  ;;  %v655_v55 = vadd.f32 %v654_v51, %v1185_v47 }
 0x13b   :  { %v656_v0 = vadd.f32 %v1179_v41, %v655_v55  ;;  %v782_v2 = vadd.f32 %v781_v54, %v719_v56  ;;  %v724_v41 = vmul.f32 %v1187_v58, %v1187_v58 }
 0x13d   :  { %v783_v6 = vadd.f32 %v782_v2, %v720_v61  ;;  %v657_v8 = vadd.f32 %v1183_v45, %v656_v0  ;;  %v725_v45 = vmul.f32 %v1191_v1, %v1191_v1  ;;  %v735_v0 = vmul.f32 %v1217_v7, %v1217_v7 }
 0x13f   :  { %v658_v9 = vadd.f32 %v657_v8, %v1189_v60  ;;  %v784_v10 = vadd.f32 %v783_v6, %v721_v4  ;;  %v726_v60 = vmul.f32 %v1197_v16, %v1197_v16 }
 0x141   :  { %v785_v11 = vadd.f32 %v784_v10, %v722_v43  ;;  %v659_v47 = vadd.f32 %v658_v9, %v1193_v3 }
 0x143   :  { %v660_v13 = vadd.f32 %v1187_v58, %v659_v47  ;;  %v786_v17 = vadd.f32 %v785_v11, %v723_v12  ;;  %v728_v58 = vmul.f32 %v1195_v14, %v1195_v14  ;;  %v739_v11 = vmul.f32 %v1225_v31, %v1225_v31 }
 0x145   :  { %v787_v19 = vadd.f32 %v786_v17, %v724_v41  ;;  %v661_v22 = vadd.f32 %v1191_v1, %v660_v13  ;;  %v729_v1 = vmul.f32 %v1199_v21, %v1199_v21 }
 0x147   :  { %v662_v25 = vadd.f32 %v661_v22, %v1197_v16  ;;  %v788_v26 = vadd.f32 %v787_v19, %v725_v45  ;;  %v730_v16 = vmul.f32 %v1205_v36, %v1205_v36  ;;  %v743_v22 = vmul.f32 %v1233_v63, %v1233_v63 }
 0x149   :  { %v789_v28 = vadd.f32 %v788_v26, %v726_v60  ;;  %v663_v3 = vadd.f32 %v662_v25, %v1201_v23 }
 0x14b   :  { %v664_v33 = vadd.f32 %v1195_v14, %v663_v3  ;;  %v790_v35 = vadd.f32 %v789_v28, %v727_v32  ;;  %v732_v14 = vmul.f32 %v1203_v34, %v1203_v34 }
 0x14d   :  { %v791_v37 = vadd.f32 %v790_v35, %v728_v58  ;;  %v665_v38 = vadd.f32 %v1199_v21, %v664_v33  ;;  %v733_v21 = vmul.f32 %v1207_v42, %v1207_v42  ;;  %v747_v33 = vmul.f32 %v1241_v30, %v1241_v30 }
 0x14f   :  { %v666_v39 = vadd.f32 %v665_v38, %v1205_v36  ;;  %v792_v40 = vadd.f32 %v791_v37, %v729_v1  ;;  %v734_v36 = vmul.f32 %v1213_v62, %v1213_v62 }
 0x151   :  { %v793_v44 = vadd.f32 %v792_v40, %v730_v16  ;;  %v667_v23 = vadd.f32 %v666_v39, %v1209_v46 }
 0x153   :  { %v668_v49 = vadd.f32 %v1203_v34, %v667_v23  ;;  %v794_v51 = vadd.f32 %v793_v44, %v731_v48  ;;  %v736_v34 = vmul.f32 %v1211_v59, %v1211_v59 }
 0x155   :  { %v795_v53 = vadd.f32 %v794_v51, %v732_v14  ;;  %v669_v54 = vadd.f32 %v1207_v42, %v668_v49  ;;  %v737_v42 = vmul.f32 %v1215_v5, %v1215_v5 }
 0x157   :  { %v670_v55 = vadd.f32 %v669_v54, %v1213_v62  ;;  %v796_v56 = vadd.f32 %v795_v53, %v733_v21  ;;  %v738_v62 = vmul.f32 %v1221_v24, %v1221_v24 }
 0x159   :  { %v797_v61 = vadd.f32 %v796_v56, %v734_v36  ;;  %v671_v46 = vadd.f32 %v670_v55, %v1217_v7 }
 0x15b   :  { %v672_v2 = vadd.f32 %v1211_v59, %v671_v46  ;;  %v798_v4 = vadd.f32 %v797_v61, %v735_v0  ;;  %v740_v59 = vmul.f32 %v1219_v20, %v1219_v20 }
 0x15d   :  { %v799_v6 = vadd.f32 %v798_v4, %v736_v34  ;;  %v673_v8 = vadd.f32 %v1215_v5, %v672_v2  ;;  %v741_v5 = vmul.f32 %v1223_v29, %v1223_v29 }
 0x15f   :  { %v674_v43 = vadd.f32 %v673_v8, %v1221_v24  ;;  %v800_v9 = vadd.f32 %v799_v6, %v737_v42  ;;  %v742_v24 = vmul.f32 %v1229_v52, %v1229_v52 }
 0x161   :  { %v801_v10 = vadd.f32 %v800_v9, %v738_v62  ;;  %v675_v7 = vadd.f32 %v674_v43, %v1225_v31 }
 0x163   :  { %v676_v47 = vadd.f32 %v1219_v20, %v675_v7  ;;  %v802_v12 = vadd.f32 %v801_v10, %v739_v11  ;;  %v744_v20 = vmul.f32 %v1227_v50, %v1227_v50 }
 0x165   :  { %v803_v41 = vadd.f32 %v802_v12, %v740_v59  ;;  %v677_v13 = vadd.f32 %v1223_v29, %v676_v47  ;;  %v745_v29 = vmul.f32 %v1231_v57, %v1231_v57 }
 0x167   :  { %v678_v17 = vadd.f32 %v677_v13, %v1229_v52  ;;  %v804_v45 = vadd.f32 %v803_v41, %v741_v5  ;;  %v746_v52 = vmul.f32 %v1237_v18, %v1237_v18 }
 0x169   :  { %v805_v19 = vadd.f32 %v804_v45, %v742_v24  ;;  %v679_v31 = vadd.f32 %v678_v17, %v1233_v63 }
 0x16b   :  { %v680_v60 = vadd.f32 %v1227_v50, %v679_v31  ;;  %v806_v25 = vadd.f32 %v805_v19, %v743_v22  ;;  %v748_v50 = vmul.f32 %v1235_v15, %v1235_v15 }
 0x16d   :  { %v807_v26 = vadd.f32 %v806_v25, %v744_v20  ;;  %v681_v28 = vadd.f32 %v1231_v57, %v680_v60  ;;  %v749_v57 = vmul.f32 %v1239_v27, %v1239_v27 }
 0x16f   :  { %v682_v3 = vadd.f32 %v681_v28, %v1237_v18  ;;  %v808_v32 = vadd.f32 %v807_v26, %v745_v29 }
 0x171   :  { %v809_v58 = vadd.f32 %v808_v32, %v746_v52  ;;  %v683_v63 = vadd.f32 %v682_v3, %v1241_v30 }
 0x173   :  { %v684_v35 = vadd.f32 %v1235_v15, %v683_v63  ;;  %v810_v1 = vadd.f32 %v809_v58, %v747_v33 }
 0x175   :  { %v685_v37 = vadd.f32 %v1239_v27, %v684_v35  ;;  %v811_v38 = vadd.f32 %v810_v1, %v748_v50 }
 0x177   :  { %v812_v18 = vadd.f32 %v811_v38, %v749_v57  ;;  %813 = vst [vmem:[%s1347_s2] sm:$0xff] %v685_v37 }
 0x179   :  { %814 = vst [vmem:[%s1348_s3] sm:$0xff] %v812_v18 }

// kernel: mp_forward.11
= control target key start
LH: loop header
LB: loop body
LE: loop exit
PB: predicated region body
PF: predicated region fallthrough
CT: control target
= control target key end

     0   :  { %s3103_s1 = inlined_call_operand.vmem [shape: bf16[128,128], index: 1, kind: input, shape index: {}]   ;;  %s3104_s0 = inlined_call_operand.vmem [shape: bf16[512,128], index: 0, kind: input, shape index: {}]   ;;  %s3105_s2 = inlined_call_operand.vmem [shape: f32[1,128], index: 2, kind: input, shape index: {}]   ;;  %s3106_s3 = inlined_call_operand.vmem [shape: f32[1,128], index: 3, kind: input, shape index: {}]   ;;  %s3107_s4 = inlined_call_operand.vmem [shape: bf16[512,128], index: 4, kind: output, shape index: {}]  }
   0x1   :  { %v1974_v0 = vld [vmem:[%s3103_s1] sm:$0xff]   ;;  %v1975_v1 = vld [vmem:[%s3103_s1 + $0x8] sm:$0xff]   ;;  %v1976_v2 = vld [vmem:[%s3103_s1 + $0x10] sm:$0xff]  }
   0x2   :  { %1878 = vmatprep.subr.bf16.mxu0 %v1974_v0  ;;  %1958 = vmatprep.subr.bf16.mxu1 %v1974_v0  ;;  %v1977_v3 = vld [vmem:[%s3103_s1 + $0x18] sm:$0xff]   ;;  %v1982_v4 = vld [vmem:[%s3104_s0] sm:$0xff]   ;;  %v1979_v7 = vld [vmem:[%s3103_s1 + $0x28] sm:$0xff]  }
   0x3   :  { %1879 = vmatpush3.bf16.msra.mxu0 %v1974_v0  ;;  %1966 = vmatpush3.bf16.msra.mxu1 %v1974_v0  ;;  %v1983_v5 = vld [vmem:[%s3104_s0 + $0x80] sm:$0xff]   ;;  %v1980_v8 = vld [vmem:[%s3103_s1 + $0x30] sm:$0xff]   ;;  %v1981_v9 = vld [vmem:[%s3103_s1 + $0x38] sm:$0xff]  }
   0x4   :  { %1880 = vmatprep.subr.bf16.mxu0 %v1975_v1  ;;  %1959 = vmatprep.subr.bf16.mxu1 %v1975_v1  ;;  %v1978_v6 = vld [vmem:[%s3103_s1 + $0x20] sm:$0xff]   ;;  %v1984_v10 = vld [vmem:[%s3104_s0 + $0x8] sm:$0xff]   ;;  %v1986_v12 = vld [vmem:[%s3104_s0 + $0x10] sm:$0xff]  }
   0x5   :  { %1894 = vmatprep.mubr.bf16.mxu0 %v1982_v4  ;;  %1926 = vmatprep.mubr.bf16.mxu1 %v1983_v5  ;;  %v1985_v11 = vld [vmem:[%s3104_s0 + $0x88] sm:$0xff]   ;;  %v1987_v13 = vld [vmem:[%s3104_s0 + $0x90] sm:$0xff]   ;;  %v1988_v14 = vld [vmem:[%s3104_s0 + $0x18] sm:$0xff]  }
   0x6   :  { %v1989_v15 = vld [vmem:[%s3104_s0 + $0x98] sm:$0xff]   ;;  %v1990_v16 = vld [vmem:[%s3104_s0 + $0x20] sm:$0xff]   ;;  %v1992_v18 = vld [vmem:[%s3104_s0 + $0x28] sm:$0xff]  }
   0x7   :  { %1881 = vmatpush3.bf16.msra.mxu0 %v1975_v1  ;;  %1967 = vmatpush3.bf16.msra.mxu1 %v1975_v1  ;;  %v1991_v17 = vld [vmem:[%s3104_s0 + $0xa0] sm:$0xff]   ;;  %v1993_v19 = vld [vmem:[%s3104_s0 + $0xa8] sm:$0xff]   ;;  %v1994_v20 = vld [vmem:[%s3104_s0 + $0x30] sm:$0xff]  }
   0x8   :  { %1882 = vmatprep.subr.bf16.mxu0 %v1976_v2  ;;  %1960 = vmatprep.subr.bf16.mxu1 %v1976_v2  ;;  %v1995_v21 = vld [vmem:[%s3104_s0 + $0xb0] sm:$0xff]   ;;  %v1996_v22 = vld [vmem:[%s3104_s0 + $0x38] sm:$0xff]   ;;  %v1998_v24 = vld [vmem:[%s3104_s0 + $0x40] sm:$0xff]  }
   0x9   :  { %v1997_v23 = vld [vmem:[%s3104_s0 + $0xb8] sm:$0xff]   ;;  %v1999_v25 = vld [vmem:[%s3104_s0 + $0xc0] sm:$0xff]   ;;  %v2000_v26 = vld [vmem:[%s3104_s0 + $0x48] sm:$0xff]  }
   0xa   :  { %v2001_v27 = vld [vmem:[%s3104_s0 + $0xc8] sm:$0xff]   ;;  %v2002_v28 = vld [vmem:[%s3104_s0 + $0x50] sm:$0xff]   ;;  %v2004_v30 = vld [vmem:[%s3104_s0 + $0x58] sm:$0xff]  }
   0xb   :  { %1883 = vmatpush3.bf16.msra.mxu0 %v1976_v2  ;;  %1968 = vmatpush3.bf16.msra.mxu1 %v1976_v2  ;;  %v2003_v29 = vld [vmem:[%s3104_s0 + $0xd0] sm:$0xff]   ;;  %v2005_v31 = vld [vmem:[%s3104_s0 + $0xd8] sm:$0xff]   ;;  %v2006_v32 = vld [vmem:[%s3104_s0 + $0x60] sm:$0xff]  }
   0xc   :  { %1884 = vmatprep.subr.bf16.mxu0 %v1977_v3  ;;  %1961 = vmatprep.subr.bf16.mxu1 %v1977_v3  ;;  %v2007_v33 = vld [vmem:[%s3104_s0 + $0xe0] sm:$0xff]   ;;  %v2008_v34 = vld [vmem:[%s3104_s0 + $0x68] sm:$0xff]   ;;  %v2010_v36 = vld [vmem:[%s3104_s0 + $0x70] sm:$0xff]  }
   0xd   :  { %v2009_v35 = vld [vmem:[%s3104_s0 + $0xe8] sm:$0xff]   ;;  %v2011_v37 = vld [vmem:[%s3104_s0 + $0xf0] sm:$0xff]   ;;  %v2012_v38 = vld [vmem:[%s3104_s0 + $0x78] sm:$0xff]  }
   0xe   :  { %v2013_v39 = vld [vmem:[%s3104_s0 + $0xf8] sm:$0xff]   ;;  %v2420_v40 = vld [vmem:[%s3105_s2] ss:$0 sm:$0xff] }
   0xf   :  { %1885 = vmatpush3.bf16.msra.mxu0 %v1977_v3  ;;  %1969 = vmatpush3.bf16.msra.mxu1 %v1977_v3  ;;  %v2425_v42 = vld [vmem:[%s3106_s3] ss:$0 sm:$0xff] }
  0x10   :  { %1886 = vmatprep.subr.bf16.mxu0 %v1978_v6  ;;  %1962 = vmatprep.subr.bf16.mxu1 %v1978_v6 }
  0x13   :  { %1887 = vmatpush3.bf16.msra.mxu0 %v1978_v6  ;;  %1970 = vmatpush3.bf16.msra.mxu1 %v1978_v6 }
  0x14   :  { %1888 = vmatprep.subr.bf16.mxu0 %v1979_v7  ;;  %1963 = vmatprep.subr.bf16.mxu1 %v1979_v7 }
  0x17   :  { %1889 = vmatpush3.bf16.msra.mxu0 %v1979_v7  ;;  %1971 = vmatpush3.bf16.msra.mxu1 %v1979_v7 }
  0x18   :  { %1890 = vmatprep.subr.bf16.mxu0 %v1980_v8  ;;  %1964 = vmatprep.subr.bf16.mxu1 %v1980_v8 }
  0x1b   :  { %1891 = vmatpush3.bf16.msra.mxu0 %v1980_v8  ;;  %1972 = vmatpush3.bf16.msra.mxu1 %v1980_v8 }
  0x1c   :  { %1892 = vmatprep.subr.bf16.mxu0 %v1981_v9  ;;  %1965 = vmatprep.subr.bf16.mxu1 %v1981_v9 }
  0x1f   :  { %1893 = vmatpush3.bf16.msra.mxu0 %v1981_v9  ;;  %1973 = vmatpush3.bf16.msra.mxu1 %v1981_v9 }
  0x22   :  { %1895 = vmatmul.mubr.bf16.vlgmr.msra.gmra.mrb[0].mxu0 %v1984_v10  ;;  %1927 = vmatmul.mubr.bf16.vlgmr.msra.gmra.mrb[0].mxu1 %v1985_v11 }
  0x23   :  { %1898 = vmatprep.mubr.bf16.mxu0 %v1986_v12  ;;  %1930 = vmatprep.mubr.bf16.mxu1 %v1987_v13 }
  0x2a   :  { %1899 = vmatmul.mubr.bf16.gmra.mrb[4].mxu0 %v1988_v14  ;;  %1931 = vmatmul.mubr.bf16.gmra.mrb[4].mxu1 %v1989_v15 }
  0x2b   :  { %1902 = vmatprep.mubr.bf16.mxu0 %v1990_v16  ;;  %1934 = vmatprep.mubr.bf16.mxu1 %v1991_v17 }
  0x32   :  { %1903 = vmatmul.mubr.bf16.gmra.mrb[8].mxu0 %v1992_v18  ;;  %1935 = vmatmul.mubr.bf16.gmra.mrb[8].mxu1 %v1993_v19 }
  0x33   :  { %1906 = vmatprep.mubr.bf16.mxu0 %v1994_v20  ;;  %1938 = vmatprep.mubr.bf16.mxu1 %v1995_v21 }
  0x3a   :  { %1907 = vmatmul.mubr.bf16.gmra.mrb[12].mxu0 %v1996_v22  ;;  %1939 = vmatmul.mubr.bf16.gmra.mrb[12].mxu1 %v1997_v23 }
  0x3b   :  { %1910 = vmatprep.mubr.bf16.mxu0 %v1998_v24  ;;  %1942 = vmatprep.mubr.bf16.mxu1 %v1999_v25 }
  0x42   :  { %1911 = vmatmul.mubr.bf16.gmra.mrb[16].mxu0 %v2000_v26  ;;  %1943 = vmatmul.mubr.bf16.gmra.mrb[16].mxu1 %v2001_v27 }
  0x43   :  { %1914 = vmatprep.mubr.bf16.mxu0 %v2002_v28  ;;  %1946 = vmatprep.mubr.bf16.mxu1 %v2003_v29 }
  0x4a   :  { %1915 = vmatmul.mubr.bf16.gmra.mrb[20].mxu0 %v2004_v30  ;;  %1947 = vmatmul.mubr.bf16.gmra.mrb[20].mxu1 %v2005_v31 }
  0x4b   :  { %1918 = vmatprep.mubr.bf16.mxu0 %v2006_v32  ;;  %1950 = vmatprep.mubr.bf16.mxu1 %v2007_v33 }
  0x52   :  { %1919 = vmatmul.mubr.bf16.gmra.mrb[24].mxu0 %v2008_v34  ;;  %1951 = vmatmul.mubr.bf16.gmra.mrb[24].mxu1 %v2009_v35 }
  0x53   :  { %1922 = vmatprep.mubr.bf16.mxu0 %v2010_v36  ;;  %1954 = vmatprep.mubr.bf16.mxu1 %v2011_v37 }
  0x5a   :  { %1923 = vmatmul.mubr.bf16.gmra.mrb[28].mxu0 %v2012_v38  ;;  %1955 = vmatmul.mubr.bf16.gmra.mrb[28].mxu1 %v2013_v39 }
  0xf5   :  { %v1896_v41 = vpop.f32.mrb[0].mxu0  ;;  %v1928_v43 = vpop.f32.mrb[0].mxu1 }
  0xf6   :  { %v636_v44 = vmul.f32 %v1896_v41, %v2420_v40  ;;  %v668_v45 = vmul.f32 %v1928_v43, %v2420_v40  ;;  %v372_v46 = vpop.f32.mrb[1].mxu0  ;;  %v500_v47 = vpop.f32.mrb[1].mxu1 }
  0xf7   :  { %v634_v48 = vmul.f32 %v2420_v40, %v372_v46  ;;  %v666_v49 = vmul.f32 %v2420_v40, %v500_v47  ;;  %v1897_v50 = vpop.f32.mrb[2].mxu0  ;;  %v1929_v51 = vpop.f32.mrb[2].mxu1 }
  0xf8   :  { %v2432_v52 = vadd.f32 %v2425_v42, %v636_v44  ;;  %v2435_v53 = vadd.f32 %v2425_v42, %v668_v45  ;;  %v637_v54 = vmul.f32 %v1897_v50, %v2420_v40  ;;  %v669_v55 = vmul.f32 %v1929_v51, %v2420_v40  ;;  %v375_v56 = vpop.f32.mrb[3].mxu0  ;;  %v503_v57 = vpop.f32.mrb[3].mxu1 }
  0xf9   :  { %v2440_v58 = vadd.f32 %v2425_v42, %v634_v48  ;;  %v2443_v59 = vadd.f32 %v2425_v42, %v666_v49  ;;  %v635_v60 = vmul.f32 %v2420_v40, %v375_v56  ;;  %v667_v61 = vmul.f32 %v2420_v40, %v503_v57 }
  0xfa   :  { %v771_v62 = vsub.f32 0.0, %v2432_v52  ;;  %v803_v63 = vsub.f32 0.0, %v2435_v53  ;;  %v2450_v0 = vadd.f32 %v2425_v42, %v637_v54  ;;  %v2453_v1 = vadd.f32 %v2425_v42, %v669_v55 }
  0xfb   :  { %v769_v2 = vsub.f32 0.0, %v2440_v58  ;;  %v801_v3 = vsub.f32 0.0, %v2443_v59  ;;  %v2458_v4 = vadd.f32 %v2425_v42, %v635_v60  ;;  %v2461_v5 = vadd.f32 %v2425_v42, %v667_v61 }
  0xfc   :  { %v837_v6 = vmul.f32 1.442695, %v771_v62  ;;  %v901_v7 = vmul.f32 1.442695, %v803_v63  ;;  %v772_v8 = vsub.f32 0.0, %v2450_v0  ;;  %v804_v9 = vsub.f32 0.0, %v2453_v1 }
  0xfd   :  { %v833_v10 = vmul.f32 1.442695, %v769_v2  ;;  %v897_v11 = vmul.f32 1.442695, %v801_v3  ;;  %v770_v12 = vsub.f32 0.0, %v2458_v4  ;;  %v802_v13 = vsub.f32 0.0, %v2461_v5 }
  0xfe   :  { %2014 = vpow2.f32 %v837_v6  ;;  %v839_v14 = vmul.f32 1.442695, %v772_v8  ;;  %v903_v15 = vmul.f32 1.442695, %v804_v9  ;;  %v1900_v16 = vpop.f32.mrb[4].mxu0  ;;  %v1932_v17 = vpop.f32.mrb[4].mxu1 }
  0xff   :  { %2016 = vpow2.f32 %v901_v7  ;;  %v835_v18 = vmul.f32 1.442695, %v770_v12  ;;  %v899_v19 = vmul.f32 1.442695, %v802_v13  ;;  %v640_v20 = vmul.f32 %v1900_v16, %v2420_v40  ;;  %v388_v21 = vpop.f32.mrb[5].mxu0  ;;  %v516_v22 = vpop.f32.mrb[5].mxu1 }
 0x100   :  { %2018 = vpow2.f32 %v833_v10  ;;  %v672_v23 = vmul.f32 %v1932_v17, %v2420_v40  ;;  %v638_v24 = vmul.f32 %v2420_v40, %v388_v21  ;;  %v670_v25 = vmul.f32 %v2420_v40, %v516_v22  ;;  %v1901_v26 = vpop.f32.mrb[6].mxu0  ;;  %v1933_v27 = vpop.f32.mrb[6].mxu1 }
 0x101   :  { %2020 = vpow2.f32 %v897_v11  ;;  %v2472_v28 = vadd.f32 %v2425_v42, %v640_v20  ;;  %v641_v29 = vmul.f32 %v1901_v26, %v2420_v40  ;;  %v673_v30 = vmul.f32 %v1933_v27, %v2420_v40  ;;  %v391_v31 = vpop.f32.mrb[7].mxu0  ;;  %v519_v32 = vpop.f32.mrb[7].mxu1 }
 0x102   :  { %2022 = vpow2.f32 %v839_v14  ;;  %v2477_v33 = vadd.f32 %v2425_v42, %v672_v23  ;;  %v2480_v34 = vadd.f32 %v2425_v42, %v638_v24  ;;  %v2483_v35 = vadd.f32 %v2425_v42, %v670_v25 }
 0x103   :  { %2024 = vpow2.f32 %v903_v15  ;;  %v775_v36 = vsub.f32 0.0, %v2472_v28  ;;  %v2487_v37 = vadd.f32 %v2425_v42, %v641_v29  ;;  %v2490_v38 = vadd.f32 %v2425_v42, %v673_v30 }
 0x104   :  { %2026 = vpow2.f32 %v835_v18  ;;  %v807_v39 = vsub.f32 0.0, %v2477_v33  ;;  %v773_v41 = vsub.f32 0.0, %v2480_v34  ;;  %v805_v43 = vsub.f32 0.0, %v2483_v35 }
 0x105   :  { %2028 = vpow2.f32 %v899_v19  ;;  %v845_v44 = vmul.f32 1.442695, %v775_v36  ;;  %v776_v45 = vsub.f32 0.0, %v2487_v37  ;;  %v808_v46 = vsub.f32 0.0, %v2490_v38  ;;  %v1904_v47 = vpop.f32.mrb[8].mxu0  ;;  %v1936_v48 = vpop.f32.mrb[8].mxu1 }
 0x106   :  { %v909_v49 = vmul.f32 1.442695, %v807_v39  ;;  %v841_v50 = vmul.f32 1.442695, %v773_v41  ;;  %v905_v51 = vmul.f32 1.442695, %v805_v43  ;;  %v639_v54 = vmul.f32 %v2420_v40, %v391_v31 }
 0x107   :  { %2030 = vpow2.f32 %v845_v44  ;;  %v2498_v55 = vmul.f32 1.442695, %v776_v45  ;;  %v2500_v56 = vmul.f32 1.442695, %v808_v46  ;;  %v671_v57 = vmul.f32 %v2420_v40, %v519_v32  ;;  %v404_v60 = vpop.f32.mrb[9].mxu0  ;;  %v532_v61 = vpop.f32.mrb[9].mxu1 }
 0x108   :  { %v2015_v62 = vpop.eup %2014  ;;  %2032 = vpow2.f32 %v909_v49  ;;  %v2504_v63 = vadd.f32 %v2425_v42, %v639_v54  ;;  %v644_v2 = vmul.f32 %v1904_v47, %v2420_v40  ;;  %v676_v3 = vmul.f32 %v1936_v48, %v2420_v40  ;;  %v1905_v6 = vpop.f32.mrb[10].mxu0 }
 0x109   :  { %v1937_v7 = vpop.f32.mrb[10].mxu1  ;;  %v2017_v8 = vpop.eup %2016  ;;  %v963_v9 = vadd.f32 1.0, %v2015_v62  ;;  %2034 = vpow2.f32 %v841_v50  ;;  %v2509_v10 = vadd.f32 %v2425_v42, %v671_v57  ;;  %v642_v11 = vmul.f32 %v2420_v40, %v404_v60 }
 0x10a   :  { %v407_v12 = vpop.f32.mrb[11].mxu0  ;;  %v2512_v13 = vpop.f32.mrb[11].mxu1  ;;  %v995_v15 = vadd.f32 1.0, %v2017_v8  ;;  %2036 = vpow2.f32 %v905_v51  ;;  %v774_v16 = vsub.f32 0.0, %v2504_v63  ;;  %v2516_v17 = vadd.f32 %v2425_v42, %v644_v2 }
 0x10b   :  { %v2019_v14 = vpop.eup %2018  ;;  %2038 = vrcp.f32 %v963_v9  ;;  %v806_v20 = vsub.f32 0.0, %v2509_v10  ;;  %v2520_v21 = vadd.f32 %v2425_v42, %v676_v3  ;;  %v2535_v43 = vadd.f32 %v2425_v42, %v642_v11 }
 0x10c   :  { %v2021_v18 = vpop.eup %2020  ;;  %v961_v19 = vadd.f32 1.0, %v2019_v14  ;;  %2040 = vrcp.f32 %v995_v15  ;;  %v2522_v24 = vmul.f32 1.442695, %v774_v16  ;;  %v779_v25 = vsub.f32 0.0, %v2516_v17 }
 0x10d   :  { %v2023_v22 = vpop.eup %2022  ;;  %v993_v23 = vadd.f32 1.0, %v2021_v18  ;;  %v2525_v29 = vmul.f32 1.442695, %v806_v20  ;;  %v811_v30 = vsub.f32 0.0, %v2520_v21  ;;  %v2528_v31 = vpop.f32.mrb[12].mxu0  ;;  %v674_v49 = vmul.f32 %v2420_v40, %v532_v61 }
 0x10e   :  { %v2025_v26 = vpop.eup %2024  ;;  %2042 = vrcp.f32 %v961_v19  ;;  %v964_v27 = vadd.f32 1.0, %v2023_v22  ;;  %v2530_v32 = vpop.f32.mrb[12].mxu1  ;;  %v2532_v41 = vmul.f32 1.442695, %v779_v25  ;;  %v777_v57 = vsub.f32 0.0, %v2535_v43 }
 0x10f   :  { %v2027_v36 = vpop.eup %2026  ;;  %2044 = vrcp.f32 %v993_v23  ;;  %v996_v39 = vadd.f32 1.0, %v2025_v26  ;;  %v2537_v44 = vpop.f32.mrb[13].mxu0  ;;  %v2541_v48 = vmul.f32 1.442695, %v811_v30  ;;  %v645_v60 = vmul.f32 %v1905_v6, %v2420_v40 }
 0x110   :  { %v2539_v45 = vpop.f32.mrb[13].mxu1  ;;  %v2029_v46 = vpop.eup %2028  ;;  %2046 = vrcp.f32 %v964_v27  ;;  %v962_v47 = vadd.f32 1.0, %v2027_v36  ;;  %v2555_v8 = vadd.f32 %v2425_v42, %v674_v49  ;;  %v677_v61 = vmul.f32 %v1937_v7, %v2420_v40 }
 0x111   :  { %v2544_v50 = vpop.f32.mrb[14].mxu0  ;;  %v2546_v51 = vpop.f32.mrb[14].mxu1  ;;  %2048 = vrcp.f32 %v996_v39  ;;  %v994_v54 = vadd.f32 1.0, %v2029_v46  ;;  %v643_v9 = vmul.f32 %v2420_v40, %v407_v12  ;;  %v2559_v15 = vmul.f32 1.442695, %v777_v57 }
 0x112   :  { %v2550_v62 = vpop.f32.mrb[15].mxu0  ;;  %v2552_v2 = vpop.f32.mrb[15].mxu1  ;;  %2050 = vrcp.f32 %v962_v47  ;;  %v2562_v6 = vadd.f32 %v2425_v42, %v645_v60  ;;  %v809_v19 = vsub.f32 0.0, %v2555_v8  ;;  %v2567_v20 = vadd.f32 %v2425_v42, %v677_v61 }
 0x113   :  { %v2031_v3 = vpop.eup %2030  ;;  %2052 = vrcp.f32 %v994_v54  ;;  %v2571_v23 = vadd.f32 %v2425_v42, %v643_v9  ;;  %v675_v9 = vmul.f32 %v2420_v40, %v2512_v13 }
 0x114   :  { %v2033_v11 = vpop.eup %2032  ;;  %v967_v14 = vadd.f32 1.0, %v2031_v3  ;;  %2054 = vpow2.f32 %v2498_v55  ;;  %v780_v22 = vsub.f32 0.0, %v2562_v6  ;;  %v913_v27 = vmul.f32 1.442695, %v809_v19 }
 0x115   :  { %v2035_v16 = vpop.eup %2034  ;;  %v999_v18 = vadd.f32 1.0, %v2033_v11  ;;  %v812_v30 = vsub.f32 0.0, %v2567_v20  ;;  %v2574_v55 = vpop.f32.mrb[16].mxu0  ;;  %v778_v49 = vsub.f32 0.0, %v2571_v23 }
 0x116   :  { %v2037_v7 = vpop.eup %2036  ;;  %2056 = vrcp.f32 %v967_v14  ;;  %v965_v12 = vadd.f32 1.0, %v2035_v16  ;;  %v2576_v36 = vpop.f32.mrb[16].mxu1  ;;  %v855_v47 = vmul.f32 1.442695, %v780_v22  ;;  %v2606_v22 = vadd.f32 %v2425_v42, %v675_v9 }
 0x117   :  { %v2039_v25 = vpop.eup %2038  ;;  %2058 = vrcp.f32 %v999_v18  ;;  %v997_v26 = vadd.f32 1.0, %v2037_v7  ;;  %v2580_v54 = vpop.f32.mrb[17].mxu0  ;;  %v2585_v61 = vmul.f32 1.442695, %v812_v30  ;;  %v2595_v18 = vmul.f32 1.442695, %v778_v49 }
 0x118   :  { %v2041_v39 = vpop.eup %2040  ;;  %v1091_v46 = vmul.f32 %v2039_v25, %v2432_v52  ;;  %2060 = vrcp.f32 %v965_v12  ;;  %v2582_v57 = vpop.f32.mrb[17].mxu1  ;;  %v810_v30 = vsub.f32 0.0, %v2606_v22 }
 0x119   :  { %v2043_v60 = vpop.eup %2042  ;;  %v1123_v3 = vmul.f32 %v2041_v39, %v2435_v53  ;;  %2062 = vrcp.f32 %v997_v26  ;;  %v2589_v11 = vpop.f32.mrb[18].mxu0  ;;  %v648_v53 = vmul.f32 %v2528_v31, %v2420_v40  ;;  %v646_v26 = vmul.f32 %v2420_v40, %v2537_v44 }
 0x11a   :  { %v2591_v52 = vpop.f32.mrb[18].mxu1  ;;  %v2045_v14 = vpop.eup %2044  ;;  %v1089_v16 = vmul.f32 %v2043_v60, %v2440_v58  ;;  %2064 = vpow2.f32 %v2500_v56  ;;  %v680_v58 = vmul.f32 %v2530_v32, %v2420_v40 }
 0x11b   :  { %v2599_v19 = vpop.f32.mrb[19].mxu0  ;;  %v2601_v7 = vpop.f32.mrb[19].mxu1  ;;  %v1121_v13 = vmul.f32 %v2045_v14, %v2443_v59  ;;  %2066 = vpow2.f32 %v2522_v24  ;;  %v2613_v31 = vadd.f32 %v2425_v42, %v648_v53 }
 0x11c   :  { %v2047_v12 = vpop.eup %2046  ;;  %2068 = vpow2.f32 %v2525_v29  ;;  %v2621_v32 = vadd.f32 %v2425_v42, %v680_v58 }
 0x11d   :  { %v2049_v56 = vpop.eup %2048  ;;  %v1092_v25 = vmul.f32 %v2047_v12, %v2450_v0  ;;  %2070 = vpow2.f32 %v2532_v41  ;;  %v783_v49 = vsub.f32 0.0, %v2613_v31  ;;  %v2628_v41 = vpop.f32.mrb[20].mxu0 }
 0x11e   :  { %v2051_v59 = vpop.eup %2050  ;;  %v1124_v24 = vmul.f32 %v2049_v56, %v2453_v1  ;;  %2072 = vpow2.f32 %v2541_v48  ;;  %v915_v1 = vmul.f32 1.442695, %v810_v30  ;;  %v2630_v14 = vpop.f32.mrb[20].mxu1  ;;  %v815_v56 = vsub.f32 0.0, %v2621_v32 }
 0x11f   :  { %v2053_v39 = vpop.eup %2052  ;;  %v1655_v0 = vpack.c.bf16 %v1092_v25, %v1091_v46  ;;  %v1090_v29 = vmul.f32 %v2051_v59, %v2458_v4  ;;  %2074 = vpow2.f32 %v2559_v15  ;;  %v861_v46 = vmul.f32 1.442695, %v783_v49  ;;  %v2635_v12 = vpop.f32.mrb[21].mxu0 }
 0x120   :  { %v2055_v60 = vpop.eup %2054  ;;  %v1735_v44 = vpack.c.bf16 %v1124_v24, %v1123_v3  ;;  %v1122_v9 = vmul.f32 %v2053_v39, %v2461_v5  ;;  %2076 = vpow2.f32 %v913_v27  ;;  %v2637_v3 = vpop.f32.mrb[21].mxu1 }
 0x121   :  { %v2057_v53 = vpop.eup %2056  ;;  %1807 = vst [vmem:[%s3107_s4 + $0x8] sm:$0xff] %v1655_v0   ;;  %v1650_v4 = vpack.c.bf16 %v1090_v29, %v1089_v16  ;;  %v968_v48 = vadd.f32 1.0, %v2055_v60  ;;  %2078 = vpow2.f32 %v855_v47  ;;  %v2646_v16 = vpop.f32.mrb[22].mxu0 }
 0x122   :  { %v2059_v5 = vpop.eup %2058  ;;  %1823 = vst [vmem:[%s3107_s4 + $0x88] sm:$0xff] %v1735_v44   ;;  %v1730_v15 = vpack.c.bf16 %v1122_v9, %v1121_v13  ;;  %v2643_v58 = vmul.f32 %v2057_v53, %v2472_v28  ;;  %v2648_v27 = vpop.f32.mrb[22].mxu1  ;;  %v2657_v13 = vadd.f32 %v2425_v42, %v646_v26  ;;  %v678_v28 = vmul.f32 %v2420_v40, %v2539_v45 }
 0x123   :  { %v2061_v25 = vpop.eup %2060  ;;  %1651 = vst [vmem:[%s3107_s4] sm:$0xff] %v1650_v4   ;;  %v2654_v59 = vmul.f32 %v2059_v5, %v2477_v33  ;;  %2080 = vrcp.f32 %v968_v48  ;;  %v2661_v47 = vpop.f32.mrb[23].mxu0  ;;  %v2672_v33 = vmul.f32 1.442695, %v815_v56  ;;  %v649_v26 = vmul.f32 %v2544_v50, %v2420_v40 }
 0x124   :  { %v2663_v24 = vpop.f32.mrb[23].mxu1  ;;  %v2063_v30 = vpop.eup %2062  ;;  %1822 = vst [vmem:[%s3107_s4 + $0x80] sm:$0xff] %v1730_v15   ;;  %v2669_v39 = vmul.f32 %v2061_v25, %v2480_v34  ;;  %2082 = vpow2.f32 %v2585_v61  ;;  %v781_v29 = vsub.f32 0.0, %v2657_v13  ;;  %v2682_v49 = vadd.f32 %v2425_v42, %v678_v28 }
 0x125   :  { %v2065_v45 = vpop.eup %2064  ;;  %v2677_v0 = vmul.f32 %v2063_v30, %v2483_v35  ;;  %2084 = vpow2.f32 %v2595_v18  ;;  %v2685_v61 = vadd.f32 %v2425_v42, %v649_v26  ;;  %v681_v50 = vmul.f32 %v2546_v51, %v2420_v40  ;;  %v2696_v5 = vpop.f32.mrb[24].mxu0 }
 0x126   :  { %v2067_v34 = vpop.eup %2066  ;;  %v1000_v60 = vadd.f32 1.0, %v2065_v45  ;;  %2086 = vpow2.f32 %v915_v1  ;;  %v2689_v35 = vmul.f32 1.442695, %v781_v29  ;;  %v813_v18 = vsub.f32 0.0, %v2682_v49  ;;  %v2698_v15 = vpop.f32.mrb[24].mxu1 }
 0x127   :  { %v2069_v44 = vpop.eup %2068  ;;  %v966_v9 = vadd.f32 1.0, %v2067_v34  ;;  %2088 = vpow2.f32 %v861_v46  ;;  %v784_v48 = vsub.f32 0.0, %v2685_v61  ;;  %v2694_v1 = vadd.f32 %v2425_v42, %v681_v50  ;;  %3108 = vst [vmem:[#allocation2_spill] sm:$0xff] %v2698_v15  ;;  %v2704_v28 = vpop.f32.mrb[25].mxu0 }
 0x128   :  { %v2071_v53 = vpop.eup %2070  ;;  %2090 = vrcp.f32 %v1000_v60  ;;  %v998_v4 = vadd.f32 1.0, %v2069_v44  ;;  %v2700_v46 = vmul.f32 1.442695, %v813_v18  ;;  %v647_v25 = vmul.f32 %v2420_v40, %v2550_v62  ;;  %3109 = vst [vmem:[#allocation3_spill] sm:$0xff] %v2704_v28  ;;  %v2706_v30 = vpop.f32.mrb[25].mxu1 }
 0x129   :  { %v2073_v51 = vpop.eup %2072  ;;  %2092 = vrcp.f32 %v966_v9  ;;  %v971_v56 = vadd.f32 1.0, %v2071_v53  ;;  %3110 = vst [vmem:[#allocation4_spill] sm:$0xff] %v2706_v30  ;;  %v2708_v29 = vmul.f32 1.442695, %v784_v48  ;;  %v816_v34 = vsub.f32 0.0, %v2694_v1  ;;  %v2711_v60 = vpop.f32.mrb[26].mxu0 }
 0x12a   :  { %v2075_v26 = vpop.eup %2074  ;;  %2094 = vrcp.f32 %v998_v4  ;;  %v1003_v45 = vadd.f32 1.0, %v2073_v51  ;;  %3111 = vst [vmem:[#allocation5_spill] sm:$0xff] %v2711_v60  ;;  %v2713_v50 = vpop.f32.mrb[26].mxu1  ;;  %v2716_v62 = vadd.f32 %v2425_v42, %v647_v25  ;;  %v679_v18 = vmul.f32 %v2420_v40, %v2552_v2 }
 0x12b   :  { %3112 = vst [vmem:[#allocation6_spill] sm:$0xff] %v2713_v50  ;;  %v2077_v44 = vpop.eup %2076  ;;  %2096 = vrcp.f32 %v971_v56  ;;  %v969_v9 = vadd.f32 1.0, %v2075_v26  ;;  %v2720_v53 = vpop.f32.mrb[27].mxu0  ;;  %v2724_v30 = vmul.f32 1.442695, %v816_v34  ;;  %v652_v50 = vmul.f32 %v2574_v55, %v2420_v40 }
 0x12c   :  { %3113 = vst [vmem:[#allocation7_spill] sm:$0xff] %v2720_v53  ;;  %v2722_v4 = vpop.f32.mrb[27].mxu1  ;;  %v2079_v48 = vpop.eup %2078  ;;  %2098 = vrcp.f32 %v1003_v45  ;;  %v1001_v51 = vadd.f32 1.0, %v2077_v44  ;;  %v782_v25 = vsub.f32 0.0, %v2716_v62  ;;  %v2730_v60 = vadd.f32 %v2425_v42, %v679_v18 }
 0x12d   :  { %3114 = vst [vmem:[#allocation8_spill] sm:$0xff] %v2722_v4  ;;  %v2081_v56 = vpop.eup %2080  ;;  %2100 = vrcp.f32 %v969_v9  ;;  %v972_v26 = vadd.f32 1.0, %v2079_v48  ;;  %v2734_v45 = vadd.f32 %v2425_v42, %v652_v50  ;;  %v684_v34 = vmul.f32 %v2576_v36, %v2420_v40  ;;  %v2744_v50 = vpop.f32.mrb[28].mxu1 }
 0x12e   :  { %v2083_v2 = vpop.eup %2082  ;;  %v1096_v53 = vmul.f32 %v2081_v56, %v2487_v37  ;;  %2102 = vrcp.f32 %v1001_v51  ;;  %v859_v9 = vmul.f32 1.442695, %v782_v25  ;;  %v814_v48 = vsub.f32 0.0, %v2730_v60  ;;  %v2742_v51 = vpop.f32.mrb[28].mxu0 }
 0x12f   :  { %v2085_v44 = vpop.eup %2084  ;;  %2104 = vrcp.f32 %v972_v26  ;;  %v1004_v55 = vadd.f32 1.0, %v2083_v2  ;;  %v787_v37 = vsub.f32 0.0, %v2734_v45  ;;  %v2747_v25 = vadd.f32 %v2425_v42, %v684_v34  ;;  %v2749_v2 = vpop.f32.mrb[29].mxu0 }
 0x130   :  { %v2087_v4 = vpop.eup %2086  ;;  %v1665_v18 = vpack.c.bf16 %v1096_v53, %v2643_v58  ;;  %v970_v28 = vadd.f32 1.0, %v2085_v44  ;;  %2106 = vpow2.f32 %v2672_v33  ;;  %v923_v26 = vmul.f32 1.442695, %v814_v48  ;;  %3115 = vst [vmem:[#allocation9_spill] sm:$0xff] %v2749_v2  ;;  %v2751_v15 = vpop.f32.mrb[29].mxu1 }
 0x131   :  { %v2089_v56 = vpop.eup %2088  ;;  %2108 = vrcp.f32 %v1004_v55  ;;  %v1002_v36 = vadd.f32 1.0, %v2087_v4  ;;  %3116 = vst [vmem:[#allocation10_spill] sm:$0xff] %v2751_v15  ;;  %v869_v53 = vmul.f32 1.442695, %v787_v37  ;;  %v650_v44 = vmul.f32 %v2420_v40, %v2580_v54  ;;  %v2758_v4 = vpop.f32.mrb[30].mxu0 }
 0x132   :  { %v2091_v58 = vpop.eup %2090  ;;  %1809 = vst [vmem:[%s3107_s4 + $0x18] sm:$0xff] %v1665_v18   ;;  %2110 = vrcp.f32 %v970_v28  ;;  %v975_v33 = vadd.f32 1.0, %v2089_v56  ;;  %v2760_v55 = vpop.f32.mrb[30].mxu1  ;;  %v819_v15 = vsub.f32 0.0, %v2747_v25  ;;  %v682_v2 = vmul.f32 %v2420_v40, %v2582_v57 }
 0x133   :  { %3117 = vst [vmem:[#allocation11_spill] sm:$0xff] %v2760_v55  ;;  %v2093_v34 = vpop.eup %2092  ;;  %v1128_v48 = vmul.f32 %v2091_v58, %v2490_v38  ;;  %2112 = vrcp.f32 %v1002_v36  ;;  %v2766_v18 = vpop.f32.mrb[31].mxu0  ;;  %v2772_v56 = vadd.f32 %v2425_v42, %v650_v44  ;;  %v653_v38 = vmul.f32 %v2589_v11, %v2420_v40 }
 0x134   :  { %3118 = vst [vmem:[#allocation12_spill] sm:$0xff] %v2766_v18  ;;  %v2768_v28 = vpop.f32.mrb[31].mxu1  ;;  %v2095_v37 = vpop.eup %2094  ;;  %v1094_v54 = vmul.f32 %v2093_v34, %v2504_v63  ;;  %2114 = vrcp.f32 %v975_v33  ;;  %v933_v57 = vmul.f32 1.442695, %v819_v15 }
 0x135   :  { %3119 = vst [vmem:[#allocation13_spill] sm:$0xff] %v2768_v28  ;;  %v2097_v36 = vpop.eup %2096  ;;  %v1745_v58 = vpack.c.bf16 %v1128_v48, %v2654_v59  ;;  %v1126_v55 = vmul.f32 %v2095_v37, %v2509_v10  ;;  %2116 = vpow2.f32 %v2689_v35  ;;  %v785_v33 = vsub.f32 0.0, %v2772_v56 }
 0x136   :  { %v2099_v18 = vpop.eup %2098  ;;  %v1660_v28 = vpack.c.bf16 %v1094_v54, %v2669_v39  ;;  %v1099_v63 = vmul.f32 %v2097_v36, %v2516_v17  ;;  %2118 = vpow2.f32 %v2700_v46  ;;  %v2790_v59 = vadd.f32 %v2425_v42, %v682_v2 }
 0x137   :  { %v2101_v44 = vpop.eup %2100  ;;  %1825 = vst [vmem:[%s3107_s4 + $0x98] sm:$0xff] %v1745_v58   ;;  %v1740_v11 = vpack.c.bf16 %v1126_v55, %v2677_v0  ;;  %v1131_v10 = vmul.f32 %v2099_v18, %v2520_v21  ;;  %2120 = vpow2.f32 %v2708_v29  ;;  %v865_v35 = vmul.f32 1.442695, %v785_v33 }
 0x138   :  { %v2103_v39 = vpop.eup %2102  ;;  %1808 = vst [vmem:[%s3107_s4 + $0x10] sm:$0xff] %v1660_v28   ;;  %v1097_v17 = vmul.f32 %v2101_v44, %v2535_v43  ;;  %2122 = vpow2.f32 %v2724_v30  ;;  %v2798_v15 = vadd.f32 %v2425_v42, %v653_v38  ;;  %v817_v46 = vsub.f32 0.0, %v2790_v59 }
 0x139   :  { %v2105_v0 = vpop.eup %2104  ;;  %1824 = vst [vmem:[%s3107_s4 + $0x90] sm:$0xff] %v1740_v11   ;;  %v1129_v21 = vmul.f32 %v2103_v39, %v2555_v8  ;;  %2124 = vpow2.f32 %v859_v9  ;;  %v685_v29 = vmul.f32 %v2591_v52, %v2420_v40  ;;  %v651_v55 = vmul.f32 %v2420_v40, %v2599_v19 }
 0x13a   :  { %v2107_v43 = vpop.eup %2106  ;;  %v1100_v30 = vmul.f32 %v2105_v0, %v2562_v6  ;;  %2126 = vpow2.f32 %v923_v26  ;;  %v788_v2 = vsub.f32 0.0, %v2798_v15  ;;  %v929_v18 = vmul.f32 1.442695, %v817_v46 }
 0x13b   :  { %v2109_v34 = vpop.eup %2108  ;;  %v1007_v48 = vadd.f32 1.0, %v2107_v43  ;;  %2128 = vpow2.f32 %v869_v53  ;;  %v2812_v8 = vadd.f32 %v2425_v42, %v685_v29  ;;  %v2818_v19 = vadd.f32 %v2425_v42, %v651_v55 }
 0x13c   :  { %v2111_v9 = vpop.eup %2110  ;;  %v1675_v28 = vpack.c.bf16 %v1100_v30, %v1099_v63  ;;  %v1132_v52 = vmul.f32 %v2109_v34, %v2567_v20  ;;  %2130 = vpow2.f32 %v933_v57  ;;  %v871_v37 = vmul.f32 1.442695, %v788_v2 }
 0x13d   :  { %v2113_v6 = vpop.eup %2112  ;;  %v1098_v26 = vmul.f32 %v2111_v9, %v2571_v23  ;;  %2132 = vrcp.f32 %v1007_v48  ;;  %v820_v54 = vsub.f32 0.0, %v2812_v8  ;;  %v683_v20 = vmul.f32 %v2420_v40, %v2601_v7 }
 0x13e   :  { %v2115_v53 = vpop.eup %2114  ;;  %1811 = vst [vmem:[%s3107_s4 + $0x28] sm:$0xff] %v1675_v28   ;;  %v1755_v38 = vpack.c.bf16 %v1132_v52, %v1131_v10  ;;  %v1130_v36 = vmul.f32 %v2113_v6, %v2606_v22  ;;  %2134 = vpow2.f32 %v865_v35  ;;  %v786_v22 = vsub.f32 0.0, %v2818_v19 }
 0x13f   :  { %v2117_v58 = vpop.eup %2116  ;;  %v1670_v23 = vpack.c.bf16 %v1098_v26, %v1097_v17  ;;  %v2827_v57 = vmul.f32 %v2115_v53, %v2613_v31  ;;  %2136 = vpow2.f32 %v929_v18  ;;  %v935_v63 = vmul.f32 1.442695, %v820_v54 }
 0x140   :  { %v2119_v33 = vpop.eup %2118  ;;  %1827 = vst [vmem:[%s3107_s4 + $0xa8] sm:$0xff] %v1755_v38   ;;  %v1750_v44 = vpack.c.bf16 %v1130_v36, %v1129_v21  ;;  %v973_v11 = vadd.f32 1.0, %v2117_v58  ;;  %2138 = vpow2.f32 %v871_v37  ;;  %v2837_v31 = vadd.f32 %v2425_v42, %v683_v20 }
 0x141   :  { %v2121_v10 = vpop.eup %2120  ;;  %1810 = vst [vmem:[%s3107_s4 + $0x20] sm:$0xff] %v1670_v23   ;;  %v1005_v7 = vadd.f32 1.0, %v2119_v33  ;;  %2140 = vpow2.f32 %v935_v63  ;;  %v656_v39 = vmul.f32 %v2628_v41, %v2420_v40  ;;  %v867_v0 = vmul.f32 1.442695, %v786_v22 }
 0x142   :  { %v2123_v17 = vpop.eup %2122  ;;  %1826 = vst [vmem:[%s3107_s4 + $0xa0] sm:$0xff] %v1750_v44   ;;  %2142 = vrcp.f32 %v973_v11  ;;  %v976_v35 = vadd.f32 1.0, %v2121_v10  ;;  %v688_v21 = vmul.f32 %v2630_v14, %v2420_v40  ;;  %v818_v43 = vsub.f32 0.0, %v2837_v31 }
 0x143   :  { %v2125_v46 = vpop.eup %2124  ;;  %2144 = vrcp.f32 %v1005_v7  ;;  %v1008_v29 = vadd.f32 1.0, %v2123_v17  ;;  %v2848_v30 = vadd.f32 %v2425_v42, %v656_v39  ;;  %v654_v34 = vmul.f32 %v2420_v40, %v2635_v12 }
 0x144   :  { %v2127_v41 = vpop.eup %2126  ;;  %2146 = vrcp.f32 %v976_v35  ;;  %v974_v2 = vadd.f32 1.0, %v2125_v46  ;;  %v2851_v55 = vadd.f32 %v2425_v42, %v688_v21  ;;  %v931_v18 = vmul.f32 1.442695, %v818_v43 }
 0x145   :  { %v2129_v48 = vpop.eup %2128  ;;  %2148 = vrcp.f32 %v1008_v29  ;;  %v1006_v14 = vadd.f32 1.0, %v2127_v41  ;;  %v791_v9 = vsub.f32 0.0, %v2848_v30  ;;  %v2858_v6 = vadd.f32 %v2425_v42, %v654_v34 }
 0x146   :  { %v2131_v28 = vpop.eup %2130  ;;  %2150 = vrcp.f32 %v974_v2  ;;  %v979_v52 = vadd.f32 1.0, %v2129_v48  ;;  %v823_v37 = vsub.f32 0.0, %v2851_v55  ;;  %v686_v12 = vmul.f32 %v2420_v40, %v2637_v3 }
 0x147   :  { %v2133_v26 = vpop.eup %2132  ;;  %2152 = vrcp.f32 %v1006_v14  ;;  %v1011_v54 = vadd.f32 1.0, %v2131_v28  ;;  %v877_v53 = vmul.f32 1.442695, %v791_v9  ;;  %v789_v58 = vsub.f32 0.0, %v2858_v6 }
 0x148   :  { %v2135_v38 = vpop.eup %2134  ;;  %v1135_v36 = vmul.f32 %v2133_v26, %v2621_v32  ;;  %2154 = vrcp.f32 %v979_v52  ;;  %v941_v20 = vmul.f32 1.442695, %v823_v37  ;;  %v2865_v33 = vadd.f32 %v2425_v42, %v686_v12 }
 0x149   :  { %v2137_v23 = vpop.eup %2136  ;;  %2156 = vrcp.f32 %v1011_v54  ;;  %v977_v63 = vadd.f32 1.0, %v2135_v38  ;;  %v657_v44 = vmul.f32 %v2646_v16, %v2420_v40  ;;  %v873_v3 = vmul.f32 1.442695, %v789_v58 }
 0x14a   :  { %v2139_v11 = vpop.eup %2138  ;;  %v1009_v22 = vadd.f32 1.0, %v2137_v23  ;;  %2158 = vpow2.f32 %v867_v0  ;;  %v689_v32 = vmul.f32 %v2648_v27, %v2420_v40  ;;  %v821_v39 = vsub.f32 0.0, %v2865_v33 }
 0x14b   :  { %v2141_v10 = vpop.eup %2140  ;;  %2160 = vrcp.f32 %v977_v63  ;;  %v980_v7 = vadd.f32 1.0, %v2139_v11  ;;  %v2873_v17 = vadd.f32 %v2425_v42, %v657_v44  ;;  %v655_v0 = vmul.f32 %v2420_v40, %v2661_v47  ;;  %v3120_v44 = vld [vmem:[#allocation2_spill] sm:$0xff] }
 0x14c   :  { %v2143_v35 = vpop.eup %2142  ;;  %2162 = vrcp.f32 %v1009_v22  ;;  %v1012_v21 = vadd.f32 1.0, %v2141_v10  ;;  %v2876_v16 = vadd.f32 %v2425_v42, %v689_v32  ;;  %v937_v29 = vmul.f32 1.442695, %v821_v39  ;;  %v3121_v32 = vld [vmem:[#allocation3_spill] sm:$0xff] }
 0x14d   :  { %v2145_v46 = vpop.eup %2144  ;;  %v1101_v27 = vmul.f32 %v2143_v35, %v2657_v13  ;;  %2164 = vrcp.f32 %v980_v7  ;;  %v792_v43 = vsub.f32 0.0, %v2873_v17  ;;  %v2885_v48 = vadd.f32 %v2425_v42, %v655_v0 }
 0x14e   :  { %v2147_v41 = vpop.eup %2146  ;;  %v1133_v2 = vmul.f32 %v2145_v46, %v2682_v49  ;;  %2166 = vrcp.f32 %v1012_v21  ;;  %v824_v34 = vsub.f32 0.0, %v2876_v16  ;;  %v687_v13 = vmul.f32 %v2420_v40, %v2663_v24 }
 0x14f   :  { %v2149_v14 = vpop.eup %2148  ;;  %v1104_v9 = vmul.f32 %v2147_v41, %v2685_v61  ;;  %2168 = vpow2.f32 %v931_v18  ;;  %v879_v47 = vmul.f32 1.442695, %v792_v43  ;;  %v790_v49 = vsub.f32 0.0, %v2885_v48 }
 0x150   :  { %v2151_v28 = vpop.eup %2150  ;;  %v1136_v52 = vmul.f32 %v2149_v14, %v2694_v1  ;;  %2170 = vpow2.f32 %v877_v53  ;;  %v943_v37 = vmul.f32 1.442695, %v824_v34  ;;  %v2895_v61 = vadd.f32 %v2425_v42, %v687_v13  ;;  %v3123_v34 = vld [vmem:[#allocation5_spill] sm:$0xff] }
 0x151   :  { %v2153_v26 = vpop.eup %2152  ;;  %v1685_v54 = vpack.c.bf16 %v1104_v9, %v2827_v57  ;;  %v1102_v12 = vmul.f32 %v2151_v28, %v2716_v62  ;;  %2172 = vpow2.f32 %v941_v20  ;;  %v875_v24 = vmul.f32 1.442695, %v790_v49 }
 0x152   :  { %v2155_v18 = vpop.eup %2154  ;;  %v1765_v38 = vpack.c.bf16 %v1136_v52, %v1135_v36  ;;  %v1134_v40 = vmul.f32 %v2153_v26, %v2730_v60  ;;  %2174 = vpow2.f32 %v873_v3  ;;  %v822_v57 = vsub.f32 0.0, %v2895_v61  ;;  %v2909_v60 = vld [vmem:[%s3105_s2] ss:$0 sm:$0xff] }
 0x153   :  { %v2157_v1 = vpop.eup %2156  ;;  %1813 = vst [vmem:[%s3107_s4 + $0x38] sm:$0xff] %v1685_v54   ;;  %v1680_v53 = vpack.c.bf16 %v1102_v12, %v1101_v27  ;;  %2176 = vpow2.f32 %v937_v29  ;;  %v1107_v36 = vmul.f32 %v2155_v18, %v2734_v45  ;;  %v660_v20 = vmul.f32 %v2909_v60, %v2696_v5  ;;  %v2925_v5 = vld [vmem:[%s3106_s3] ss:$0 sm:$0xff] }
 0x154   :  { %v2159_v62 = vpop.eup %2158  ;;  %1829 = vst [vmem:[%s3107_s4 + $0xb8] sm:$0xff] %v1765_v38   ;;  %v1760_v42 = vpack.c.bf16 %v1134_v40, %v1133_v2  ;;  %2178 = vpow2.f32 %v879_v47  ;;  %v939_v63 = vmul.f32 1.442695, %v822_v57  ;;  %v692_v45 = vmul.f32 %v2909_v60, %v3120_v44  ;;  %v3126_v44 = vld [vmem:[#allocation8_spill] sm:$0xff] }
 0x155   :  { %v2161_v58 = vpop.eup %2160  ;;  %1812 = vst [vmem:[%s3107_s4 + $0x30] sm:$0xff] %v1680_v53   ;;  %v978_v23 = vadd.f32 1.0, %v2159_v62  ;;  %2180 = vpow2.f32 %v943_v37  ;;  %v1139_v22 = vmul.f32 %v2157_v1, %v2747_v25  ;;  %v2928_v3 = vadd.f32 %v2925_v5, %v660_v20  ;;  %v3122_v25 = vld [vmem:[#allocation4_spill] sm:$0xff]  ;;  %v3124_v1 = vld [vmem:[#allocation6_spill] sm:$0xff] }
 0x156   :  { %v2163_v11 = vpop.eup %2162  ;;  %1828 = vst [vmem:[%s3107_s4 + $0xb0] sm:$0xff] %v1760_v42   ;;  %2182 = vpow2.f32 %v875_v24  ;;  %v658_v10 = vmul.f32 %v2909_v60, %v3121_v32  ;;  %v2933_v39 = vmul.f32 %v2161_v58, %v2772_v56  ;;  %v2936_v35 = vadd.f32 %v2925_v5, %v692_v45 }
 0x157   :  { %v2165_v7 = vpop.eup %2164  ;;  %2184 = vrcp.f32 %v978_v23  ;;  %v690_v21 = vmul.f32 %v2909_v60, %v3122_v25  ;;  %v795_v27 = vsub.f32 0.0, %v2928_v3  ;;  %v661_v14 = vmul.f32 %v2909_v60, %v3123_v34 }
 0x158   :  { %v2167_v0 = vpop.eup %2166  ;;  %v1108_v46 = vmul.f32 %v2165_v7, %v2798_v15  ;;  %2186 = vpow2.f32 %v939_v63  ;;  %v2943_v29 = vadd.f32 %v2925_v5, %v658_v10  ;;  %v827_v41 = vsub.f32 0.0, %v2936_v35 }
 0x159   :  { %v2169_v43 = vpop.eup %2168  ;;  %v1140_v56 = vmul.f32 %v2167_v0, %v2812_v8  ;;  %v2948_v2 = vadd.f32 %v2925_v5, %v690_v21  ;;  %v2953_v15 = vmul.f32 %v2163_v11, %v2790_v59  ;;  %v885_v8 = vmul.f32 1.442695, %v795_v27 }
 0x15a   :  { %v2171_v9 = vpop.eup %2170  ;;  %v1695_v47 = vpack.c.bf16 %v1108_v46, %v1107_v36  ;;  %v1010_v13 = vadd.f32 1.0, %v2169_v43  ;;  %v793_v28 = vsub.f32 0.0, %v2943_v29  ;;  %v949_v26 = vmul.f32 1.442695, %v827_v41  ;;  %v3125_v36 = vld [vmem:[#allocation7_spill] sm:$0xff] }
 0x15b   :  { %v2173_v52 = vpop.eup %2172  ;;  %v1775_v37 = vpack.c.bf16 %v1140_v56, %v1139_v22  ;;  %v983_v49 = vadd.f32 1.0, %v2171_v9  ;;  %v825_v18 = vsub.f32 0.0, %v2948_v2  ;;  %v2961_v59 = vadd.f32 %v2925_v5, %v661_v14 }
 0x15c   :  { %v2175_v54 = vpop.eup %2174  ;;  %1815 = vst [vmem:[%s3107_s4 + $0x48] sm:$0xff] %v1695_v47   ;;  %2188 = vrcp.f32 %v1010_v13  ;;  %v1015_v12 = vadd.f32 1.0, %v2173_v52  ;;  %v881_v24 = vmul.f32 1.442695, %v793_v28  ;;  %v693_v53 = vmul.f32 %v2909_v60, %v3124_v1  ;;  %v3127_v52 = vld [vmem:[#allocation9_spill] sm:$0xff] }
 0x15d   :  { %v2177_v38 = vpop.eup %2176  ;;  %1831 = vst [vmem:[%s3107_s4 + $0xc8] sm:$0xff] %v1775_v37   ;;  %2190 = vrcp.f32 %v983_v49  ;;  %v981_v40 = vadd.f32 1.0, %v2175_v54  ;;  %v796_v42 = vsub.f32 0.0, %v2961_v59  ;;  %v659_v20 = vmul.f32 %v2909_v60, %v3125_v36  ;;  %v3128_v49 = vld [vmem:[#allocation10_spill] sm:$0xff] }
 0x15e   :  { %v2179_v57 = vpop.eup %2178  ;;  %2192 = vrcp.f32 %v1015_v12  ;;  %v1013_v62 = vadd.f32 1.0, %v2177_v38  ;;  %v2972_v63 = vadd.f32 %v2925_v5, %v693_v53  ;;  %v691_v45 = vmul.f32 %v2909_v60, %v3126_v44 }
 0x15f   :  { %v2181_v58 = vpop.eup %2180  ;;  %2194 = vrcp.f32 %v981_v40  ;;  %v984_v23 = vadd.f32 1.0, %v2179_v57  ;;  %v945_v32 = vmul.f32 1.442695, %v825_v18  ;;  %v2977_v10 = vadd.f32 %v2925_v5, %v659_v20 }
 0x160   :  { %v2183_v11 = vpop.eup %2182  ;;  %2196 = vrcp.f32 %v1013_v62  ;;  %v1016_v22 = vadd.f32 1.0, %v2181_v58  ;;  %v828_v21 = vsub.f32 0.0, %v2972_v63  ;;  %v2981_v0 = vadd.f32 %v2925_v5, %v691_v45 }
 0x161   :  { %v2185_v7 = vpop.eup %2184  ;;  %2198 = vrcp.f32 %v984_v23  ;;  %v982_v25 = vadd.f32 1.0, %v2183_v11  ;;  %v794_v43 = vsub.f32 0.0, %v2977_v10  ;;  %v664_v56 = vmul.f32 %v2909_v60, %v2742_v51 }
 0x162   :  { %v2187_v46 = vpop.eup %2186  ;;  %v1106_v27 = vmul.f32 %v2185_v7, %v2818_v19  ;;  %2200 = vrcp.f32 %v1016_v22  ;;  %v887_v34 = vmul.f32 1.442695, %v796_v42  ;;  %v951_v14 = vmul.f32 1.442695, %v828_v21 }
 0x163   :  { %2202 = vrcp.f32 %v982_v25  ;;  %v1014_v41 = vadd.f32 1.0, %v2187_v46  ;;  %v826_v47 = vsub.f32 0.0, %v2981_v0  ;;  %v2990_v13 = vadd.f32 %v2925_v5, %v664_v56 }
 0x164   :  { %v1690_v9 = vpack.c.bf16 %v1106_v27, %v2933_v39  ;;  %2204 = vpow2.f32 %v885_v8  ;;  %v883_v19 = vmul.f32 1.442695, %v794_v43  ;;  %v696_v28 = vmul.f32 %v2909_v60, %v2744_v50  ;;  %v3129_v27 = vld [vmem:[#allocation11_spill] sm:$0xff] }
 0x165   :  { %2206 = vrcp.f32 %v1014_v41  ;;  %v662_v51 = vmul.f32 %v2909_v60, %v3127_v52  ;;  %v799_v39 = vsub.f32 0.0, %v2990_v13  ;;  %v694_v8 = vmul.f32 %v2909_v60, %v3128_v49 }
 0x166   :  { %v2189_v37 = vpop.eup %2188  ;;  %1814 = vst [vmem:[%s3107_s4 + $0x40] sm:$0xff] %v1690_v9   ;;  %2208 = vpow2.f32 %v949_v26  ;;  %v665_v54 = vmul.f32 %v2909_v60, %v2758_v4  ;;  %v3006_v18 = vadd.f32 %v2925_v5, %v696_v28  ;;  %v947_v26 = vmul.f32 1.442695, %v826_v47  ;;  %v3131_v47 = vld [vmem:[#allocation13_spill] sm:$0xff] }
 0x167   :  { %v2191_v12 = vpop.eup %2190  ;;  %v1138_v50 = vmul.f32 %v2189_v37, %v2837_v31  ;;  %2210 = vpow2.f32 %v881_v24  ;;  %v3009_v38 = vadd.f32 %v2925_v5, %v662_v51  ;;  %v893_v57 = vmul.f32 1.442695, %v799_v39 }
 0x168   :  { %v2193_v40 = vpop.eup %2192  ;;  %2212 = vpow2.f32 %v945_v32  ;;  %v831_v4 = vsub.f32 0.0, %v3006_v18  ;;  %v1111_v31 = vmul.f32 %v2191_v12, %v2848_v30  ;;  %v3019_v20 = vadd.f32 %v2925_v5, %v694_v8 }
 0x169   :  { %v2195_v1 = vpop.eup %2194  ;;  %v1770_v53 = vpack.c.bf16 %v1138_v50, %v2953_v15  ;;  %2214 = vpow2.f32 %v887_v34  ;;  %v797_v24 = vsub.f32 0.0, %v3009_v38  ;;  %v3022_v15 = vadd.f32 %v2925_v5, %v665_v54 }
 0x16a   :  { %v2197_v62 = vpop.eup %2196  ;;  %2216 = vpow2.f32 %v951_v14  ;;  %v957_v36 = vmul.f32 1.442695, %v831_v4  ;;  %v1143_v23 = vmul.f32 %v2193_v40, %v2851_v55  ;;  %v1109_v11 = vmul.f32 %v2195_v1, %v2858_v6 }
 0x16b   :  { %v2199_v42 = vpop.eup %2198  ;;  %1830 = vst [vmem:[%s3107_s4 + $0xc0] sm:$0xff] %v1770_v53   ;;  %2218 = vpow2.f32 %v883_v19  ;;  %v889_v44 = vmul.f32 1.442695, %v797_v24  ;;  %v800_v32 = vsub.f32 0.0, %v3022_v15  ;;  %v1141_v25 = vmul.f32 %v2197_v62, %v2865_v33  ;;  %v3130_v33 = vld [vmem:[#allocation12_spill] sm:$0xff] }
 0x16c   :  { %v2201_v58 = vpop.eup %2200  ;;  %v1112_v30 = vmul.f32 %v2199_v42, %v2873_v17  ;;  %2220 = vpow2.f32 %v947_v26  ;;  %v697_v55 = vmul.f32 %v2909_v60, %v3129_v27  ;;  %v695_v19 = vmul.f32 %v2909_v60, %v3131_v47 }
 0x16d   :  { %v2203_v45 = vpop.eup %2202  ;;  %v1144_v22 = vmul.f32 %v2201_v58, %v2876_v16  ;;  %2222 = vpow2.f32 %v893_v57  ;;  %v895_v41 = vmul.f32 1.442695, %v800_v32  ;;  %v829_v49 = vsub.f32 0.0, %v3019_v20 }
 0x16e   :  { %v2205_v7 = vpop.eup %2204  ;;  %v1705_v21 = vpack.c.bf16 %v1112_v30, %v1111_v31  ;;  %v1110_v46 = vmul.f32 %v2203_v45, %v2885_v48  ;;  %2224 = vpow2.f32 %v957_v36  ;;  %v663_v48 = vmul.f32 %v2909_v60, %v3130_v33 }
 0x16f   :  { %v2207_v17 = vpop.eup %2206  ;;  %v1785_v43 = vpack.c.bf16 %v1144_v22, %v1143_v23  ;;  %v987_v56 = vadd.f32 1.0, %v2205_v7  ;;  %2226 = vpow2.f32 %v889_v44  ;;  %v3048_v51 = vadd.f32 %v2925_v5, %v697_v55 }
 0x170   :  { %v2209_v6 = vpop.eup %2208  ;;  %1817 = vst [vmem:[%s3107_s4 + $0x58] sm:$0xff] %v1705_v21   ;;  %v1700_v16 = vpack.c.bf16 %v1110_v46, %v1109_v11  ;;  %v1142_v34 = vmul.f32 %v2207_v17, %v2895_v61  ;;  %v3055_v54 = vadd.f32 %v2925_v5, %v663_v48  ;;  %v3058_v40 = vadd.f32 %v2925_v5, %v695_v19 }
 0x171   :  { %v2211_v14 = vpop.eup %2210  ;;  %1833 = vst [vmem:[%s3107_s4 + $0xd8] sm:$0xff] %v1785_v43   ;;  %2228 = vrcp.f32 %v987_v56  ;;  %v1019_v9 = vadd.f32 1.0, %v2209_v6  ;;  %v832_v53 = vsub.f32 0.0, %v3048_v51  ;;  %v953_v62 = vmul.f32 1.442695, %v829_v49 }
 0x172   :  { %v2213_v28 = vpop.eup %2212  ;;  %1816 = vst [vmem:[%s3107_s4 + $0x50] sm:$0xff] %v1700_v16   ;;  %v1780_v61 = vpack.c.bf16 %v1142_v34, %v1141_v25  ;;  %v985_v52 = vadd.f32 1.0, %v2211_v14  ;;  %2230 = vpow2.f32 %v895_v41  ;;  %v798_v31 = vsub.f32 0.0, %v3055_v54 }
 0x173   :  { %v2215_v37 = vpop.eup %2214  ;;  %2232 = vrcp.f32 %v1019_v9  ;;  %v1017_v39 = vadd.f32 1.0, %v2213_v28  ;;  %v830_v36 = vsub.f32 0.0, %v3058_v40  ;;  %v959_v5 = vmul.f32 1.442695, %v832_v53 }
 0x174   :  { %v2217_v8 = vpop.eup %2216  ;;  %1832 = vst [vmem:[%s3107_s4 + $0xd0] sm:$0xff] %v1780_v61   ;;  %2234 = vrcp.f32 %v985_v52  ;;  %v988_v60 = vadd.f32 1.0, %v2215_v37  ;;  %v891_v44 = vmul.f32 1.442695, %v798_v31 }
 0x175   :  { %v2219_v12 = vpop.eup %2218  ;;  %2236 = vrcp.f32 %v1017_v39  ;;  %v1020_v50 = vadd.f32 1.0, %v2217_v8  ;;  %v955_v22 = vmul.f32 1.442695, %v830_v36 }
 0x176   :  { %v2221_v26 = vpop.eup %2220  ;;  %2238 = vrcp.f32 %v988_v60  ;;  %v986_v1 = vadd.f32 1.0, %v2219_v12 }
 0x177   :  { %v2223_v57 = vpop.eup %2222  ;;  %2240 = vrcp.f32 %v1020_v50  ;;  %v1018_v4 = vadd.f32 1.0, %v2221_v26 }
 0x178   :  { %2242 = vrcp.f32 %v986_v1  ;;  %v2225_v24 = vpop.eup %2224  ;;  %v991_v42 = vadd.f32 1.0, %v2223_v57 }
 0x179   :  { %2244 = vrcp.f32 %v1018_v4  ;;  %v2227_v58 = vpop.eup %2226 }
 0x17a   :  { %2246 = vpow2.f32 %v953_v62 }
 0x17b   :  { %v2229_v23 = vpop.eup %2228  ;;  %2248 = vrcp.f32 %v991_v42 }
 0x17c   :  { %v2231_v30 = vpop.eup %2230  ;;  %2250 = vpow2.f32 %v959_v5  ;;  %v1115_v46 = vmul.f32 %v2229_v23, %v2928_v3 }
 0x17d   :  { %v2233_v45 = vpop.eup %2232  ;;  %v992_v11 = vadd.f32 1.0, %v2231_v30 }
 0x17e   :  { %v2235_v32 = vpop.eup %2234  ;;  %v1147_v17 = vmul.f32 %v2233_v45, %v2936_v35  ;;  %v1023_v35 = vadd.f32 1.0, %v2225_v24 }
 0x17f   :  { %v2237_v7 = vpop.eup %2236  ;;  %2252 = vrcp.f32 %v992_v11  ;;  %v1113_v41 = vmul.f32 %v2235_v32, %v2943_v29 }
 0x180   :  { %v2239_v25 = vpop.eup %2238  ;;  %2254 = vpow2.f32 %v891_v44  ;;  %v1145_v34 = vmul.f32 %v2237_v7, %v2948_v2 }
 0x181   :  { %v2241_v21 = vpop.eup %2240  ;;  %v1116_v27 = vmul.f32 %v2239_v25, %v2961_v59  ;;  %2256 = vpow2.f32 %v955_v22 }
 0x182   :  { %v2243_v55 = vpop.eup %2242  ;;  %v1148_v43 = vmul.f32 %v2241_v21, %v2972_v63  ;;  %v989_v63 = vadd.f32 1.0, %v2227_v58  ;;  %2258 = vrcp.f32 %v1023_v35 }
 0x183   :  { %v2245_v56 = vpop.eup %2244  ;;  %v1715_v6 = vpack.c.bf16 %v1116_v27, %v1115_v46  ;;  %v1114_v16 = vmul.f32 %v2243_v55, %v2977_v10 }
 0x184   :  { %v1795_v33 = vpack.c.bf16 %v1148_v43, %v1147_v17  ;;  %v1146_v48 = vmul.f32 %v2245_v56, %v2981_v0  ;;  %v2247_v3 = vpop.eup %2246  ;;  %2260 = vrcp.f32 %v989_v63 }
 0x185   :  { %1819 = vst [vmem:[%s3107_s4 + $0x68] sm:$0xff] %v1715_v6   ;;  %v1710_v59 = vpack.c.bf16 %v1114_v16, %v1113_v41  ;;  %v2249_v14 = vpop.eup %2248  ;;  %v1021_v10 = vadd.f32 1.0, %v2247_v3 }
 0x186   :  { %1835 = vst [vmem:[%s3107_s4 + $0xe8] sm:$0xff] %v1795_v33   ;;  %v1790_v29 = vpack.c.bf16 %v1146_v48, %v1145_v34  ;;  %v2251_v2 = vpop.eup %2250  ;;  %v1119_v19 = vmul.f32 %v2249_v14, %v2990_v13 }
 0x187   :  { %1818 = vst [vmem:[%s3107_s4 + $0x60] sm:$0xff] %v1710_v59   ;;  %v1024_v9 = vadd.f32 1.0, %v2251_v2 }
 0x188   :  { %1834 = vst [vmem:[%s3107_s4 + $0xe0] sm:$0xff] %v1790_v29  }
 0x189   :  { %v2253_v0 = vpop.eup %2252  ;;  %2262 = vrcp.f32 %v1024_v9 }
 0x18a   :  { %v2255_v47 = vpop.eup %2254  ;;  %v1120_v28 = vmul.f32 %v2253_v0, %v3022_v15  ;;  %2264 = vrcp.f32 %v1021_v10 }
 0x18b   :  { %v2257_v61 = vpop.eup %2256  ;;  %v990_v52 = vadd.f32 1.0, %v2255_v47 }
 0x18c   :  { %v1725_v37 = vpack.c.bf16 %v1120_v28, %v1119_v19  ;;  %v1022_v39 = vadd.f32 1.0, %v2257_v61  ;;  %v2259_v49 = vpop.eup %2258 }
 0x18d   :  { %2266 = vrcp.f32 %v990_v52  ;;  %v1151_v13 = vmul.f32 %v2259_v49, %v3006_v18 }
 0x18e   :  { %1821 = vst [vmem:[%s3107_s4 + $0x78] sm:$0xff] %v1725_v37   ;;  %2268 = vrcp.f32 %v1022_v39  ;;  %v2261_v8 = vpop.eup %2260 }
 0x18f   :  { %v1117_v1 = vmul.f32 %v2261_v8, %v3009_v38 }
 0x193   :  { %v2263_v60 = vpop.eup %2262 }
 0x194   :  { %v2265_v12 = vpop.eup %2264  ;;  %v1152_v15 = vmul.f32 %v2263_v60, %v3048_v51 }
 0x195   :  { %v1149_v4 = vmul.f32 %v2265_v12, %v3019_v20 }
 0x196   :  { %v1805_v53 = vpack.c.bf16 %v1152_v15, %v1151_v13 }
 0x197   :  { %v2267_v50 = vpop.eup %2266 }
 0x198   :  { %v2269_v26 = vpop.eup %2268  ;;  %v1118_v57 = vmul.f32 %v2267_v50, %v3055_v54  ;;  %1837 = vst [vmem:[%s3107_s4 + $0xf8] sm:$0xff] %v1805_v53  }
 0x199   :  { %v1150_v62 = vmul.f32 %v2269_v26, %v3058_v40 }
 0x19a   :  { %v1720_v31 = vpack.c.bf16 %v1118_v57, %v1117_v1 }
 0x19b   :  { %v1800_v24 = vpack.c.bf16 %v1150_v62, %v1149_v4 }
 0x19c   :  { %1820 = vst [vmem:[%s3107_s4 + $0x70] sm:$0xff] %v1720_v31  }
 0x19d   :  { %1836 = vst [vmem:[%s3107_s4 + $0xf0] sm:$0xff] %v1800_v24  }

// kernel: mp_forward.7
= control target key start
LH: loop header
LB: loop body
LE: loop exit
PB: predicated region body
PF: predicated region fallthrough
CT: control target
= control target key end

     0   :  { %s325_s0 = inlined_call_operand.vmem [shape: bf16[16,2,8,256], index: 0, kind: input, shape index: {}]   ;;  %s326_s1 = inlined_call_operand.vmem [shape: bf16[16,8,128], index: 1, kind: output, shape index: {}]  }
   0x1   :  { %v8_v0 = vld [vmem:[%s325_s0] sm:$0xff]  ;;  %v9_v1 = vld [vmem:[%s325_s0 + $0x8] sm:$0xff]  ;;  %v10_v2 = vld [vmem:[%s325_s0 + $0x10] sm:$0xff] }
   0x2   :  { %v11_v3 = vld [vmem:[%s325_s0 + $0x18] sm:$0xff]  ;;  %v40_v4 = vmax.bf16 %v9_v1, %v8_v0  ;;  %v12_v5 = vld [vmem:[%s325_s0 + $0x20] sm:$0xff]  ;;  %v13_v6 = vld [vmem:[%s325_s0 + $0x28] sm:$0xff] }
   0x3   :  { %v41_v7 = vmax.bf16 %v11_v3, %v10_v2  ;;  %v14_v8 = vld [vmem:[%s325_s0 + $0x30] sm:$0xff]  ;;  %v15_v9 = vld [vmem:[%s325_s0 + $0x38] sm:$0xff]  ;;  %v42_v10 = vmax.bf16 %v13_v6, %v12_v5  ;;  %v16_v11 = vld [vmem:[%s325_s0 + $0x40] sm:$0xff] }
   0x4   :  { %v72_v12 = vrot.slane %v40_v4, 4  ;;  %v43_v13 = vmax.bf16 %v15_v9, %v14_v8  ;;  %v17_v14 = vld [vmem:[%s325_s0 + $0x48] sm:$0xff]  ;;  %v18_v15 = vld [vmem:[%s325_s0 + $0x50] sm:$0xff]  ;;  %v19_v16 = vld [vmem:[%s325_s0 + $0x58] sm:$0xff] }
   0x5   :  { %v73_v17 = vrot.slane %v41_v7, 4  ;;  %v74_v18 = vrot.slane %v42_v10, 4  ;;  %v44_v19 = vmax.bf16 %v17_v14, %v16_v11  ;;  %v45_v20 = vmax.bf16 %v19_v16, %v18_v15  ;;  %v20_v21 = vld [vmem:[%s325_s0 + $0x60] sm:$0xff]  ;;  %v21_v22 = vld [vmem:[%s325_s0 + $0x68] sm:$0xff]  ;;  %v22_v23 = vld [vmem:[%s325_s0 + $0x70] sm:$0xff] }
   0x6   :  { %v104_v24 = vmax.bf16 %v72_v12, %v40_v4  ;;  %v75_v25 = vrot.slane %v43_v13, 4  ;;  %v23_v26 = vld [vmem:[%s325_s0 + $0x78] sm:$0xff]  ;;  %v46_v27 = vmax.bf16 %v21_v22, %v20_v21  ;;  %v24_v28 = vld [vmem:[%s325_s0 + $0x80] sm:$0xff]  ;;  %v25_v29 = vld [vmem:[%s325_s0 + $0x88] sm:$0xff] }
   0x7   :  { %v105_v30 = vmax.bf16 %v73_v17, %v41_v7  ;;  %v106_v31 = vmax.bf16 %v74_v18, %v42_v10  ;;  %v76_v32 = vrot.slane %v44_v19, 4  ;;  %v77_v33 = vrot.slane %v45_v20, 4  ;;  %v26_v34 = vld [vmem:[%s325_s0 + $0x90] sm:$0xff]  ;;  %v27_v35 = vld [vmem:[%s325_s0 + $0x98] sm:$0xff]  ;;  %v28_v36 = vld [vmem:[%s325_s0 + $0xa0] sm:$0xff] }
   0x8   :  { %v107_v37 = vmax.bf16 %v75_v25, %v43_v13  ;;  %v47_v38 = vmax.bf16 %v23_v26, %v22_v23  ;;  %v78_v39 = vrot.slane %v46_v27, 4  ;;  %v48_v40 = vmax.bf16 %v25_v29, %v24_v28  ;;  %v29_v41 = vld [vmem:[%s325_s0 + $0xa8] sm:$0xff]  ;;  %v30_v42 = vld [vmem:[%s325_s0 + $0xb0] sm:$0xff]  ;;  %v31_v43 = vld [vmem:[%s325_s0 + $0xb8] sm:$0xff] }
   0x9   :  { %v180_v44 = vcombine.low %v104_v24, %v105_v30  ;;  %v108_v45 = vmax.bf16 %v76_v32, %v44_v19  ;;  %v109_v46 = vmax.bf16 %v77_v33, %v45_v20  ;;  %v49_v47 = vmax.bf16 %v27_v35, %v26_v34  ;;  %v32_v48 = vld [vmem:[%s325_s0 + $0xc0] sm:$0xff]  ;;  %v33_v49 = vld [vmem:[%s325_s0 + $0xc8] sm:$0xff]  ;;  %v34_v50 = vld [vmem:[%s325_s0 + $0xd0] sm:$0xff] }
   0xa   :  { %v181_v51 = vcombine.low %v106_v31, %v107_v37  ;;  %v79_v52 = vrot.slane %v47_v38, 4  ;;  %v110_v53 = vmax.bf16 %v78_v39, %v46_v27  ;;  %v80_v54 = vrot.slane %v48_v40, 4  ;;  %v35_v55 = vld [vmem:[%s325_s0 + $0xd8] sm:$0xff]  ;;  %v36_v56 = vld [vmem:[%s325_s0 + $0xe0] sm:$0xff]  ;;  %v37_v57 = vld [vmem:[%s325_s0 + $0xe8] sm:$0xff] }
   0xb   :  { %144 = vst [vmem:[%s326_s1] sm:$0xff] %v180_v44   ;;  %v183_v58 = vcombine.low %v108_v45, %v109_v46  ;;  %v81_v59 = vrot.slane %v49_v47, 4  ;;  %v50_v60 = vmax.bf16 %v29_v41, %v28_v36  ;;  %v51_v61 = vmax.bf16 %v31_v43, %v30_v42  ;;  %v38_v62 = vld [vmem:[%s325_s0 + $0xf0] sm:$0xff]  ;;  %v39_v63 = vld [vmem:[%s325_s0 + $0xf8] sm:$0xff] }
   0xc   :  { %182 = vst [vmem:[%s326_s1 + $0x8] sm:$0xff] %v181_v51   ;;  %v111_v0 = vmax.bf16 %v79_v52, %v47_v38  ;;  %v112_v1 = vmax.bf16 %v80_v54, %v48_v40  ;;  %v52_v2 = vmax.bf16 %v33_v49, %v32_v48  ;;  %v53_v3 = vmax.bf16 %v35_v55, %v34_v50 }
   0xd   :  { %184 = vst [vmem:[%s326_s1 + $0x10] sm:$0xff] %v183_v58   ;;  %v113_v4 = vmax.bf16 %v81_v59, %v49_v47  ;;  %v82_v5 = vrot.slane %v50_v60, 4  ;;  %v83_v6 = vrot.slane %v51_v61, 4  ;;  %v54_v7 = vmax.bf16 %v37_v57, %v36_v56 }
   0xe   :  { %v185_v8 = vcombine.low %v110_v53, %v111_v0  ;;  %v84_v9 = vrot.slane %v52_v2, 4  ;;  %v85_v10 = vrot.slane %v53_v3, 4  ;;  %v55_v11 = vmax.bf16 %v39_v63, %v38_v62 }
   0xf   :  { %v187_v12 = vcombine.low %v112_v1, %v113_v4  ;;  %v114_v13 = vmax.bf16 %v82_v5, %v50_v60  ;;  %v115_v14 = vmax.bf16 %v83_v6, %v51_v61  ;;  %v86_v15 = vrot.slane %v54_v7, 4 }
  0x10   :  { %186 = vst [vmem:[%s326_s1 + $0x18] sm:$0xff] %v185_v8   ;;  %v116_v16 = vmax.bf16 %v84_v9, %v52_v2  ;;  %v117_v17 = vmax.bf16 %v85_v10, %v53_v3  ;;  %v87_v18 = vrot.slane %v55_v11, 4 }
  0x11   :  { %188 = vst [vmem:[%s326_s1 + $0x20] sm:$0xff] %v187_v12   ;;  %v189_v19 = vcombine.low %v114_v13, %v115_v14  ;;  %v118_v20 = vmax.bf16 %v86_v15, %v54_v7 }
  0x12   :  { %v191_v21 = vcombine.low %v116_v16, %v117_v17  ;;  %v119_v22 = vmax.bf16 %v87_v18, %v55_v11 }
  0x13   :  { %190 = vst [vmem:[%s326_s1 + $0x28] sm:$0xff] %v189_v19  }
  0x14   :  { %192 = vst [vmem:[%s326_s1 + $0x30] sm:$0xff] %v191_v21   ;;  %v193_v23 = vcombine.low %v118_v20, %v119_v22 }
  0x16   :  { %194 = vst [vmem:[%s326_s1 + $0x38] sm:$0xff] %v193_v23  }

// kernel: mp_forward.8
= control target key start
LH: loop header
LB: loop body
LE: loop exit
PB: predicated region body
PF: predicated region fallthrough
CT: control target
= control target key end

     0   :  { %s465_s1 = inlined_call_operand.vmem [shape: bf16[128,128], index: 1, kind: input, shape index: {}]   ;;  %s466_s0 = inlined_call_operand.vmem [shape: bf16[128,128], index: 0, kind: input, shape index: {}]   ;;  %s467_s2 = inlined_call_operand.vmem [shape: f32[1,8,128], index: 2, kind: output, shape index: {0}]   ;;  %s468_s3 = inlined_call_operand.vmem [shape: f32[1,8,128], index: 3, kind: output, shape index: {1}]  }
   0x1   :  { %v375_v0 = vld [vmem:[%s465_s1] sm:$0xff]   ;;  %v376_v1 = vld [vmem:[%s465_s1 + $0x8] sm:$0xff]   ;;  %v377_v2 = vld [vmem:[%s465_s1 + $0x10] sm:$0xff]  }
   0x2   :  { %327 = vmatprep.subr.bf16.mxu0 %v375_v0  ;;  %359 = vmatprep.subr.bf16.mxu1 %v375_v0  ;;  %v378_v3 = vld [vmem:[%s465_s1 + $0x18] sm:$0xff]   ;;  %v383_v4 = vld [vmem:[%s466_s0] sm:$0xff]   ;;  %v380_v7 = vld [vmem:[%s465_s1 + $0x28] sm:$0xff]  }
   0x3   :  { %328 = vmatpush3.bf16.msra.mxu0 %v375_v0  ;;  %367 = vmatpush3.bf16.msra.mxu1 %v375_v0  ;;  %v379_v5 = vld [vmem:[%s465_s1 + $0x20] sm:$0xff]   ;;  %v381_v8 = vld [vmem:[%s465_s1 + $0x30] sm:$0xff]   ;;  %v382_v9 = vld [vmem:[%s465_s1 + $0x38] sm:$0xff]  }
   0x4   :  { %329 = vmatprep.subr.bf16.mxu0 %v376_v1  ;;  %360 = vmatprep.subr.bf16.mxu1 %v376_v1  ;;  %v387_v6 = vld [vmem:[%s466_s0 + $0x20] sm:$0xff]   ;;  %v384_v10 = vld [vmem:[%s466_s0 + $0x8] sm:$0xff]   ;;  %v385_v12 = vld [vmem:[%s466_s0 + $0x10] sm:$0xff]  }
   0x5   :  { %343 = vmatprep.mubr.bf16.mxu0 %v383_v4  ;;  %351 = vmatprep.mubr.bf16.mxu1 %v387_v6  ;;  %v388_v11 = vld [vmem:[%s466_s0 + $0x28] sm:$0xff]   ;;  %v389_v13 = vld [vmem:[%s466_s0 + $0x30] sm:$0xff]   ;;  %v386_v14 = vld [vmem:[%s466_s0 + $0x18] sm:$0xff]  }
   0x6   :  { %v390_v15 = vld [vmem:[%s466_s0 + $0x38] sm:$0xff]  }
   0x7   :  { %330 = vmatpush3.bf16.msra.mxu0 %v376_v1  ;;  %368 = vmatpush3.bf16.msra.mxu1 %v376_v1 }
   0x8   :  { %331 = vmatprep.subr.bf16.mxu0 %v377_v2  ;;  %361 = vmatprep.subr.bf16.mxu1 %v377_v2 }
   0xb   :  { %332 = vmatpush3.bf16.msra.mxu0 %v377_v2  ;;  %369 = vmatpush3.bf16.msra.mxu1 %v377_v2 }
   0xc   :  { %333 = vmatprep.subr.bf16.mxu0 %v378_v3  ;;  %362 = vmatprep.subr.bf16.mxu1 %v378_v3 }
   0xf   :  { %334 = vmatpush3.bf16.msra.mxu0 %v378_v3  ;;  %370 = vmatpush3.bf16.msra.mxu1 %v378_v3 }
  0x10   :  { %335 = vmatprep.subr.bf16.mxu0 %v379_v5  ;;  %363 = vmatprep.subr.bf16.mxu1 %v379_v5 }
  0x13   :  { %336 = vmatpush3.bf16.msra.mxu0 %v379_v5  ;;  %371 = vmatpush3.bf16.msra.mxu1 %v379_v5 }
  0x14   :  { %337 = vmatprep.subr.bf16.mxu0 %v380_v7  ;;  %364 = vmatprep.subr.bf16.mxu1 %v380_v7 }
  0x17   :  { %338 = vmatpush3.bf16.msra.mxu0 %v380_v7  ;;  %372 = vmatpush3.bf16.msra.mxu1 %v380_v7 }
  0x18   :  { %339 = vmatprep.subr.bf16.mxu0 %v381_v8  ;;  %365 = vmatprep.subr.bf16.mxu1 %v381_v8 }
  0x1b   :  { %340 = vmatpush3.bf16.msra.mxu0 %v381_v8  ;;  %373 = vmatpush3.bf16.msra.mxu1 %v381_v8 }
  0x1c   :  { %341 = vmatprep.subr.bf16.mxu0 %v382_v9  ;;  %366 = vmatprep.subr.bf16.mxu1 %v382_v9 }
  0x1f   :  { %342 = vmatpush3.bf16.msra.mxu0 %v382_v9  ;;  %374 = vmatpush3.bf16.msra.mxu1 %v382_v9 }
  0x22   :  { %344 = vmatmul.mubr.bf16.vlgmr.msra.gmra.mrb[0].mxu0 %v384_v10  ;;  %352 = vmatmul.mubr.bf16.vlgmr.msra.gmra.mrb[0].mxu1 %v388_v11 }
  0x23   :  { %347 = vmatprep.mubr.bf16.mxu0 %v385_v12  ;;  %355 = vmatprep.mubr.bf16.mxu1 %v389_v13 }
  0x2a   :  { %348 = vmatmul.mubr.bf16.gmra.mrb[4].mxu0 %v386_v14  ;;  %356 = vmatmul.mubr.bf16.gmra.mrb[4].mxu1 %v390_v15 }
  0xf5   :  { %v345_v16 = vpop.f32.mrb[0].mxu0  ;;  %v353_v17 = vpop.f32.mrb[0].mxu1 }
  0xf6   :  { %v176_v18 = vpop.f32.mrb[1].mxu0  ;;  %v208_v19 = vpop.f32.mrb[1].mxu1  ;;  %v256_v27 = vmul.f32 %v345_v16, %v345_v16  ;;  %v264_v59 = vmul.f32 %v353_v17, %v353_v17 }
  0xf7   :  { %v346_v20 = vpop.f32.mrb[2].mxu0  ;;  %v354_v21 = vpop.f32.mrb[2].mxu1  ;;  %v254_v24 = vmul.f32 %v176_v18, %v176_v18  ;;  %v262_v53 = vmul.f32 %v208_v19, %v208_v19 }
  0xf8   :  { %v179_v22 = vpop.f32.mrb[3].mxu0  ;;  %v211_v23 = vpop.f32.mrb[3].mxu1  ;;  %v257_v30 = vmul.f32 %v346_v20, %v346_v20  ;;  %v265_v62 = vmul.f32 %v354_v21, %v354_v21 }
  0xf9   :  { %v239_v25 = vadd.f32 %v179_v22, %v176_v18  ;;  %v255_v26 = vmul.f32 %v179_v22, %v179_v22  ;;  %v263_v58 = vmul.f32 %v211_v23, %v211_v23 }
  0xfb   :  { %v240_v28 = vadd.f32 %v345_v16, %v239_v25  ;;  %v270_v29 = vadd.f32 %v255_v26, %v254_v24 }
  0xfd   :  { %v271_v31 = vadd.f32 %v270_v29, %v256_v27  ;;  %v349_v32 = vpop.f32.mrb[4].mxu0  ;;  %v241_v33 = vadd.f32 %v346_v20, %v240_v28  ;;  %v357_v34 = vpop.f32.mrb[4].mxu1 }
  0xfe   :  { %v192_v35 = vpop.f32.mrb[5].mxu0  ;;  %v224_v36 = vpop.f32.mrb[5].mxu1  ;;  %v260_v47 = vmul.f32 %v349_v32, %v349_v32  ;;  %v268_v7 = vmul.f32 %v357_v34, %v357_v34 }
  0xff   :  { %v242_v37 = vadd.f32 %v241_v33, %v192_v35  ;;  %v258_v38 = vmul.f32 %v192_v35, %v192_v35  ;;  %v272_v39 = vadd.f32 %v271_v31, %v257_v30  ;;  %v350_v40 = vpop.f32.mrb[6].mxu0  ;;  %v358_v41 = vpop.f32.mrb[6].mxu1  ;;  %v266_v1 = vmul.f32 %v224_v36, %v224_v36 }
 0x100   :  { %v195_v42 = vpop.f32.mrb[7].mxu0  ;;  %v227_v43 = vpop.f32.mrb[7].mxu1  ;;  %v261_v50 = vmul.f32 %v350_v40, %v350_v40  ;;  %v269_v10 = vmul.f32 %v358_v41, %v358_v41 }
 0x101   :  { %v273_v44 = vadd.f32 %v272_v39, %v258_v38  ;;  %v243_v45 = vadd.f32 %v242_v37, %v195_v42  ;;  %v259_v46 = vmul.f32 %v195_v42, %v195_v42  ;;  %v267_v6 = vmul.f32 %v227_v43, %v227_v43 }
 0x103   :  { %v244_v48 = vadd.f32 %v349_v32, %v243_v45  ;;  %v274_v49 = vadd.f32 %v273_v44, %v259_v46 }
 0x105   :  { %v275_v51 = vadd.f32 %v274_v49, %v260_v47  ;;  %v245_v52 = vadd.f32 %v350_v40, %v244_v48 }
 0x107   :  { %v246_v54 = vadd.f32 %v245_v52, %v208_v19  ;;  %v276_v55 = vadd.f32 %v275_v51, %v261_v50 }
 0x109   :  { %v277_v56 = vadd.f32 %v276_v55, %v262_v53  ;;  %v247_v57 = vadd.f32 %v246_v54, %v211_v23 }
 0x10b   :  { %v248_v60 = vadd.f32 %v353_v17, %v247_v57  ;;  %v278_v61 = vadd.f32 %v277_v56, %v263_v58 }
 0x10d   :  { %v279_v63 = vadd.f32 %v278_v61, %v264_v59  ;;  %v249_v0 = vadd.f32 %v354_v21, %v248_v60 }
 0x10f   :  { %v250_v2 = vadd.f32 %v249_v0, %v224_v36  ;;  %v280_v3 = vadd.f32 %v279_v63, %v265_v62 }
 0x111   :  { %v281_v4 = vadd.f32 %v280_v3, %v266_v1  ;;  %v251_v5 = vadd.f32 %v250_v2, %v227_v43 }
 0x113   :  { %v252_v8 = vadd.f32 %v357_v34, %v251_v5  ;;  %v282_v9 = vadd.f32 %v281_v4, %v267_v6 }
 0x115   :  { %v253_v11 = vadd.f32 %v358_v41, %v252_v8  ;;  %v283_v12 = vadd.f32 %v282_v9, %v268_v7 }
 0x117   :  { %v284_v13 = vadd.f32 %v283_v12, %v269_v10  ;;  %285 = vst [vmem:[%s467_s2] sm:$0xff] %v253_v11 }
 0x119   :  { %286 = vst [vmem:[%s468_s3] sm:$0xff] %v284_v13 }

// kernel: mp_forward.9
= control target key start
LH: loop header
LB: loop body
LE: loop exit
PB: predicated region body
PF: predicated region fallthrough
CT: control target
= control target key end

     0   :  { %s794_s1 = inlined_call_operand.vmem [shape: bf16[128,128], index: 1, kind: input, shape index: {}]   ;;  %s795_s0 = inlined_call_operand.vmem [shape: bf16[128,128], index: 0, kind: input, shape index: {}]   ;;  %s796_s2 = inlined_call_operand.vmem [shape: f32[1,128], index: 2, kind: input, shape index: {}]   ;;  %s797_s3 = inlined_call_operand.vmem [shape: f32[1,128], index: 3, kind: input, shape index: {}]   ;;  %s798_s4 = inlined_call_operand.vmem [shape: f32[128,128], index: 4, kind: output, shape index: {}]  }
   0x1   :  { %v487_v0 = vld [vmem:[%s794_s1] sm:$0xff]   ;;  %v488_v1 = vld [vmem:[%s794_s1 + $0x8] sm:$0xff]   ;;  %v489_v2 = vld [vmem:[%s794_s1 + $0x10] sm:$0xff]  }
   0x2   :  { %439 = vmatprep.subr.bf16.mxu0 %v487_v0  ;;  %471 = vmatprep.subr.bf16.mxu1 %v487_v0  ;;  %v490_v3 = vld [vmem:[%s794_s1 + $0x18] sm:$0xff]   ;;  %v495_v4 = vld [vmem:[%s795_s0] sm:$0xff]   ;;  %v492_v7 = vld [vmem:[%s794_s1 + $0x28] sm:$0xff]  }
   0x3   :  { %440 = vmatpush3.bf16.msra.mxu0 %v487_v0  ;;  %479 = vmatpush3.bf16.msra.mxu1 %v487_v0  ;;  %v496_v5 = vld [vmem:[%s795_s0 + $0x20] sm:$0xff]   ;;  %v493_v8 = vld [vmem:[%s794_s1 + $0x30] sm:$0xff]   ;;  %v494_v9 = vld [vmem:[%s794_s1 + $0x38] sm:$0xff]  }
   0x4   :  { %441 = vmatprep.subr.bf16.mxu0 %v488_v1  ;;  %472 = vmatprep.subr.bf16.mxu1 %v488_v1  ;;  %v491_v6 = vld [vmem:[%s794_s1 + $0x20] sm:$0xff]   ;;  %v497_v10 = vld [vmem:[%s795_s0 + $0x8] sm:$0xff]   ;;  %v499_v12 = vld [vmem:[%s795_s0 + $0x10] sm:$0xff]  }
   0x5   :  { %455 = vmatprep.mubr.bf16.mxu0 %v495_v4  ;;  %463 = vmatprep.mubr.bf16.mxu1 %v496_v5  ;;  %v498_v11 = vld [vmem:[%s795_s0 + $0x28] sm:$0xff]   ;;  %v500_v13 = vld [vmem:[%s795_s0 + $0x30] sm:$0xff]   ;;  %v501_v14 = vld [vmem:[%s795_s0 + $0x18] sm:$0xff]  }
   0x6   :  { %v502_v15 = vld [vmem:[%s795_s0 + $0x38] sm:$0xff]   ;;  %v643_v16 = vld [vmem:[%s796_s2] ss:$0 sm:$0xff] }
   0x7   :  { %442 = vmatpush3.bf16.msra.mxu0 %v488_v1  ;;  %480 = vmatpush3.bf16.msra.mxu1 %v488_v1  ;;  %v648_v18 = vld [vmem:[%s797_s3] ss:$0 sm:$0xff] }
   0x8   :  { %443 = vmatprep.subr.bf16.mxu0 %v489_v2  ;;  %473 = vmatprep.subr.bf16.mxu1 %v489_v2 }
   0xb   :  { %444 = vmatpush3.bf16.msra.mxu0 %v489_v2  ;;  %481 = vmatpush3.bf16.msra.mxu1 %v489_v2 }
   0xc   :  { %445 = vmatprep.subr.bf16.mxu0 %v490_v3  ;;  %474 = vmatprep.subr.bf16.mxu1 %v490_v3 }
   0xf   :  { %446 = vmatpush3.bf16.msra.mxu0 %v490_v3  ;;  %482 = vmatpush3.bf16.msra.mxu1 %v490_v3 }
  0x10   :  { %447 = vmatprep.subr.bf16.mxu0 %v491_v6  ;;  %475 = vmatprep.subr.bf16.mxu1 %v491_v6 }
  0x13   :  { %448 = vmatpush3.bf16.msra.mxu0 %v491_v6  ;;  %483 = vmatpush3.bf16.msra.mxu1 %v491_v6 }
  0x14   :  { %449 = vmatprep.subr.bf16.mxu0 %v492_v7  ;;  %476 = vmatprep.subr.bf16.mxu1 %v492_v7 }
  0x17   :  { %450 = vmatpush3.bf16.msra.mxu0 %v492_v7  ;;  %484 = vmatpush3.bf16.msra.mxu1 %v492_v7 }
  0x18   :  { %451 = vmatprep.subr.bf16.mxu0 %v493_v8  ;;  %477 = vmatprep.subr.bf16.mxu1 %v493_v8 }
  0x1b   :  { %452 = vmatpush3.bf16.msra.mxu0 %v493_v8  ;;  %485 = vmatpush3.bf16.msra.mxu1 %v493_v8 }
  0x1c   :  { %453 = vmatprep.subr.bf16.mxu0 %v494_v9  ;;  %478 = vmatprep.subr.bf16.mxu1 %v494_v9 }
  0x1f   :  { %454 = vmatpush3.bf16.msra.mxu0 %v494_v9  ;;  %486 = vmatpush3.bf16.msra.mxu1 %v494_v9 }
  0x22   :  { %456 = vmatmul.mubr.bf16.vlgmr.msra.gmra.mrb[0].mxu0 %v497_v10  ;;  %464 = vmatmul.mubr.bf16.vlgmr.msra.gmra.mrb[0].mxu1 %v498_v11 }
  0x23   :  { %459 = vmatprep.mubr.bf16.mxu0 %v499_v12  ;;  %467 = vmatprep.mubr.bf16.mxu1 %v500_v13 }
  0x2a   :  { %460 = vmatmul.mubr.bf16.gmra.mrb[4].mxu0 %v501_v14  ;;  %468 = vmatmul.mubr.bf16.gmra.mrb[4].mxu1 %v502_v15 }
  0xf5   :  { %v457_v17 = vpop.f32.mrb[0].mxu0  ;;  %v465_v19 = vpop.f32.mrb[0].mxu1 }
  0xf6   :  { %v252_v20 = vmul.f32 %v457_v17, %v643_v16  ;;  %v260_v21 = vmul.f32 %v465_v19, %v643_v16  ;;  %v180_v22 = vpop.f32.mrb[1].mxu0  ;;  %v212_v23 = vpop.f32.mrb[1].mxu1 }
  0xf7   :  { %v250_v24 = vmul.f32 %v643_v16, %v180_v22  ;;  %v258_v25 = vmul.f32 %v643_v16, %v212_v23  ;;  %v458_v26 = vpop.f32.mrb[2].mxu0  ;;  %v466_v27 = vpop.f32.mrb[2].mxu1 }
  0xf8   :  { %v655_v28 = vadd.f32 %v648_v18, %v252_v20  ;;  %v658_v29 = vadd.f32 %v648_v18, %v260_v21  ;;  %v253_v30 = vmul.f32 %v458_v26, %v643_v16  ;;  %v261_v31 = vmul.f32 %v466_v27, %v643_v16  ;;  %v183_v32 = vpop.f32.mrb[3].mxu0  ;;  %v215_v33 = vpop.f32.mrb[3].mxu1 }
  0xf9   :  { %v663_v34 = vadd.f32 %v648_v18, %v250_v24  ;;  %v666_v35 = vadd.f32 %v648_v18, %v258_v25  ;;  %v251_v36 = vmul.f32 %v643_v16, %v183_v32  ;;  %v259_v37 = vmul.f32 %v643_v16, %v215_v33 }
  0xfa   :  { %v291_v38 = vsub.f32 0.0, %v655_v28  ;;  %v299_v39 = vsub.f32 0.0, %v658_v29  ;;  %v673_v40 = vadd.f32 %v648_v18, %v253_v30  ;;  %v676_v41 = vadd.f32 %v648_v18, %v261_v31 }
  0xfb   :  { %v289_v42 = vsub.f32 0.0, %v663_v34  ;;  %v297_v43 = vsub.f32 0.0, %v666_v35  ;;  %v681_v44 = vadd.f32 %v648_v18, %v251_v36  ;;  %v684_v45 = vadd.f32 %v648_v18, %v259_v37 }
  0xfc   :  { %v309_v46 = vmul.f32 1.442695, %v291_v38  ;;  %v325_v47 = vmul.f32 1.442695, %v299_v39  ;;  %v292_v48 = vsub.f32 0.0, %v673_v40  ;;  %v300_v49 = vsub.f32 0.0, %v676_v41 }
  0xfd   :  { %v305_v50 = vmul.f32 1.442695, %v289_v42  ;;  %v321_v51 = vmul.f32 1.442695, %v297_v43  ;;  %v290_v52 = vsub.f32 0.0, %v681_v44  ;;  %v298_v53 = vsub.f32 0.0, %v684_v45 }
  0xfe   :  { %503 = vpow2.f32 %v309_v46  ;;  %v311_v54 = vmul.f32 1.442695, %v292_v48  ;;  %v461_v55 = vpop.f32.mrb[4].mxu0  ;;  %v469_v56 = vpop.f32.mrb[4].mxu1  ;;  %v327_v57 = vmul.f32 1.442695, %v300_v49 }
  0xff   :  { %505 = vpow2.f32 %v325_v47  ;;  %v307_v58 = vmul.f32 1.442695, %v290_v52  ;;  %v256_v59 = vmul.f32 %v461_v55, %v643_v16  ;;  %v196_v60 = vpop.f32.mrb[5].mxu0  ;;  %v228_v61 = vpop.f32.mrb[5].mxu1  ;;  %v264_v62 = vmul.f32 %v469_v56, %v643_v16 }
 0x100   :  { %507 = vpow2.f32 %v305_v50  ;;  %v254_v63 = vmul.f32 %v643_v16, %v196_v60  ;;  %v262_v0 = vmul.f32 %v643_v16, %v228_v61  ;;  %v462_v1 = vpop.f32.mrb[6].mxu0  ;;  %v470_v2 = vpop.f32.mrb[6].mxu1  ;;  %v323_v3 = vmul.f32 1.442695, %v298_v53 }
 0x101   :  { %509 = vpow2.f32 %v321_v51  ;;  %v695_v4 = vadd.f32 %v648_v18, %v256_v59  ;;  %v199_v5 = vpop.f32.mrb[7].mxu0  ;;  %v231_v6 = vpop.f32.mrb[7].mxu1  ;;  %v698_v7 = vadd.f32 %v648_v18, %v264_v62  ;;  %v257_v11 = vmul.f32 %v462_v1, %v643_v16 }
 0x102   :  { %511 = vpow2.f32 %v311_v54  ;;  %v701_v8 = vadd.f32 %v648_v18, %v254_v63  ;;  %v704_v9 = vadd.f32 %v648_v18, %v262_v0  ;;  %v265_v23 = vmul.f32 %v470_v2, %v643_v16 }
 0x103   :  { %513 = vpow2.f32 %v327_v57  ;;  %v295_v10 = vsub.f32 0.0, %v695_v4  ;;  %v303_v12 = vsub.f32 0.0, %v698_v7  ;;  %v712_v21 = vadd.f32 %v648_v18, %v257_v11 }
 0x104   :  { %515 = vpow2.f32 %v307_v58  ;;  %v293_v13 = vsub.f32 0.0, %v701_v8  ;;  %v301_v14 = vsub.f32 0.0, %v704_v9  ;;  %v255_v26 = vmul.f32 %v643_v16, %v199_v5 }
 0x105   :  { %517 = vpow2.f32 %v323_v3  ;;  %v317_v15 = vmul.f32 1.442695, %v295_v10  ;;  %v333_v17 = vmul.f32 1.442695, %v303_v12  ;;  %v263_v31 = vmul.f32 %v643_v16, %v231_v6 }
 0x106   :  { %v313_v19 = vmul.f32 1.442695, %v293_v13  ;;  %v329_v20 = vmul.f32 1.442695, %v301_v14  ;;  %v296_v36 = vsub.f32 0.0, %v712_v21  ;;  %v719_v39 = vadd.f32 %v648_v18, %v265_v23 }
 0x107   :  { %519 = vpow2.f32 %v317_v15  ;;  %v722_v46 = vadd.f32 %v648_v18, %v255_v26  ;;  %v725_v48 = vadd.f32 %v648_v18, %v263_v31 }
 0x108   :  { %v504_v22 = vpop.eup %503  ;;  %521 = vpow2.f32 %v333_v17  ;;  %v319_v51 = vmul.f32 1.442695, %v296_v36  ;;  %v304_v53 = vsub.f32 0.0, %v719_v39 }
 0x109   :  { %v506_v24 = vpop.eup %505  ;;  %v339_v25 = vadd.f32 1.0, %v504_v22  ;;  %523 = vpow2.f32 %v313_v19  ;;  %v294_v55 = vsub.f32 0.0, %v722_v46  ;;  %v302_v58 = vsub.f32 0.0, %v725_v48 }
 0x10a   :  { %v508_v27 = vpop.eup %507  ;;  %v347_v30 = vadd.f32 1.0, %v506_v24  ;;  %525 = vpow2.f32 %v329_v20  ;;  %v335_v62 = vmul.f32 1.442695, %v304_v53 }
 0x10b   :  { %v510_v32 = vpop.eup %509  ;;  %527 = vrcp.f32 %v339_v25  ;;  %v337_v33 = vadd.f32 1.0, %v508_v27  ;;  %v315_v1 = vmul.f32 1.442695, %v294_v55  ;;  %v331_v5 = vmul.f32 1.442695, %v302_v58 }
 0x10c   :  { %v512_v37 = vpop.eup %511  ;;  %529 = vrcp.f32 %v347_v30  ;;  %v345_v38 = vadd.f32 1.0, %v510_v32 }
 0x10d   :  { %v514_v42 = vpop.eup %513  ;;  %531 = vrcp.f32 %v337_v33  ;;  %v340_v43 = vadd.f32 1.0, %v512_v37 }
 0x10e   :  { %v516_v47 = vpop.eup %515  ;;  %533 = vrcp.f32 %v345_v38  ;;  %v348_v16 = vadd.f32 1.0, %v514_v42 }
 0x10f   :  { %v518_v49 = vpop.eup %517  ;;  %535 = vrcp.f32 %v340_v43  ;;  %v338_v50 = vadd.f32 1.0, %v516_v47 }
 0x110   :  { %537 = vrcp.f32 %v348_v16  ;;  %v346_v52 = vadd.f32 1.0, %v518_v49 }
 0x111   :  { %v520_v54 = vpop.eup %519  ;;  %539 = vrcp.f32 %v338_v50 }
 0x112   :  { %v522_v56 = vpop.eup %521  ;;  %541 = vrcp.f32 %v346_v52  ;;  %v343_v57 = vadd.f32 1.0, %v520_v54 }
 0x113   :  { %v524_v59 = vpop.eup %523  ;;  %v351_v18 = vadd.f32 1.0, %v522_v56  ;;  %543 = vpow2.f32 %v319_v51 }
 0x114   :  { %v526_v60 = vpop.eup %525  ;;  %545 = vrcp.f32 %v343_v57  ;;  %v341_v61 = vadd.f32 1.0, %v524_v59 }
 0x115   :  { %v528_v63 = vpop.eup %527  ;;  %547 = vrcp.f32 %v351_v18  ;;  %v349_v0 = vadd.f32 1.0, %v526_v60 }
 0x116   :  { %v530_v2 = vpop.eup %529  ;;  %v371_v3 = vmul.f32 %v528_v63, %v655_v28  ;;  %549 = vrcp.f32 %v341_v61 }
 0x117   :  { %v532_v6 = vpop.eup %531  ;;  %v379_v10 = vmul.f32 %v530_v2, %v658_v29  ;;  %551 = vrcp.f32 %v349_v0 }
 0x118   :  { %v534_v11 = vpop.eup %533  ;;  %387 = vst [vmem:[%s798_s4 + $0x10] sm:$0xff] %v371_v3  ;;  %v369_v12 = vmul.f32 %v532_v6, %v663_v34  ;;  %553 = vpow2.f32 %v335_v62 }
 0x119   :  { %v536_v13 = vpop.eup %535  ;;  %395 = vst [vmem:[%s798_s4 + $0x50] sm:$0xff] %v379_v10  ;;  %v377_v28 = vmul.f32 %v534_v11, %v666_v35  ;;  %555 = vpow2.f32 %v315_v1 }
 0x11a   :  { %v538_v14 = vpop.eup %537  ;;  %385 = vst [vmem:[%s798_s4] sm:$0xff] %v369_v12  ;;  %v372_v29 = vmul.f32 %v536_v13, %v673_v40  ;;  %557 = vpow2.f32 %v331_v5 }
 0x11b   :  { %v540_v15 = vpop.eup %539  ;;  %393 = vst [vmem:[%s798_s4 + $0x40] sm:$0xff] %v377_v28  ;;  %v380_v34 = vmul.f32 %v538_v14, %v676_v41 }
 0x11c   :  { %v542_v17 = vpop.eup %541  ;;  %388 = vst [vmem:[%s798_s4 + $0x18] sm:$0xff] %v372_v29  ;;  %v370_v35 = vmul.f32 %v540_v15, %v681_v44 }
 0x11d   :  { %v544_v19 = vpop.eup %543  ;;  %396 = vst [vmem:[%s798_s4 + $0x58] sm:$0xff] %v380_v34  ;;  %v378_v40 = vmul.f32 %v542_v17, %v684_v45 }
 0x11e   :  { %v546_v20 = vpop.eup %545  ;;  %386 = vst [vmem:[%s798_s4 + $0x8] sm:$0xff] %v370_v35  ;;  %v344_v41 = vadd.f32 1.0, %v544_v19 }
 0x11f   :  { %v548_v22 = vpop.eup %547  ;;  %394 = vst [vmem:[%s798_s4 + $0x48] sm:$0xff] %v378_v40  ;;  %v375_v44 = vmul.f32 %v546_v20, %v695_v4 }
 0x120   :  { %v550_v23 = vpop.eup %549  ;;  %v383_v24 = vmul.f32 %v548_v22, %v698_v7  ;;  %559 = vrcp.f32 %v344_v41 }
 0x121   :  { %v552_v25 = vpop.eup %551  ;;  %391 = vst [vmem:[%s798_s4 + $0x30] sm:$0xff] %v375_v44  ;;  %v373_v45 = vmul.f32 %v550_v23, %v701_v8 }
 0x122   :  { %v554_v26 = vpop.eup %553  ;;  %399 = vst [vmem:[%s798_s4 + $0x70] sm:$0xff] %v383_v24  ;;  %v381_v27 = vmul.f32 %v552_v25, %v704_v9 }
 0x123   :  { %v556_v30 = vpop.eup %555  ;;  %389 = vst [vmem:[%s798_s4 + $0x20] sm:$0xff] %v373_v45  ;;  %v352_v4 = vadd.f32 1.0, %v554_v26 }
 0x124   :  { %v558_v7 = vpop.eup %557  ;;  %397 = vst [vmem:[%s798_s4 + $0x60] sm:$0xff] %v381_v27  ;;  %v342_v31 = vadd.f32 1.0, %v556_v30 }
 0x125   :  { %561 = vrcp.f32 %v352_v4  ;;  %v350_v8 = vadd.f32 1.0, %v558_v7 }
 0x126   :  { %563 = vrcp.f32 %v342_v31 }
 0x127   :  { %565 = vrcp.f32 %v350_v8 }
 0x12a   :  { %v560_v32 = vpop.eup %559 }
 0x12b   :  { %v376_v33 = vmul.f32 %v560_v32, %v712_v21 }
 0x12d   :  { %392 = vst [vmem:[%s798_s4 + $0x38] sm:$0xff] %v376_v33 }
 0x12f   :  { %v562_v9 = vpop.eup %561 }
 0x130   :  { %v564_v36 = vpop.eup %563  ;;  %v384_v37 = vmul.f32 %v562_v9, %v719_v39 }
 0x131   :  { %v566_v38 = vpop.eup %565  ;;  %v374_v42 = vmul.f32 %v564_v36, %v722_v46 }
 0x132   :  { %400 = vst [vmem:[%s798_s4 + $0x78] sm:$0xff] %v384_v37  ;;  %v382_v43 = vmul.f32 %v566_v38, %v725_v48 }
 0x133   :  { %390 = vst [vmem:[%s798_s4 + $0x28] sm:$0xff] %v374_v42 }
 0x134   :  { %398 = vst [vmem:[%s798_s4 + $0x68] sm:$0xff] %v382_v43 }

// kernel: mp_forward.13
= control target key start
LH: loop header
LB: loop body
LE: loop exit
PB: predicated region body
PF: predicated region fallthrough
CT: control target
= control target key end

     0   :  { %s511_s0 = inlined_call_operand.vmem [shape: bf16[128,128], index: 0, kind: input, shape index: {}]   ;;  %s512_s1 = inlined_call_operand.vmem [shape: f32[1,128], index: 1, kind: input, shape index: {}]   ;;  %s513_s2 = inlined_call_operand.vmem [shape: f32[1,128], index: 2, kind: input, shape index: {}]   ;;  %s514_s3 = inlined_call_operand.vmem [shape: f32[128,128], index: 3, kind: output, shape index: {}]  }
   0x1   :  { %v211_v0 = vld [vmem:[%s511_s0] sm:$0xff]   ;;  %v242_v4 = vld [vmem:[%s511_s0 + $0x8] sm:$0xff]   ;;  %v243_v5 = vld [vmem:[%s511_s0 + $0x10] sm:$0xff]  }
   0x2   :  { %v339_v1 = vld [vmem:[%s512_s1] ss:$0 sm:$0xff]  ;;  %v212_v2 = vunpack.c.l.bf16 %v211_v0  ;;  %v213_v3 = vunpack.c.h.bf16 %v211_v0  ;;  %v244_v6 = vld [vmem:[%s511_s0 + $0x18] sm:$0xff]   ;;  %v216_v8 = vunpack.c.l.bf16 %v242_v4  ;;  %v217_v9 = vunpack.c.h.bf16 %v242_v4  ;;  %v246_v37 = vld [vmem:[%s511_s0 + $0x28] sm:$0xff]  }
   0x3   :  { %v353_v7 = vld [vmem:[%s513_s2] ss:$0 sm:$0xff]  ;;  %v220_v10 = vunpack.c.l.bf16 %v243_v5  ;;  %v221_v11 = vunpack.c.h.bf16 %v243_v5  ;;  %v224_v14 = vunpack.c.l.bf16 %v244_v6  ;;  %v225_v15 = vunpack.c.h.bf16 %v244_v6  ;;  %v247_v45 = vld [vmem:[%s511_s0 + $0x30] sm:$0xff]   ;;  %v248_v62 = vld [vmem:[%s511_s0 + $0x38] sm:$0xff]  }
   0x4   :  { %v53_v12 = vmul.f32 %v212_v2, %v339_v1  ;;  %v54_v13 = vmul.f32 %v213_v3, %v339_v1  ;;  %v55_v16 = vmul.f32 %v216_v8, %v339_v1  ;;  %v56_v17 = vmul.f32 %v217_v9, %v339_v1  ;;  %v245_v32 = vld [vmem:[%s511_s0 + $0x20] sm:$0xff]  }
   0x5   :  { %v57_v18 = vmul.f32 %v220_v10, %v339_v1  ;;  %v58_v19 = vmul.f32 %v221_v11, %v339_v1  ;;  %v59_v22 = vmul.f32 %v224_v14, %v339_v1  ;;  %v60_v23 = vmul.f32 %v225_v15, %v339_v1 }
   0x6   :  { %v362_v20 = vadd.f32 %v353_v7, %v53_v12  ;;  %v365_v21 = vadd.f32 %v353_v7, %v54_v13  ;;  %v370_v24 = vadd.f32 %v353_v7, %v55_v16  ;;  %v373_v25 = vadd.f32 %v353_v7, %v56_v17 }
   0x7   :  { %v376_v26 = vadd.f32 %v353_v7, %v57_v18  ;;  %v379_v27 = vadd.f32 %v353_v7, %v58_v19  ;;  %v384_v30 = vadd.f32 %v353_v7, %v59_v22  ;;  %v387_v31 = vadd.f32 %v353_v7, %v60_v23 }
   0x8   :  { %v92_v28 = vsub.f32 0.0, %v362_v20  ;;  %v93_v29 = vsub.f32 0.0, %v365_v21  ;;  %v94_v33 = vsub.f32 0.0, %v370_v24  ;;  %v95_v34 = vsub.f32 0.0, %v373_v25 }
   0x9   :  { %v96_v35 = vsub.f32 0.0, %v376_v26  ;;  %v97_v36 = vsub.f32 0.0, %v379_v27  ;;  %v98_v40 = vsub.f32 0.0, %v384_v30  ;;  %v99_v41 = vsub.f32 0.0, %v387_v31 }
   0xa   :  { %v108_v38 = vmul.f32 1.442695, %v92_v28  ;;  %v110_v39 = vmul.f32 1.442695, %v93_v29  ;;  %v112_v42 = vmul.f32 1.442695, %v94_v33  ;;  %v228_v44 = vunpack.c.l.bf16 %v245_v32 }
   0xb   :  { %v114_v43 = vmul.f32 1.442695, %v95_v34  ;;  %v116_v46 = vmul.f32 1.442695, %v96_v35  ;;  %v118_v47 = vmul.f32 1.442695, %v97_v36  ;;  %v229_v50 = vunpack.c.h.bf16 %v245_v32 }
   0xc   :  { %249 = vpow2.f32 %v108_v38  ;;  %v120_v48 = vmul.f32 1.442695, %v98_v40  ;;  %v61_v49 = vmul.f32 %v228_v44, %v339_v1  ;;  %v232_v51 = vunpack.c.l.bf16 %v246_v37 }
   0xd   :  { %251 = vpow2.f32 %v110_v39  ;;  %v122_v52 = vmul.f32 1.442695, %v99_v41  ;;  %v233_v53 = vunpack.c.h.bf16 %v246_v37  ;;  %v236_v54 = vunpack.c.l.bf16 %v247_v45 }
   0xe   :  { %253 = vpow2.f32 %v112_v42  ;;  %v406_v55 = vadd.f32 %v353_v7, %v61_v49  ;;  %v62_v56 = vmul.f32 %v229_v50, %v339_v1  ;;  %v63_v57 = vmul.f32 %v232_v51, %v339_v1 }
   0xf   :  { %255 = vpow2.f32 %v114_v43  ;;  %v64_v58 = vmul.f32 %v233_v53, %v339_v1  ;;  %v65_v63 = vmul.f32 %v236_v54, %v339_v1  ;;  %v237_v0 = vunpack.c.h.bf16 %v247_v45 }
  0x10   :  { %257 = vpow2.f32 %v116_v46  ;;  %v100_v59 = vsub.f32 0.0, %v406_v55  ;;  %v413_v60 = vadd.f32 %v353_v7, %v62_v56  ;;  %v416_v61 = vadd.f32 %v353_v7, %v63_v57 }
  0x11   :  { %259 = vpow2.f32 %v118_v47  ;;  %v425_v5 = vadd.f32 %v353_v7, %v64_v58  ;;  %v240_v6 = vunpack.c.l.bf16 %v248_v62  ;;  %v241_v10 = vunpack.c.h.bf16 %v248_v62 }
  0x12   :  { %261 = vpow2.f32 %v120_v48  ;;  %v124_v2 = vmul.f32 1.442695, %v100_v59  ;;  %v101_v3 = vsub.f32 0.0, %v413_v60  ;;  %v102_v4 = vsub.f32 0.0, %v416_v61 }
  0x13   :  { %263 = vpow2.f32 %v122_v52  ;;  %v66_v12 = vmul.f32 %v237_v0, %v339_v1  ;;  %v429_v15 = vadd.f32 %v353_v7, %v65_v63  ;;  %v67_v16 = vmul.f32 %v240_v6, %v339_v1 }
  0x14   :  { %265 = vpow2.f32 %v124_v2  ;;  %v126_v8 = vmul.f32 1.442695, %v101_v3  ;;  %v128_v9 = vmul.f32 1.442695, %v102_v4  ;;  %v68_v19 = vmul.f32 %v241_v10, %v339_v1 }
  0x15   :  { %v103_v28 = vsub.f32 0.0, %v425_v5  ;;  %v435_v33 = vadd.f32 %v353_v7, %v66_v12  ;;  %v104_v36 = vsub.f32 0.0, %v429_v15  ;;  %v439_v37 = vadd.f32 %v353_v7, %v67_v16 }
  0x16   :  { %v250_v11 = vpop.eup %249  ;;  %267 = vpow2.f32 %v126_v8  ;;  %v442_v39 = vadd.f32 %v353_v7, %v68_v19 }
  0x17   :  { %v252_v13 = vpop.eup %251  ;;  %v140_v14 = vadd.f32 1.0, %v250_v11  ;;  %269 = vpow2.f32 %v128_v9  ;;  %v130_v42 = vmul.f32 1.442695, %v103_v28  ;;  %v105_v44 = vsub.f32 0.0, %v435_v33 }
  0x18   :  { %v254_v17 = vpop.eup %253  ;;  %v141_v18 = vadd.f32 1.0, %v252_v13  ;;  %v132_v46 = vmul.f32 1.442695, %v104_v36  ;;  %v106_v47 = vsub.f32 0.0, %v439_v37  ;;  %v107_v49 = vsub.f32 0.0, %v442_v39 }
  0x19   :  { %v256_v22 = vpop.eup %255  ;;  %271 = vrcp.f32 %v140_v14  ;;  %v142_v23 = vadd.f32 1.0, %v254_v17  ;;  %v134_v52 = vmul.f32 1.442695, %v105_v44 }
  0x1a   :  { %v258_v29 = vpop.eup %257  ;;  %273 = vrcp.f32 %v141_v18  ;;  %v143_v32 = vadd.f32 1.0, %v256_v22  ;;  %v136_v56 = vmul.f32 1.442695, %v106_v47  ;;  %v138_v59 = vmul.f32 1.442695, %v107_v49 }
  0x1b   :  { %v260_v34 = vpop.eup %259  ;;  %275 = vrcp.f32 %v142_v23  ;;  %v144_v35 = vadd.f32 1.0, %v258_v29 }
  0x1c   :  { %v262_v1 = vpop.eup %261  ;;  %277 = vrcp.f32 %v143_v32  ;;  %v145_v38 = vadd.f32 1.0, %v260_v34 }
  0x1d   :  { %v264_v40 = vpop.eup %263  ;;  %279 = vrcp.f32 %v144_v35  ;;  %v146_v41 = vadd.f32 1.0, %v262_v1 }
  0x1e   :  { %281 = vrcp.f32 %v145_v38  ;;  %v147_v43 = vadd.f32 1.0, %v264_v40  ;;  %v266_v45 = vpop.eup %265 }
  0x1f   :  { %283 = vrcp.f32 %v146_v41  ;;  %v148_v48 = vadd.f32 1.0, %v266_v45 }
  0x20   :  { %285 = vrcp.f32 %v147_v43  ;;  %v268_v50 = vpop.eup %267 }
  0x21   :  { %287 = vpow2.f32 %v130_v42  ;;  %v270_v7 = vpop.eup %269  ;;  %v149_v51 = vadd.f32 1.0, %v268_v50 }
  0x22   :  { %289 = vrcp.f32 %v148_v48  ;;  %v150_v54 = vadd.f32 1.0, %v270_v7 }
  0x23   :  { %v272_v53 = vpop.eup %271  ;;  %291 = vpow2.f32 %v132_v46 }
  0x24   :  { %v274_v57 = vpop.eup %273  ;;  %v172_v58 = vmul.f32 %v272_v53, %v362_v20  ;;  %293 = vrcp.f32 %v149_v51 }
  0x25   :  { %v276_v62 = vpop.eup %275  ;;  %v173_v63 = vmul.f32 %v274_v57, %v365_v21  ;;  %295 = vrcp.f32 %v150_v54 }
  0x26   :  { %v278_v0 = vpop.eup %277  ;;  %188 = vst [vmem:[%s514_s3] sm:$0xff] %v172_v58  ;;  %v174_v2 = vmul.f32 %v276_v62, %v370_v24  ;;  %297 = vpow2.f32 %v134_v52 }
  0x27   :  { %v280_v3 = vpop.eup %279  ;;  %189 = vst [vmem:[%s514_s3 + $0x8] sm:$0xff] %v173_v63  ;;  %v175_v20 = vmul.f32 %v278_v0, %v373_v25  ;;  %299 = vpow2.f32 %v136_v56 }
  0x28   :  { %v282_v4 = vpop.eup %281  ;;  %190 = vst [vmem:[%s514_s3 + $0x10] sm:$0xff] %v174_v2  ;;  %v176_v21 = vmul.f32 %v280_v3, %v376_v26  ;;  %301 = vpow2.f32 %v138_v59 }
  0x29   :  { %v284_v6 = vpop.eup %283  ;;  %191 = vst [vmem:[%s514_s3 + $0x18] sm:$0xff] %v175_v20  ;;  %v177_v24 = vmul.f32 %v282_v4, %v379_v27 }
  0x2a   :  { %v286_v8 = vpop.eup %285  ;;  %192 = vst [vmem:[%s514_s3 + $0x20] sm:$0xff] %v176_v21  ;;  %v178_v25 = vmul.f32 %v284_v6, %v384_v30 }
  0x2b   :  { %v288_v9 = vpop.eup %287  ;;  %193 = vst [vmem:[%s514_s3 + $0x28] sm:$0xff] %v177_v24  ;;  %v179_v26 = vmul.f32 %v286_v8, %v387_v31 }
  0x2c   :  { %v290_v10 = vpop.eup %289  ;;  %194 = vst [vmem:[%s514_s3 + $0x30] sm:$0xff] %v178_v25  ;;  %v151_v27 = vadd.f32 1.0, %v288_v9 }
  0x2d   :  { %v292_v11 = vpop.eup %291  ;;  %195 = vst [vmem:[%s514_s3 + $0x38] sm:$0xff] %v179_v26  ;;  %v180_v30 = vmul.f32 %v290_v10, %v406_v55 }
  0x2e   :  { %v294_v12 = vpop.eup %293  ;;  %303 = vrcp.f32 %v151_v27  ;;  %v152_v13 = vadd.f32 1.0, %v292_v11 }
  0x2f   :  { %v296_v14 = vpop.eup %295  ;;  %196 = vst [vmem:[%s514_s3 + $0x40] sm:$0xff] %v180_v30  ;;  %v181_v31 = vmul.f32 %v294_v12, %v413_v60 }
  0x30   :  { %v298_v16 = vpop.eup %297  ;;  %v182_v17 = vmul.f32 %v296_v14, %v416_v61  ;;  %305 = vrcp.f32 %v152_v13 }
  0x31   :  { %v300_v18 = vpop.eup %299  ;;  %197 = vst [vmem:[%s514_s3 + $0x48] sm:$0xff] %v181_v31  ;;  %v153_v55 = vadd.f32 1.0, %v298_v16 }
  0x32   :  { %v302_v19 = vpop.eup %301  ;;  %198 = vst [vmem:[%s514_s3 + $0x50] sm:$0xff] %v182_v17  ;;  %v154_v22 = vadd.f32 1.0, %v300_v18 }
  0x33   :  { %307 = vrcp.f32 %v153_v55  ;;  %v155_v23 = vadd.f32 1.0, %v302_v19 }
  0x34   :  { %309 = vrcp.f32 %v154_v22 }
  0x35   :  { %311 = vrcp.f32 %v155_v23 }
  0x38   :  { %v304_v60 = vpop.eup %303 }
  0x39   :  { %v183_v61 = vmul.f32 %v304_v60, %v425_v5 }
  0x3a   :  { %v306_v28 = vpop.eup %305 }
  0x3b   :  { %199 = vst [vmem:[%s514_s3 + $0x58] sm:$0xff] %v183_v61  ;;  %v184_v29 = vmul.f32 %v306_v28, %v429_v15 }
  0x3d   :  { %v308_v32 = vpop.eup %307  ;;  %200 = vst [vmem:[%s514_s3 + $0x60] sm:$0xff] %v184_v29 }
  0x3e   :  { %v310_v34 = vpop.eup %309  ;;  %v185_v35 = vmul.f32 %v308_v32, %v435_v33 }
  0x3f   :  { %v312_v36 = vpop.eup %311  ;;  %v186_v1 = vmul.f32 %v310_v34, %v439_v37 }
  0x40   :  { %201 = vst [vmem:[%s514_s3 + $0x68] sm:$0xff] %v185_v35  ;;  %v187_v5 = vmul.f32 %v312_v36, %v442_v39 }
  0x41   :  { %202 = vst [vmem:[%s514_s3 + $0x70] sm:$0xff] %v186_v1 }
  0x42   :  { %203 = vst [vmem:[%s514_s3 + $0x78] sm:$0xff] %v187_v5 }

// kernel: mp_forward.12
= control target key start
LH: loop header
LB: loop body
LE: loop exit
PB: predicated region body
PF: predicated region fallthrough
CT: control target
= control target key end

     0   :  { %s2602_s18 = smov 0   ;;  %s2604_s19 = smov 0   ;;  %s3085_s0 = inlined_call_operand.vmem [shape: bf16[2,9,2,9,256], index: 0, kind: input, shape index: {}, may-alias: {0,1}]   ;;  %s3086_s1 = inlined_call_operand.vmem [shape: bf16[2,9,2,9,256], index: 1, kind: input, shape index: {}, may-alias: {0,1}]   ;;  %s3087_s2 = inlined_call_operand.vmem [shape: bf16[1152,128], index: 2, kind: input, shape index: {}]   ;;  %s3088_s3 = inlined_call_operand.vmem [shape: bf16[2,8,8,128], index: 3, kind: output, shape index: {0}]   ;;  %s3089_s4 = inlined_call_operand.vmem [shape: f32[2,1,8,128], index: 4, kind: output, shape index: {1}]   ;;  %s3090_s5 = inlined_call_operand.vmem [shape: f32[2,1,8,128], index: 5, kind: output, shape index: {2}]  }
   0x1   :  { %s2606_s20 = smov 0  }
   0x2 LB: > { %s28_s21 = sadd.s32 1, %s2566_s19  ;;  %p2038_p0 = scmp.ge.s32.totalorder %s2570_s20, 1  ;;  %s2570_s20 = sphi %s2606_s20, %s16_s20   ;;  %s2566_s19 = sphi %s2604_s19, %s3094_s19   ;;  %s2562_s18 = sphi %s2602_s18, %s3093_s18  }
   0x3   : > { %p30_p1 = scmp.ge.s32.totalorder %s28_s21, 2  ;;  %p256_p2 = scmp.lt.s32.totalorder %s2570_s20, 3 }
   0x5   : > { %s3096_s21 = smov (%p30_p1, %s28_s21), 0  ;;  %p257_p3 = pnand %p2038_p0, %p256_p2 }
   0x6   : > { %v2476_v0 = vld [vmem:[%s3087_s2 + $0x80] sm:$0xff] (!%p257_p3)   ;;  %p333_p4 = scmp.lt.s32.totalorder (!%p257_p3), %s2562_s18, 1  ;;  %v2479_v3 = vld [vmem:[%s3087_s2 + $0x88] sm:$0xff] (!%p257_p3)   ;;  %v2482_v6 = vld [vmem:[%s3087_s2 + $0x90] sm:$0xff] (!%p257_p3)   ;;  %vm454_vm0 = vsmask.f32 (!%p257_p3), 3328 }
   0x7   : > { %260 = sbr.rel (%p257_p3) target bundleno = 341 (0x155), region = 32  ;;  %v2477_v1 = vld [vmem:[%s3087_s2 + $0x40] sm:$0xff] (!%p257_p3)   ;;  %2337 = vmatprep.subr.bf16.mxu0 (!%p257_p3), %v2476_v0  ;;  %v2480_v4 = vld [vmem:[%s3087_s2 + $0x48] sm:$0xff] (!%p257_p3)   ;;  %v2483_v7 = vld [vmem:[%s3087_s2 + $0x50] sm:$0xff] (!%p257_p3)   ;;  %vm455_vm1 = vsmask.f32 (!%p257_p3), 7440 }
   0x8   : > { %v2478_v2 = vld [vmem:[%s3087_s2] sm:$0xff] (!%p257_p3)   ;;  %2338 = vmatpush3.bf16.msra.mxu0 (!%p257_p3), %v2476_v0  ;;  %2193 = vmatprep.subr.bf16.mxu1 (!%p257_p3), %v2477_v1  ;;  %v2481_v5 = vld [vmem:[%s3087_s2 + $0x8] sm:$0xff] (!%p257_p3)   ;;  %v2484_v8 = vld [vmem:[%s3087_s2 + $0x10] sm:$0xff] (!%p257_p3)  }
   0x9   : > { %2194 = vmatpush3.bf16.msra.mxu1 (!%p257_p3), %v2478_v2  ;;  %2339 = vmatprep.subr.bf16.mxu0 (!%p257_p3), %v2479_v3  ;;  %v2485_v9 = vld [vmem:[%s3087_s2 + $0x98] sm:$0xff] (!%p257_p3)   ;;  %v2488_v12 = vld [vmem:[%s3087_s2 + $0xa0] sm:$0xff] (!%p257_p3)   ;;  %v2491_v15 = vld [vmem:[%s3087_s2 + $0xa8] sm:$0xff] (!%p257_p3)  }
   0xa   : > { %2195 = vmatprep.subr.bf16.mxu1 (!%p257_p3), %v2480_v4  ;;  %v2486_v10 = vld [vmem:[%s3087_s2 + $0x58] sm:$0xff] (!%p257_p3)   ;;  %v2489_v13 = vld [vmem:[%s3087_s2 + $0x60] sm:$0xff] (!%p257_p3)   ;;  %v2492_v16 = vld [vmem:[%s3087_s2 + $0x68] sm:$0xff] (!%p257_p3)  }
   0xb   : > { %v2487_v11 = vld [vmem:[%s3087_s2 + $0x18] sm:$0xff] (!%p257_p3)   ;;  %v2490_v14 = vld [vmem:[%s3087_s2 + $0x20] sm:$0xff] (!%p257_p3)   ;;  %v2493_v17 = vld [vmem:[%s3087_s2 + $0x28] sm:$0xff] (!%p257_p3)  }
   0xc   : > { %2340 = vmatpush3.bf16.msra.mxu0 (!%p257_p3), %v2479_v3  ;;  %v2494_v18 = vld [vmem:[%s3087_s2 + $0xb0] sm:$0xff] (!%p257_p3)   ;;  %v2497_v21 = vld [vmem:[%s3087_s2 + $0xb8] sm:$0xff] (!%p257_p3)   ;;  %v2500_v36 = vld [vmem:[%s3087_s2 + $0x100] sm:$0xff] (!%p257_p3)  }
   0xd   : > { %2196 = vmatpush3.bf16.msra.mxu1 (!%p257_p3), %v2481_v5  ;;  %2341 = vmatprep.subr.bf16.mxu0 (!%p257_p3), %v2482_v6  ;;  %v2495_v19 = vld [vmem:[%s3087_s2 + $0x70] sm:$0xff] (!%p257_p3)   ;;  %v2498_v22 = vld [vmem:[%s3087_s2 + $0x78] sm:$0xff] (!%p257_p3)   ;;  %v2502_v55 = vld [vmem:[%s3087_s2 + $0x1c0] sm:$0xff] (!%p257_p3)  }
   0xe   : > { %s3098_s18 = smov (!%p333_p4, %s2562_s18), 1  ;;  %2197 = vmatprep.subr.bf16.mxu1 %v2483_v7  ;;  %v2496_v20 = vld [vmem:[%s3087_s2 + $0x30] sm:$0xff]   ;;  %v2499_v32 = vld [vmem:[%s3087_s2 + $0x38] sm:$0xff]   ;;  %vm2732_vm2 = vmor %vm454_vm0, %vm455_vm1 }
   0xf   : > { %s2449_s10 = smul.u32 288, %s3098_s18  ;;  %v2503_v1 = vld [vmem:[%s3087_s2 + $0x180] sm:$0xff]   ;;  %s2043_s14 = sshll.u32 %s3098_s18, 3 }
  0x10   : > { %2342 = vmatpush3.bf16.msra.mxu0 %v2482_v6  ;;  %s379_s17 = scalar_lea.vmem %s3089_s4, %s2043_s14  ;;  %s386_s25 = scalar_lea.vmem %s3090_s5, %s2043_s14 }
  0x11   : > { %2198 = vmatpush3.bf16.msra.mxu1 %v2484_v8  ;;  %2343 = vmatprep.subr.bf16.mxu0 %v2485_v9  ;;  %s2688_s23 = scalar_lea.vmem %s3085_s0, %s2449_s10  ;;  %s2156_s30 = sadd.s32 256, %s2449_s10 }
  0x12   : > { %2199 = vmatprep.subr.bf16.mxu1 %v2486_v10  ;;  %v388_v23 = vld [vmem:[%s2688_s23] sm:$0xff]  ;;  %v389_v24 = vld [vmem:[%s2688_s23 + $0x8] sm:$0x11]  ;;  %s2945_s12 = scalar_lea.vmem %s3086_s1, %s2156_s30 }
  0x13   : > { %v2702_v25 = vld [vmem:[%s2688_s23 + $0x20] sm:$0xff]  ;;  %v393_v26 = vld [vmem:[%s2688_s23 + $0x28] sm:$0x11]  ;;  %v458_v29 = vshrl.u32 %v388_v23, 16  ;;  %v461_v33 = vshll.u32 %v388_v23, 16  ;;  %v467_v34 = vshll.u32 %v389_v24, 16 }
  0x14   : > { %2344 = vmatpush3.bf16.msra.mxu0 %v2485_v9  ;;  %v2706_v27 = vld [vmem:[%s2688_s23 + $0x40] sm:$0xff]  ;;  %v397_v28 = vld [vmem:[%s2688_s23 + $0x48] sm:$0x11]  ;;  %v2058_v30 = vcombine.high %v388_v23, %v2702_v25  ;;  %v2057_v31 = vcombine.low %v388_v23, %v2702_v25  ;;  %v472_v35 = vshrl.u32 %v2702_v25, 16  ;;  %v475_v38 = vshll.u32 %v2702_v25, 16  ;;  %v2514_v23 = vld [vmem:[%s3087_s2 + $0x1d8] sm:$0xff]  }
  0x15   : > { %2200 = vmatpush3.bf16.msra.mxu1 %v2487_v11  ;;  %2345 = vmatprep.subr.bf16.mxu0 %v2488_v12  ;;  %v460_v37 = vrot.slane %v458_v29, 4  ;;  %v481_v39 = vshll.u32 %v393_v26, 16  ;;  %v486_v40 = vshrl.u32 %v2706_v27, 16  ;;  %v463_v41 = vrot.slane %v461_v33, 5  ;;  %v2722_v49 = vld [vmem:[%s2688_s23 + $0x60] sm:$0xff]  ;;  %v2515_v24 = vld [vmem:[%s3087_s2 + $0x198] sm:$0xff]  }
  0x16   : > { %2201 = vmatprep.subr.bf16.mxu1 %v2489_v13  ;;  %882 = vmatprep.mubr.bf16.mxu1 %v2058_v30  ;;  %v469_v42 = vrot.slane %v467_v34, 5  ;;  %v474_v43 = vrot.slane %v472_v35, 4  ;;  %v489_v44 = vshll.u32 %v2706_v27, 16  ;;  %v477_v45 = vrot.slane %v475_v38, 5  ;;  %v401_v52 = vld [vmem:[%s2688_s23 + $0x68] sm:$0x11] }
  0x17   : > { %v483_v46 = vrot.slane %v481_v39, 5  ;;  %v488_v47 = vrot.slane %v486_v40, 4  ;;  %v495_v48 = vshll.u32 %v397_v28, 16  ;;  %v464_v50 = vor.u32 %v463_v41, %v460_v37  ;;  %v2501_v11 = vld [vmem:[%s3087_s2 + $0xc0] sm:$0xff]   ;;  %v2512_v26 = vld [vmem:[%s3087_s2 + $0x118] sm:$0xff]  }
  0x18   : > { %2346 = vmatpush3.bf16.msra.mxu0 %v2488_v12  ;;  %v491_v51 = vrot.slane %v489_v44, 5  ;;  %v500_v53 = vshrl.u32 %v2722_v49, 16  ;;  %v503_v54 = vshll.u32 %v2722_v49, 16  ;;  %v478_v57 = vor.u32 %v477_v45, %v474_v43  ;;  %v2506_v12 = vld [vmem:[%s3087_s2 + $0x1c8] sm:$0xff]   ;;  %v2797_v28 = vld [vmem:[%s2688_s23 + $0x80] sm:$0xff]  ;;  %v2513_v30 = vld [vmem:[%s3087_s2 + $0xd8] sm:$0xff]  }
  0x19   : > { %2202 = vmatpush3.bf16.msra.mxu1 %v2490_v14  ;;  %2347 = vmatprep.subr.bf16.mxu0 %v2491_v15  ;;  %v497_v58 = vrot.slane %v495_v48, 5  ;;  %v509_v59 = vshll.u32 %v401_v52, 16  ;;  %v2060_v60 = vcombine.high %v2706_v27, %v2722_v49  ;;  %v465_v61 = vrot.slane %v464_v50, 4  ;;  %v2507_v14 = vld [vmem:[%s3087_s2 + $0x188] sm:$0xff]   ;;  %v2800_v29 = vld [vmem:[%s2688_s23 + $0xa0] sm:$0xff] }
  0x1a   : > { %2203 = vmatprep.subr.bf16.mxu1 %v2492_v16  ;;  %v492_v62 = vor.u32 %v491_v51, %v488_v47  ;;  %v502_v63 = vrot.slane %v500_v53, 4  ;;  %v505_v0 = vrot.slane %v503_v54, 5  ;;  %v479_v2 = vrot.slane %v478_v57, 4  ;;  %v2504_v16 = vld [vmem:[%s3087_s2 + $0x108] sm:$0xff]   ;;  %v2518_v34 = vld [vmem:[%s3087_s2 + $0x1e0] sm:$0xff]  }
  0x1b   : > { %v470_v3 = vsel %vm2732_vm2, %v465_v61, %v469_v42  ;;  %v511_v6 = vrot.slane %v509_v59, 5  ;;  %v514_v33 = vshrl.u32 %v2797_v28, 16  ;;  %v517_v35 = vshll.u32 %v2797_v28, 16  ;;  %v2516_v38 = vld [vmem:[%s3087_s2 + $0x120] sm:$0xff]   ;;  %v2520_v42 = vld [vmem:[%s3087_s2 + $0x128] sm:$0xff]  }
  0x1c   : > { %2348 = vmatpush3.bf16.msra.mxu0 %v2491_v15  ;;  %v493_v4 = vrot.slane %v492_v62, 4  ;;  %v506_v5 = vor.u32 %v505_v0, %v502_v63  ;;  %v2745_v7 = vsel %vm2732_vm2, %v479_v2, %v483_v46  ;;  %v2517_v40 = vld [vmem:[%s3087_s2 + $0xe0] sm:$0xff]   ;;  %v528_v41 = vshrl.u32 %v2800_v29, 16  ;;  %v2522_v43 = vld [vmem:[%s3087_s2 + $0x1e8] sm:$0xff]  }
  0x1d   : > { %2204 = vmatpush3.bf16.msra.mxu1 %v2493_v17  ;;  %2349 = vmatprep.subr.bf16.mxu0 %v2494_v18  ;;  %v2045_v9 = vcombine.low %v470_v3, %v2745_v7  ;;  %v2059_v17 = vcombine.low %v2706_v27, %v2722_v49  ;;  %v516_v37 = vrot.slane %v514_v33, 4  ;;  %v519_v39 = vrot.slane %v517_v35, 5  ;;  %v405_v46 = vld [vmem:[%s2688_s23 + $0x88] sm:$0x11]  ;;  %v2840_v57 = vld [vmem:[%s2688_s23 + $0xc0] sm:$0xff]  ;;  %v2528_v33 = vld [vmem:[%s3087_s2 + $0x138] sm:$0xff]  }
  0x1e   : > { %2205 = vmatprep.subr.bf16.mxu1 %v2495_v19  ;;  %v2749_v8 = vsel %vm2732_vm2, %v493_v4, %v497_v58  ;;  %v507_v10 = vrot.slane %v506_v5, 4  ;;  %v2510_v19 = vld [vmem:[%s3087_s2 + $0x1d0] sm:$0xff]   ;;  %v531_v45 = vshll.u32 %v2800_v29, 16  ;;  %v409_v47 = vld [vmem:[%s2688_s23 + $0xa8] sm:$0x11]  ;;  %v530_v48 = vrot.slane %v528_v41, 4 }
  0x1f   : > { %2353 = vmatprep.mubr.bf16.mxu0 %v2045_v9  ;;  %v520_v44 = vor.u32 %v519_v39, %v516_v37  ;;  %v2523_v50 = vld [vmem:[%s3087_s2 + $0x1a8] sm:$0xff]   ;;  %v523_v52 = vshll.u32 %v405_v46, 16  ;;  %v537_v54 = vshll.u32 %v409_v47, 16  ;;  %v2844_v62 = vld [vmem:[%s2688_s23 + $0xe0] sm:$0xff]  ;;  %v542_v0 = vshrl.u32 %v2840_v57, 16  ;;  %v2529_v35 = vld [vmem:[%s3087_s2 + $0xf8] sm:$0xff]  }
  0x20   : > { %2350 = vmatpush3.bf16.msra.mxu0 %v2494_v18  ;;  %v2760_v13 = vsel %vm2732_vm2, %v507_v10, %v511_v6  ;;  %v2505_v18 = vld [vmem:[%s3087_s2 + $0xc8] sm:$0xff]   ;;  %v533_v53 = vrot.slane %v531_v45, 5  ;;  %v556_v3 = vshrl.u32 %v2844_v62, 16  ;;  %v559_v4 = vshll.u32 %v2844_v62, 16  ;;  %v2530_v37 = vld [vmem:[%s3087_s2 + $0x1f8] sm:$0xff]   ;;  %v2533_v46 = vld [vmem:[%s3087_s2 + $0x200] sm:$0xff]  }
  0x21   : > { %2206 = vmatpush3.bf16.msra.mxu1 %v2496_v20  ;;  %2351 = vmatprep.subr.bf16.mxu0 %v2497_v21  ;;  %v2046_v15 = vcombine.low %v2749_v8, %v2760_v13  ;;  %v2511_v20 = vld [vmem:[%s3087_s2 + $0x190] sm:$0xff]   ;;  %v521_v51 = vrot.slane %v520_v44, 4  ;;  %v413_v58 = vld [vmem:[%s2688_s23 + $0xc8] sm:$0x11]  ;;  %v525_v59 = vrot.slane %v523_v52, 5  ;;  %v539_v61 = vrot.slane %v537_v54, 5 }
  0x22   : > { %2207 = vmatprep.subr.bf16.mxu1 %v2498_v22  ;;  %v2509_v22 = vld [vmem:[%s3087_s2 + $0xd0] sm:$0xff]   ;;  %v417_v63 = vld [vmem:[%s2688_s23 + $0xe8] sm:$0x11]  ;;  %v551_v2 = vshll.u32 %v413_v58, 16  ;;  %v544_v9 = vrot.slane %v542_v0, 4  ;;  %v2531_v41 = vld [vmem:[%s3087_s2 + $0x1b8] sm:$0xff]   ;;  %v2117_v45 = vcombine.low %v2702_v25, %v2706_v27  ;;  %v2120_v47 = vcombine.high %v2722_v49, %v2797_v28 }
  0x23   : > { %v2853_v5 = vsel %vm2732_vm2, %v521_v51, %v525_v59  ;;  %v565_v10 = vshll.u32 %v417_v63, 16  ;;  %v2532_v44 = vld [vmem:[%s3087_s2 + $0x140] sm:$0xff]   ;;  %v2534_v51 = vld [vmem:[%s3087_s2 + $0x148] sm:$0xff]   ;;  %v2119_v54 = vcombine.low %v2722_v49, %v2797_v28  ;;  %v2536_v49 = vld [vmem:[%s3087_s2 + $0x150] sm:$0xff]  }
  0x24   : > { %2352 = vmatpush3.bf16.msra.mxu0 %v2497_v21  ;;  %v2508_v21 = vld [vmem:[%s3087_s2 + $0x110] sm:$0xff]  }
  0x25   : > { %2208 = vmatpush3.bf16.msra.mxu1 %v2499_v32  ;;  %2233 = vmatprep.subr.bf16.mxu0 %v2500_v36  ;;  %v2061_v32 = vcombine.low %v2797_v28, %v2800_v29  ;;  %v2519_v36 = vld [vmem:[%s3087_s2 + $0x1a0] sm:$0xff]  }
  0x26   : > { %2285 = vmatprep.subr.bf16.mxu1 %v2502_v55  ;;  %v2521_v55 = vld [vmem:[%s3087_s2 + $0xe8] sm:$0xff]  }
  0x27   : > { %2354 = vmatmul.mubr.bf16.vlgmr.msra.gmra.mrb[0].mxu0 %v2046_v15 }
  0x28   : > { %883 = vmatmul.mubr.bf16.vlgmr.msra.gmra.mrb[0].mxu1 %v2057_v31  ;;  %2234 = vmatpush3.bf16.msra.mxu0 %v2501_v11  ;;  %v2062_v31 = vcombine.high %v2797_v28, %v2800_v29  ;;  %v2524_v11 = vld [vmem:[%s3087_s2 + $0x130] sm:$0xff]   ;;  %v2539_v28 = vld [vmem:[%s3087_s2 + $0x218] sm:$0xff]  }
  0x29   : > { %2286 = vmatpush3.bf16.msra.mxu1 %v2503_v1  ;;  %890 = vmatprep.mubr.bf16.mxu1 %v2060_v60  ;;  %v534_v60 = vor.u32 %v533_v53, %v530_v48  ;;  %v545_v1 = vshll.u32 %v2840_v57, 16  ;;  %v2535_v48 = vld [vmem:[%s3087_s2 + $0x208] sm:$0xff]   ;;  %v2537_v53 = vld [vmem:[%s3087_s2 + $0x210] sm:$0xff]  }
  0x2a   : > { %2287 = vmatprep.subr.bf16.mxu1 %v2506_v12  ;;  %2235 = vmatprep.subr.bf16.mxu0 %v2504_v16  ;;  %v561_v16 = vrot.slane %v559_v4, 5  ;;  %v2940_v4 = vld [vmem:[%s2688_s23 + $0xb0] sm:$0xff] }
  0x2b   : > { %v535_v6 = vrot.slane %v534_v60, 4  ;;  %v547_v12 = vrot.slane %v545_v1, 5 }
  0x2c   : > { %2236 = vmatpush3.bf16.msra.mxu0 %v2505_v18  ;;  %v2525_v18 = vld [vmem:[%s3087_s2 + $0xf0] sm:$0xff]  }
  0x2d   : > { %2288 = vmatpush3.bf16.msra.mxu1 %v2507_v14  ;;  %2237 = vmatprep.subr.bf16.mxu0 %v2508_v21  ;;  %v558_v14 = vrot.slane %v556_v3, 4  ;;  %v2860_v15 = vsel %vm2732_vm2, %v535_v6, %v539_v61  ;;  %v548_v21 = vor.u32 %v547_v12, %v544_v9  ;;  %v2937_v3 = vld [vmem:[%s2688_s23 + $0x90] sm:$0xff] }
  0x2e   : > { %2289 = vmatprep.subr.bf16.mxu1 %v2510_v19  ;;  %v2118_v19 = vcombine.high %v2702_v25, %v2706_v27  ;;  %v402_v25 = vld [vmem:[%s2688_s23 + $0x70] sm:$0xff]  ;;  %v2086_v12 = vcombine.high %v2937_v3, %v2940_v4 }
  0x2f   : > { %v1199_v1 = vshrl.u32 %v402_v25, 16 }
  0x30   : > { %891 = vmatmul.mubr.bf16.gmra.mrb[4].mxu1 %v2059_v17  ;;  %2238 = vmatpush3.bf16.msra.mxu0 %v2509_v22  ;;  %v2064_v17 = vcombine.high %v2840_v57, %v2844_v62  ;;  %v553_v22 = vrot.slane %v551_v2, 5  ;;  %v1202_v2 = vshll.u32 %v402_v25, 16 }
  0x31   : > { %2290 = vmatpush3.bf16.msra.mxu1 %v2511_v20  ;;  %898 = vmatprep.mubr.bf16.mxu1 %v2062_v31  ;;  %v2047_v20 = vcombine.low %v2853_v5, %v2860_v15  ;;  %v2527_v31 = vld [vmem:[%s3087_s2 + $0x1b0] sm:$0xff]  }
  0x32   : > { %2291 = vmatprep.subr.bf16.mxu1 %v2514_v23  ;;  %2239 = vmatprep.subr.bf16.mxu0 %v2512_v26  ;;  %v2063_v23 = vcombine.low %v2840_v57, %v2844_v62  ;;  %v562_v26 = vor.u32 %v561_v16, %v558_v14 }
  0x33   : > { %2357 = vmatprep.mubr.bf16.mxu0 %v2047_v20  ;;  %v2541_v20 = vld [vmem:[%s3087_s2 + $0x220] sm:$0xff]  }
  0x34   : > { %2240 = vmatpush3.bf16.msra.mxu0 %v2513_v30  ;;  %v567_v30 = vrot.slane %v565_v10, 5 }
  0x35   : > { %2292 = vmatpush3.bf16.msra.mxu1 %v2515_v24  ;;  %2241 = vmatprep.subr.bf16.mxu0 %v2516_v38  ;;  %v2526_v24 = vld [vmem:[%s3087_s2 + $0x1f0] sm:$0xff]  }
  0x36   : > { %2293 = vmatprep.subr.bf16.mxu1 %v2518_v34  ;;  %v563_v34 = vrot.slane %v562_v26, 4  ;;  %v390_v38 = vld [vmem:[%s2688_s23 + $0x10] sm:$0xff]  ;;  %v2960_v26 = vld [vmem:[%s2945_s12] sm:$0xff] }
  0x37   : > { %v1157_v58 = vshrl.u32 %v390_v38, 16  ;;  %v1160_v59 = vshll.u32 %v390_v38, 16 }
  0x38   : > { %899 = vmatmul.mubr.bf16.gmra.mrb[8].mxu1 %v2061_v32  ;;  %2242 = vmatpush3.bf16.msra.mxu0 %v2517_v40  ;;  %v549_v32 = vrot.slane %v548_v21, 4  ;;  %v2895_v39 = vsel %vm2732_vm2, %v563_v34, %v567_v30  ;;  %v394_v40 = vld [vmem:[%s2688_s23 + $0x30] sm:$0xff]  ;;  %v1204_v21 = vrot.slane %v1202_v2, 5  ;;  %v1227_v30 = vshrl.u32 %v2940_v4, 16 }
  0x39   : > { %2294 = vmatpush3.bf16.msra.mxu1 %v2519_v36  ;;  %2243 = vmatprep.subr.bf16.mxu0 %v2520_v42  ;;  %v2081_v27 = vcombine.low %v390_v38, %v394_v40  ;;  %v1171_v60 = vshrl.u32 %v394_v40, 16  ;;  %v1174_v61 = vshll.u32 %v394_v40, 16  ;;  %v1159_v9 = vrot.slane %v1157_v58, 4 }
  0x3a   : > { %2295 = vmatprep.subr.bf16.mxu1 %v2522_v43  ;;  %906 = vmatprep.mubr.bf16.mxu1 %v2064_v17  ;;  %v2887_v36 = vsel %vm2732_vm2, %v549_v32, %v553_v22  ;;  %v2082_v43 = vcombine.high %v390_v38, %v394_v40  ;;  %v1162_v10 = vrot.slane %v1160_v59, 5  ;;  %v1213_v22 = vshrl.u32 %v2937_v3, 16  ;;  %v2543_v32 = vld [vmem:[%s3087_s2 + $0x228] sm:$0xff]  }
  0x3b   : > { %v2048_v42 = vcombine.low %v2887_v36, %v2895_v39  ;;  %v1173_v14 = vrot.slane %v1171_v60, 4  ;;  %v1176_v16 = vrot.slane %v1174_v61, 5  ;;  %v2141_v40 = vcombine.low %v2745_v7, %v2749_v8 }
  0x3c   : > { %2244 = vmatpush3.bf16.msra.mxu0 %v2521_v55  ;;  %v2122_v55 = vcombine.high %v2800_v29, %v2840_v57  ;;  %v1163_v34 = vor.u32 %v1162_v10, %v1159_v9  ;;  %v2123_v61 = vcombine.low %v2844_v62, %v2960_v26  ;;  %v1642_v2 = vshrl.u32 %v2960_v26, 16  ;;  %v421_v10 = vld [vmem:[%s2945_s12 + $0x8] sm:$0x11] }
  0x3d   : > { %2296 = vmatpush3.bf16.msra.mxu1 %v2523_v50  ;;  %2245 = vmatprep.subr.bf16.mxu0 %v2524_v11  ;;  %v398_v50 = vld [vmem:[%s2688_s23 + $0x50] sm:$0xff]  ;;  %v1177_v38 = vor.u32 %v1176_v16, %v1173_v14 }
  0x3e   : > { %2297 = vmatprep.subr.bf16.mxu1 %v2526_v24  ;;  %2358 = vmatmul.mubr.bf16.gmra.mrb[4].mxu0 %v2048_v42  ;;  %v2084_v52 = vcombine.high %v398_v50, %v402_v25  ;;  %v1185_v63 = vshrl.u32 %v398_v50, 16  ;;  %v1188_v0 = vshll.u32 %v398_v50, 16  ;;  %v2083_v6 = vcombine.low %v398_v50, %v402_v25  ;;  %v395_v42 = vld [vmem:[%s2688_s23 + $0x38] sm:$0x11]  ;;  %v2544_v14 = vld [vmem:[%s3087_s2 + $0x170] sm:$0xff]  }
  0x3f   : > { %1115 = vmatprep.mubr.bf16.mxu0 %v2082_v43  ;;  %v2121_v24 = vcombine.low %v2800_v29, %v2840_v57  ;;  %v2124_v29 = vcombine.high %v2844_v62, %v2960_v26  ;;  %v1230_v57 = vshll.u32 %v2940_v4, 16  ;;  %v1215_v43 = vrot.slane %v1213_v22, 4  ;;  %v399_v50 = vld [vmem:[%s2688_s23 + $0x58] sm:$0x11] }
  0x40   : > { %907 = vmatmul.mubr.bf16.gmra.mrb[12].mxu1 %v2063_v23  ;;  %2246 = vmatpush3.bf16.msra.mxu0 %v2525_v18  ;;  %v1187_v11 = vrot.slane %v1185_v63, 4  ;;  %v1190_v17 = vrot.slane %v1188_v0, 5  ;;  %v1201_v18 = vrot.slane %v1199_v1, 4  ;;  %v1216_v23 = vshll.u32 %v2937_v3, 16  ;;  %v403_v25 = vld [vmem:[%s2688_s23 + $0x78] sm:$0x11] }
  0x41   : > { %1600 = vmatprep.mubr.bf16.mxu1 %v2118_v19  ;;  %2298 = vmatpush3.bf16.msra.mxu1 %v2527_v31  ;;  %v2538_v19 = vld [vmem:[%s3087_s2 + $0x158] sm:$0xff]   ;;  %v2540_v31 = vld [vmem:[%s3087_s2 + $0x160] sm:$0xff]   ;;  %v1164_v8 = vrot.slane %v1163_v34, 4  ;;  %v1178_v58 = vrot.slane %v1177_v38, 4  ;;  %v1194_v63 = vshll.u32 %v399_v50, 16 }
  0x42   : > { %2247 = vmatprep.subr.bf16.mxu0 %v2528_v33  ;;  %2299 = vmatprep.subr.bf16.mxu1 %v2530_v37  ;;  %v2973_v33 = vld [vmem:[%s2688_s23 + $0xd0] sm:$0xff]  ;;  %v407_v0 = vld [vmem:[%s2688_s23 + $0x98] sm:$0x11] }
  0x43   : > { %v2976_v37 = vld [vmem:[%s2688_s23 + $0xf0] sm:$0xff]  ;;  %v1241_v60 = vshrl.u32 %v2973_v33, 16 }
  0x44   : > { %2248 = vmatpush3.bf16.msra.mxu0 %v2529_v35  ;;  %v1191_v35 = vor.u32 %v1190_v17, %v1187_v11  ;;  %v2088_v7 = vcombine.high %v2973_v33, %v2976_v37  ;;  %v1255_v62 = vshrl.u32 %v2976_v37, 16  ;;  %v1258_v9 = vshll.u32 %v2976_v37, 16  ;;  %v2547_v11 = vld [vmem:[%s3087_s2 + $0x238] sm:$0xff]  }
  0x45   : > { %2300 = vmatpush3.bf16.msra.mxu1 %v2531_v41  ;;  %2361 = vmatprep.subr.bf16.mxu0 %v2532_v44  ;;  %v391_v41 = vld [vmem:[%s2688_s23 + $0x18] sm:$0x11] }
  0x46   : > { %2385 = vmatprep.subr.bf16.mxu1 %v2533_v46  ;;  %v1257_v34 = vrot.slane %v1255_v62, 4 }
  0x47   : > { %1116 = vmatmul.mubr.bf16.vlgmr.msra.gmra.mrb[8].mxu0 %v2081_v27  ;;  %v1229_v27 = vrot.slane %v1227_v30, 4 }
  0x48   : > { %1601 = vmatmul.mubr.bf16.vlgmr.msra.gmra.mrb[16].mxu1 %v2117_v45  ;;  %2362 = vmatpush3.bf16.msra.mxu0 %v2532_v44  ;;  %v1218_v44 = vrot.slane %v1216_v23, 5  ;;  %v1205_v45 = vor.u32 %v1204_v21, %v1201_v18  ;;  %v1222_v18 = vshll.u32 %v407_v0, 16  ;;  %v1196_v21 = vrot.slane %v1194_v63, 5 }
  0x49   : > { %2386 = vmatpush3.bf16.msra.mxu1 %v2533_v46  ;;  %1608 = vmatprep.mubr.bf16.mxu1 %v2120_v47  ;;  %v2085_v46 = vcombine.low %v2937_v3, %v2940_v4  ;;  %v1166_v47 = vshll.u32 %v391_v41, 16  ;;  %v1645_v3 = vshll.u32 %v2960_v26, 16  ;;  %v1208_v4 = vshll.u32 %v403_v25, 16 }
  0x4a   : > { %2387 = vmatprep.subr.bf16.mxu1 %v2535_v48  ;;  %1123 = vmatprep.mubr.bf16.mxu0 %v2084_v52  ;;  %v2988_v52 = vrot.slane %v1191_v35, 4  ;;  %v3001_v1 = vrot.slane %v1205_v45, 4  ;;  %v1243_v23 = vrot.slane %v1241_v60, 4  ;;  %v1644_v26 = vrot.slane %v1642_v2, 4 }
  0x4b   : > { %2363 = vmatprep.subr.bf16.mxu0 %v2534_v51  ;;  %v1647_v30 = vrot.slane %v1645_v3, 5  ;;  %v1260_v35 = vrot.slane %v1258_v9, 5 }
  0x4c   : > { %2364 = vmatpush3.bf16.msra.mxu0 %v2534_v51  ;;  %v1232_v51 = vrot.slane %v1230_v57, 5  ;;  %v1197_v45 = vsel %vm2732_vm2, %v2988_v52, %v1196_v21 }
  0x4d   : > { %2388 = vmatpush3.bf16.msra.mxu1 %v2535_v48  ;;  %2365 = vmatprep.subr.bf16.mxu0 %v2536_v49  ;;  %v1180_v48 = vshll.u32 %v395_v42, 16  ;;  %v1648_v42 = vor.u32 %v1647_v30, %v1644_v26 }
  0x4e   : > { %2389 = vmatprep.subr.bf16.mxu1 %v2537_v53 }
  0x4f   : > { %1124 = vmatmul.mubr.bf16.gmra.mrb[12].mxu0 %v2083_v6  ;;  %v1182_v59 = vrot.slane %v1180_v48, 5  ;;  %v1244_v6 = vshll.u32 %v2973_v33, 16 }
  0x50   : > { %1609 = vmatmul.mubr.bf16.gmra.mrb[20].mxu1 %v2119_v54  ;;  %2366 = vmatpush3.bf16.msra.mxu0 %v2536_v49  ;;  %v2545_v54 = vld [vmem:[%s3087_s2 + $0x230] sm:$0xff]   ;;  %v411_v49 = vld [vmem:[%s2688_s23 + $0xb8] sm:$0x11] }
  0x51   : > { %2390 = vmatpush3.bf16.msra.mxu1 %v2537_v53  ;;  %1616 = vmatprep.mubr.bf16.mxu1 %v2122_v55  ;;  %v2542_v53 = vld [vmem:[%s3087_s2 + $0x168] sm:$0xff]   ;;  %v1168_v55 = vrot.slane %v1166_v47, 5  ;;  %v1183_v17 = vsel %vm2732_vm2, %v1178_v58, %v1182_v59  ;;  %v1246_v57 = vrot.slane %v1244_v6, 5  ;;  %v1649_v47 = vrot.slane %v1648_v42, 4 }
  0x52   : > { %2391 = vmatprep.subr.bf16.mxu1 %v2539_v28  ;;  %1131 = vmatprep.mubr.bf16.mxu0 %v2086_v12  ;;  %v1233_v12 = vor.u32 %v1232_v51, %v1229_v27 }
  0x53   : > { %2367 = vmatprep.subr.bf16.mxu0 %v2538_v19  ;;  %v1169_v16 = vsel %vm2732_vm2, %v1164_v8, %v1168_v55 }
  0x54   : > { %2368 = vmatpush3.bf16.msra.mxu0 %v2538_v19  ;;  %v1236_v19 = vshll.u32 %v411_v49, 16  ;;  %v1234_v38 = vrot.slane %v1233_v12, 4 }
  0x55   : > { %2392 = vmatpush3.bf16.msra.mxu1 %v2539_v28  ;;  %2369 = vmatprep.subr.bf16.mxu0 %v2540_v31  ;;  %v1219_v28 = vor.u32 %v1218_v44, %v1215_v43  ;;  %v2142_v43 = vcombine.low %v2760_v13, %v2853_v5  ;;  %v2143_v44 = vcombine.low %v2860_v15, %v2887_v36 }
  0x56   : > { %2393 = vmatprep.subr.bf16.mxu1 %v2541_v20  ;;  %v1238_v41 = vrot.slane %v1236_v19, 5  ;;  %v1261_v13 = vor.u32 %v1260_v35, %v1257_v34 }
  0x57   : > { %1132 = vmatmul.mubr.bf16.gmra.mrb[16].mxu0 %v2085_v46  ;;  %v1220_v22 = vrot.slane %v1219_v28, 4 }
  0x58   : > { %1617 = vmatmul.mubr.bf16.gmra.mrb[24].mxu1 %v2121_v24  ;;  %2370 = vmatpush3.bf16.msra.mxu0 %v2540_v31  ;;  %v1210_v24 = vrot.slane %v1208_v4, 5  ;;  %v1651_v31 = vshll.u32 %v421_v10, 16  ;;  %v1239_v36 = vsel %vm2732_vm2, %v1234_v38, %v1238_v41 }
  0x59   : > { %2394 = vmatpush3.bf16.msra.mxu1 %v2541_v20  ;;  %1624 = vmatprep.mubr.bf16.mxu1 %v2124_v29  ;;  %v2087_v20 = vcombine.low %v2973_v33, %v2976_v37  ;;  %v415_v29 = vld [vmem:[%s2688_s23 + $0xd8] sm:$0x11]  ;;  %v1224_v37 = vrot.slane %v1222_v18, 5 }
  0x5a   : > { %2395 = vmatprep.subr.bf16.mxu1 %v2543_v32  ;;  %1139 = vmatprep.mubr.bf16.mxu0 %v2088_v7  ;;  %v2546_v33 = vld [vmem:[%s3087_s2 + $0x178] sm:$0xff]   ;;  %v1250_v46 = vshll.u32 %v415_v29, 16  ;;  %v1653_v48 = vrot.slane %v1651_v31, 5  ;;  %v1211_v50 = vsel %vm2732_vm2, %v3001_v1, %v1210_v24  ;;  %v1247_v7 = vor.u32 %v1246_v57, %v1243_v23 }
  0x5b   : > { %2371 = vmatprep.subr.bf16.mxu0 %v2542_v53  ;;  %v1225_v15 = vsel %vm2732_vm2, %v1220_v22, %v1224_v37  ;;  %v2106_v8 = vcombine.low %v1197_v45, %v1211_v50 }
  0x5c   : > { %2372 = vmatpush3.bf16.msra.mxu0 %v2542_v53  ;;  %v1252_v25 = vrot.slane %v1250_v46, 5  ;;  %v1654_v27 = vsel %vm2732_vm2, %v1649_v47, %v1653_v48  ;;  %v2107_v51 = vcombine.low %v1225_v15, %v1239_v36  ;;  %v1248_v52 = vrot.slane %v1247_v7, 4 }
  0x5d   : > { %2396 = vmatpush3.bf16.msra.mxu1 %v2543_v32  ;;  %v2105_v32 = vcombine.low %v1169_v16, %v1183_v17  ;;  %2373 = vmatprep.subr.bf16.mxu0 %v2544_v14  ;;  %v1262_v53 = vrot.slane %v1261_v13, 4  ;;  %v2144_v55 = vcombine.low %v2895_v39, %v1654_v27 }
  0x5e   : > { %2397 = vmatprep.subr.bf16.mxu1 %v2545_v54  ;;  %v1253_v58 = vsel %vm2732_vm2, %v1248_v52, %v1252_v25 }
  0x5f   : > { %1140 = vmatmul.mubr.bf16.gmra.mrb[20].mxu0 %v2087_v20 }
  0x60   : > { %1625 = vmatmul.mubr.bf16.gmra.mrb[28].mxu1 %v2123_v61  ;;  %2374 = vmatpush3.bf16.msra.mxu0 %v2544_v14 }
  0x61   : > { %2398 = vmatpush3.bf16.msra.mxu1 %v2545_v54  ;;  %2401 = vmatprep.mubr.bf16.mxu1 %v2141_v40  ;;  %v419_v40 = vld [vmem:[%s2688_s23 + $0xf8] sm:$0x11]  ;;  %s2157_s23 = sshll.u32 %s3098_s18, 5 }
  0x62   : > { %2399 = vmatprep.subr.bf16.mxu1 %v2547_v11  ;;  %2377 = vmatprep.mubr.bf16.mxu0 %v2105_v32  ;;  %v1264_v5 = vshll.u32 %v419_v40, 16  ;;  %s3061_s13 = scalar_lea.vmem %s3088_s3, %s2157_s23 }
  0x63   : > { %2375 = vmatprep.subr.bf16.mxu0 %v2546_v33 }
  0x64   : > { %2376 = vmatpush3.bf16.msra.mxu0 %v2546_v33  ;;  %v1266_v54 = vrot.slane %v1264_v5, 5 }
  0x65   : > { %2400 = vmatpush3.bf16.msra.mxu1 %v2547_v11 }
  0x66   : > { %v1267_v59 = vsel %vm2732_vm2, %v1262_v53, %v1266_v54 }
  0x67   : > { %2378 = vmatmul.mubr.bf16.vlgmr.msra.gmra.mrb[0].mxu0 %v2106_v8  ;;  %v2108_v60 = vcombine.low %v1253_v58, %v1267_v59 }
  0x68   : > { %2402 = vmatmul.mubr.bf16.vlgmr.msra.gmra.mrb[32].mxu1 %v2142_v43  ;;  %2381 = vmatprep.mubr.bf16.mxu0 %v2107_v51 }
  0x69   : > { %2405 = vmatprep.mubr.bf16.mxu1 %v2143_v44 }
  0x6f   : > { %2382 = vmatmul.mubr.bf16.gmra.mrb[4].mxu0 %v2108_v60 }
  0x70   : > { %2406 = vmatmul.mubr.bf16.gmra.mrb[36].mxu1 %v2144_v55 }
  0xfb   : > { %v2209_v61 = vpop.f32.mrb[0].mxu1 }
  0xfc   : > { %v2210_v63 = vpop.f32.mrb[1].mxu1 }
  0xfd   : > { %v2211_v0 = vadd.f32 %v2210_v63, %v2209_v61  ;;  %v2212_v49 = vpop.f32.mrb[2].mxu1 }
  0xfe   : > { %v2213_v28 = vpop.f32.mrb[3].mxu1 }
  0xff   : > { %v2214_v1 = vadd.f32 %v2213_v28, %v2212_v49 }
 0x103   : > { %v2215_v2 = vpop.f32.mrb[4].mxu1 }
 0x104   : > { %v2216_v3 = vpop.f32.mrb[5].mxu1 }
 0x105   : > { %v2217_v39 = vadd.f32 %v2216_v3, %v2215_v2  ;;  %v2218_v4 = vpop.f32.mrb[6].mxu1 }
 0x106   : > { %v2219_v6 = vpop.f32.mrb[7].mxu1 }
 0x107   : > { %v2220_v62 = vadd.f32 %v2219_v6, %v2218_v4 }
 0x10b   : > { %v2221_v9 = vpop.f32.mrb[8].mxu1 }
 0x10c   : > { %v2222_v10 = vpop.f32.mrb[9].mxu1 }
 0x10d   : > { %v2223_v11 = vadd.f32 %v2222_v10, %v2221_v9  ;;  %v2224_v56 = vpop.f32.mrb[10].mxu1 }
 0x10e   : > { %v2225_v12 = vpop.f32.mrb[11].mxu1 }
 0x10f   : > { %v2226_v14 = vadd.f32 %v2225_v12, %v2224_v56 }
 0x113   : > { %v2227_v16 = vpop.f32.mrb[12].mxu1 }
 0x114   : > { %v2228_v17 = vpop.f32.mrb[13].mxu1 }
 0x115   : > { %v2229_v18 = vadd.f32 %v2228_v17, %v2227_v16  ;;  %v2230_v19 = vpop.f32.mrb[14].mxu1 }
 0x116   : > { %v2231_v20 = vpop.f32.mrb[15].mxu1 }
 0x117   : > { %v2232_v21 = vadd.f32 %v2231_v20, %v2230_v19 }
 0x11a   : > { %v2249_v32 = vpop.f32.mrb[8].mxu0 }
 0x11b   : > { %v2301_v22 = vpop.f32.mrb[16].mxu1  ;;  %v2250_v29 = vpop.f32.mrb[9].mxu0 }
 0x11c   : > { %v2302_v23 = vpop.f32.mrb[17].mxu1  ;;  %v2251_v57 = vadd.f32 %v2250_v29, %v2249_v32  ;;  %v2252_v34 = vpop.f32.mrb[10].mxu0 }
 0x11d   : > { %v3047_v24 = vadd.f32 %v2302_v23, %v2301_v22  ;;  %v2304_v26 = vpop.f32.mrb[18].mxu1  ;;  %v2253_v35 = vpop.f32.mrb[11].mxu0 }
 0x11e   : > { %v2305_v30 = vpop.f32.mrb[19].mxu1  ;;  %v2254_v37 = vadd.f32 %v2253_v35, %v2252_v34  ;;  %v2413_v41 = vadd.f32 %v2251_v57, %v2211_v0 }
 0x11f   : > { %v3049_v31 = vadd.f32 %v2305_v30, %v2304_v26 }
 0x120   : > { %v2421_v44 = vadd.f32 %v2254_v37, %v2214_v1 }
 0x122   : > { %v2255_v46 = vpop.f32.mrb[12].mxu0 }
 0x123   : > { %v2307_v33 = vpop.f32.mrb[20].mxu1  ;;  %v2256_v47 = vpop.f32.mrb[13].mxu0 }
 0x124   : > { %v2308_v38 = vpop.f32.mrb[21].mxu1  ;;  %v2257_v48 = vadd.f32 %v2256_v47, %v2255_v46  ;;  %v2258_v50 = vpop.f32.mrb[14].mxu0 }
 0x125   : > { %v2309_v40 = vadd.f32 %v2308_v38, %v2307_v33  ;;  %v2310_v42 = vpop.f32.mrb[22].mxu1  ;;  %v2259_v7 = vpop.f32.mrb[15].mxu0 }
 0x126   : > { %v2311_v43 = vpop.f32.mrb[23].mxu1  ;;  %v2260_v5 = vadd.f32 %v2259_v7, %v2258_v50  ;;  %v2409_v36 = vadd.f32 %v2257_v48, %v2217_v39 }
 0x127   : > { %v2312_v45 = vadd.f32 %v2311_v43, %v2310_v42 }
 0x128   : > { %v2417_v51 = vadd.f32 %v2260_v5, %v2220_v62 }
 0x12a   : > { %v2261_v53 = vpop.f32.mrb[16].mxu0 }
 0x12b   : > { %v2313_v13 = vpop.f32.mrb[24].mxu1  ;;  %v2262_v54 = vpop.f32.mrb[17].mxu0 }
 0x12c   : > { %v2314_v15 = vpop.f32.mrb[25].mxu1  ;;  %v2263_v55 = vadd.f32 %v2262_v54, %v2261_v53  ;;  %v2264_v58 = vpop.f32.mrb[18].mxu0 }
 0x12d   : > { %v3051_v8 = vadd.f32 %v2314_v15, %v2313_v13  ;;  %v2316_v25 = vpop.f32.mrb[26].mxu1  ;;  %v2265_v59 = vpop.f32.mrb[19].mxu0 }
 0x12e   : > { %v2317_v27 = vpop.f32.mrb[27].mxu1  ;;  %v2266_v61 = vadd.f32 %v2265_v59, %v2264_v58  ;;  %v2429_v0 = vadd.f32 %v2263_v55, %v2223_v11 }
 0x12f   : > { %v3053_v52 = vadd.f32 %v2317_v27, %v2316_v25 }
 0x130   : > { %v2437_v2 = vadd.f32 %v2266_v61, %v2226_v14 }
 0x132   : > { %v2267_v39 = vpop.f32.mrb[20].mxu0 }
 0x133   : > { %v2319_v60 = vpop.f32.mrb[28].mxu1  ;;  %v2268_v4 = vpop.f32.mrb[21].mxu0 }
 0x134   : > { %v2320_v63 = vpop.f32.mrb[29].mxu1  ;;  %v2269_v6 = vadd.f32 %v2268_v4, %v2267_v39  ;;  %v2270_v62 = vpop.f32.mrb[22].mxu0 }
 0x135   : > { %v2321_v49 = vadd.f32 %v2320_v63, %v2319_v60  ;;  %v2322_v28 = vpop.f32.mrb[30].mxu1  ;;  %v2271_v9 = vpop.f32.mrb[23].mxu0 }
 0x136   : > { %v2323_v1 = vpop.f32.mrb[31].mxu1  ;;  %v2272_v56 = vadd.f32 %v2271_v9, %v2270_v62  ;;  %v2425_v16 = vadd.f32 %v2269_v6, %v2229_v18 }
 0x137   : > { %v2324_v3 = vadd.f32 %v2323_v1, %v2322_v28 }
 0x138   : > { %v2433_v20 = vadd.f32 %v2272_v56, %v2232_v21 }
 0x13a   : > { %v2379_v22 = vpop.f32.mrb[0].mxu0 }
 0x13b   : > { %v2403_v10 = vpop.f32.mrb[32].mxu1  ;;  %v2410_v11 = vadd.f32 %v2409_v36, %v2379_v22  ;;  %v1382_v23 = vpop.f32.mrb[1].mxu0 }
 0x13c   : > { %v1762_v12 = vpop.f32.mrb[33].mxu1  ;;  %v2414_v26 = vadd.f32 %v2413_v41, %v1382_v23  ;;  %v2380_v30 = vpop.f32.mrb[2].mxu0 }
 0x13d   : > { %v2404_v17 = vpop.f32.mrb[34].mxu1  ;;  %v2418_v14 = vadd.f32 %v2417_v51, %v2380_v30  ;;  %v2411_v32 = vadd.f32 %v2410_v11, %v2309_v40  ;;  %v1385_v29 = vpop.f32.mrb[3].mxu0 }
 0x13e   : > { %v1765_v19 = vpop.f32.mrb[35].mxu1  ;;  %v2422_v34 = vadd.f32 %v2421_v44, %v1385_v29  ;;  %v2415_v35 = vadd.f32 %v2414_v26, %v3047_v24 }
 0x13f   : > { %v2412_v37 = vadd.f32 %v2411_v32, %v2403_v10  ;;  %v2419_v18 = vadd.f32 %v2418_v14, %v2312_v45 }
 0x140   : > { %v2416_v42 = vadd.f32 %v2415_v35, %v1762_v12  ;;  %v2423_v21 = vadd.f32 %v2422_v34, %v3049_v31 }
 0x141   : > { %v2420_v46 = vadd.f32 %v2419_v18, %v2404_v17  ;;  %v1826_v5 = vmul.f32 %v2412_v37, %v2412_v37 }
 0x142   : > { %v2424_v41 = vadd.f32 %v2423_v21, %v1765_v19  ;;  %v2383_v40 = vpop.f32.mrb[4].mxu0  ;;  %v1824_v24 = vmul.f32 %v2416_v42, %v2416_v42 }
 0x143   : > { %v2407_v57 = vpop.f32.mrb[36].mxu1  ;;  %v2166_v44 = vpack.c.bf16 %v2420_v46, %v2412_v37  ;;  %v2426_v47 = vadd.f32 %v2425_v16, %v2383_v40  ;;  %v1398_v48 = vpop.f32.mrb[5].mxu0  ;;  %v1827_v55 = vmul.f32 %v2420_v46, %v2420_v46 }
 0x144   : > { %v1778_v33 = vpop.f32.mrb[37].mxu1  ;;  %v2161_v45 = vpack.c.bf16 %v2424_v41, %v2416_v42  ;;  %v1817_v50 = vadd.f32 %v2424_v41, %v2416_v42  ;;  %v1825_v7 = vmul.f32 %v2424_v41, %v2424_v41  ;;  %v2430_v13 = vadd.f32 %v2429_v0, %v1398_v48  ;;  %v2384_v31 = vpop.f32.mrb[6].mxu0 }
 0x145   : > { %v2408_v38 = vpop.f32.mrb[38].mxu1  ;;  %2178 = vst [vmem:[%s3061_s13 + $0x8] sm:$0xff] %v2166_v44   ;;  %v2434_v15 = vadd.f32 %v2433_v20, %v2384_v31  ;;  %v2427_v36 = vadd.f32 %v2426_v47, %v2321_v49  ;;  %v1401_v25 = vpop.f32.mrb[7].mxu0 }
 0x146   : > { %v1781_v43 = vpop.f32.mrb[39].mxu1  ;;  %2162 = vst [vmem:[%s3061_s13] sm:$0xff] %v2161_v45   ;;  %v1818_v27 = vadd.f32 %v2412_v37, %v1817_v50  ;;  %v1832_v51 = vadd.f32 %v1825_v7, %v1824_v24  ;;  %v2438_v53 = vadd.f32 %v2437_v2, %v1401_v25  ;;  %v2431_v54 = vadd.f32 %v2430_v13, %v3051_v8 }
 0x147   : > { %v2428_v58 = vadd.f32 %v2427_v36, %v2407_v57  ;;  %v2435_v59 = vadd.f32 %v2434_v15, %v2324_v3 }
 0x148   : > { %v1833_v60 = vadd.f32 %v1832_v51, %v1826_v5  ;;  %v2432_v61 = vadd.f32 %v2431_v54, %v1778_v33  ;;  %v1819_v63 = vadd.f32 %v2420_v46, %v1818_v27  ;;  %v2439_v0 = vadd.f32 %v2438_v53, %v3053_v52 }
 0x149   : > { %v2436_v28 = vadd.f32 %v2435_v59, %v2408_v38  ;;  %v1830_v3 = vmul.f32 %v2428_v58, %v2428_v58 }
 0x14a   : > { %v1820_v49 = vadd.f32 %v2432_v61, %v1819_v63  ;;  %v1828_v1 = vmul.f32 %v2432_v61, %v2432_v61  ;;  %v1834_v39 = vadd.f32 %v1833_v60, %v1827_v55  ;;  %v2440_v4 = vadd.f32 %v2439_v0, %v1781_v43 }
 0x14b   : > { %v2176_v6 = vpack.c.bf16 %v2436_v28, %v2428_v58  ;;  %v1831_v52 = vmul.f32 %v2436_v28, %v2436_v28 }
 0x14c   : > { %v1835_v2 = vadd.f32 %v1834_v39, %v1828_v1  ;;  %v2171_v62 = vpack.c.bf16 %v2440_v4, %v2432_v61  ;;  %v1821_v8 = vadd.f32 %v2440_v4, %v1820_v49  ;;  %v1829_v9 = vmul.f32 %v2440_v4, %v2440_v4 }
 0x14d   : > { %2180 = vst [vmem:[%s3061_s13 + $0x18] sm:$0xff] %v2176_v6  }
 0x14e   : > { %2179 = vst [vmem:[%s3061_s13 + $0x10] sm:$0xff] %v2171_v62   ;;  %v1822_v10 = vadd.f32 %v2428_v58, %v1821_v8  ;;  %v1836_v56 = vadd.f32 %v1835_v2, %v1829_v9 }
 0x150   : > { %v1823_v12 = vadd.f32 %v2436_v28, %v1822_v10  ;;  %v1837_v16 = vadd.f32 %v1836_v56, %v1830_v3 }
 0x152   : > { %v1838_v17 = vadd.f32 %v1837_v16, %v1831_v52  ;;  %1839 = vst [vmem:[%s379_s17] sm:$0xff] %v1823_v12 }
 0x154   : > { %1840 = vst [vmem:[%s386_s25] sm:$0xff] %v1838_v17 }
 0x155 PF: > { %s16_s20 = sadd.s32 1, %s2570_s20   ;;  %s3093_s18 = smov %s2566_s19 }
 0x156   : > { %p13_p5 = scmp.ge.s32.totalorder %s16_s20, 4   ;;  %s3094_s19 = smov %s3096_s21 }
 0x158   :  { %15 = sbr.rel (!%p13_p5) target bundleno = 2 (0x2), region = 89 }

</bundles_post_ra>
